<compile_context>
chip_gen: v7x
topology: tpu7x:2x2x1
jax: 0.10.0
libtpu: 0.0.40
codegen_flags: <defaults>
</compile_context>

<pallas_src>
import math
import random

import jax
import jax.numpy as jnp
from jax.experimental import pallas as pl
from jax.experimental.pallas import tpu as pltpu

# Model hyper-parameters (synthetic, small).
V, D, H, FFN_DIM, S = 256, 128, 4, 256, 8
DH = D // H
MAX_LEN = 512
LANGS = ["en", "lt", "de", "es"]

F32 = jnp.float32
BF16 = jnp.bfloat16
NEG_INF = -1e9


# ----------------------------------------------------------------------------
# In-kernel building blocks (traced only inside the Pallas kernel body)
# ----------------------------------------------------------------------------
def _mm(x, w, b=None):
    """bf16 MXU matmul with f32 accumulation (+ optional f32 bias)."""
    y = jnp.dot(x.astype(BF16), w.astype(BF16), preferred_element_type=F32)
    if b is not None:
        y = y + b
    return y


def _layernorm(x, g, b, eps=1e-5):
    m = jnp.mean(x, axis=-1, keepdims=True)
    xc = x - m
    var = jnp.mean(xc * xc, axis=-1, keepdims=True)
    return xc * jax.lax.rsqrt(var + eps) * g + b


def _mha(q_full, k_full, v_full, mask):
    """All H heads unrolled in one kernel body: (Sq,D),(Sk,D),(Sk,D)->(Sq,D)."""
    scale = 1.0 / math.sqrt(DH)
    outs = []
    for h in range(H):
        lo = h * DH
        qh = (q_full[:, lo:lo + DH] * scale).astype(BF16)
        kh = k_full[:, lo:lo + DH].astype(BF16)
        vh = v_full[:, lo:lo + DH].astype(BF16)
        s = jax.lax.dot_general(
            qh, kh, (((1,), (1,)), ((), ())), preferred_element_type=F32
        )  # (Sq, Sk)
        if mask is not None:
            s = s + mask
        m = jnp.max(s, axis=-1, keepdims=True)
        p = jnp.exp(s - m)
        p = p * pl.reciprocal(jnp.sum(p, axis=-1, keepdims=True), approx=True)
        outs.append(jnp.dot(p.astype(BF16), vh, preferred_element_type=F32))
    return jnp.concatenate(outs, axis=-1)  # (Sq, D) lane-dense


def _encoder_layer(x, pe):
    qkv = _mm(x, pe["wqkv"], pe["bqkv"])                       # fused QKV (S,3D)
    a = _mha(qkv[:, :D], qkv[:, D:2 * D], qkv[:, 2 * D:], None)
    a = _mm(a, pe["wo"], pe["bo"])
    x = _layernorm(x + a, pe["ln1_g"], pe["ln1_b"])
    h = _mm(x, pe["w1"], pe["b1"])
    h = jax.nn.gelu(h, approximate=True)
    h = _mm(h, pe["w2"], pe["b2"])
    return _layernorm(x + h, pe["ln2_g"], pe["ln2_b"])


def _decoder_layer(y, enc_out, pd):
    sq = y.shape[0]
    row = jax.lax.broadcasted_iota(jnp.int32, (sq, sq), 0)
    col = jax.lax.broadcasted_iota(jnp.int32, (sq, sq), 1)
    causal = jnp.where(row >= col, 0.0, NEG_INF).astype(F32)   # built in-kernel

    qkv = _mm(y, pd["self_wqkv"], pd["self_bqkv"])
    a = _mha(qkv[:, :D], qkv[:, D:2 * D], qkv[:, 2 * D:], causal)
    a = _mm(a, pd["self_wo"], pd["self_bo"])
    y = _layernorm(y + a, pd["ln1_g"], pd["ln1_b"])

    q = _mm(y, pd["cross_wq"], pd["cross_bq"])
    kv = _mm(enc_out, pd["cross_wkv"], pd["cross_bkv"])        # fused KV (S,2D)
    a = _mha(q, kv[:, :D], kv[:, D:], None)
    a = _mm(a, pd["cross_wo"], pd["cross_bo"])
    y = _layernorm(y + a, pd["ln2_g"], pd["ln2_b"])

    h = _mm(y, pd["w1"], pd["b1"])
    h = jax.nn.gelu(h, approximate=True)
    h = _mm(h, pd["w2"], pd["b2"])
    return _layernorm(y + h, pd["ln3_g"], pd["ln3_b"])


# ----------------------------------------------------------------------------
# One fused Pallas kernel per seq2seq "generate"
# ----------------------------------------------------------------------------
def _make_seq2seq_kernel(treedef, n_params, seq_len):
    def kernel(ids_ref, *rest):
        out_ref = rest[n_params]
        p = jax.tree_util.tree_unflatten(
            treedef, [rest[i][...] for i in range(n_params)]
        )

        scale = math.sqrt(float(D))
        vocab_iota = jax.lax.broadcasted_iota(jnp.int32, (seq_len, V), 1)

        # Embedding lookup as one-hot @ emb (stays on the MXU; no gather).
        src_oh = (vocab_iota == ids_ref[...]).astype(BF16)           # (S, V)
        x = jnp.dot(src_oh, p["emb"], preferred_element_type=F32) * scale
        x = x + p["pos"]
        enc_out = _encoder_layer(x, p["enc"])

        # TODO(synk): HF .generate() is autoregressive beam/greedy decoding;
        # here we run a single parallel greedy decoder pass over start tokens.
        dec_oh = (vocab_iota == 0).astype(BF16)                      # token 0
        y = jnp.dot(dec_oh, p["emb"], preferred_element_type=F32) * scale
        y = y + p["pos"]
        y = _decoder_layer(y, enc_out, p["dec"])

        # Tied LM head via pre-transposed (D, V) embedding -> lane-dense logits,
        # greedy argmax taking the first index achieving the max.
        logits = jnp.dot(y.astype(BF16), p["emb_t"],
                         preferred_element_type=F32)                 # (S, V)
        maxv = jnp.max(logits, axis=-1, keepdims=True)
        ids = jnp.min(jnp.where(logits == maxv, vocab_iota, V),
                      axis=-1, keepdims=True)
        out_ref[...] = ids.astype(jnp.int32)

    return kernel


@jax.jit
def seq2seq_generate(params, src_ids):
    """src_ids: [1, S] int32 -> greedy generated ids [1, S] int32."""
    s = src_ids.shape[-1]
    ids_col = src_ids.reshape(s, 1).astype(jnp.int32)
    flat, treedef = jax.tree_util.tree_flatten(params)
    kernel = _make_seq2seq_kernel(treedef, len(flat), s)
    vmem = pltpu.MemorySpace.VMEM
    out = pl.pallas_call(
        kernel,
        out_shape=jax.ShapeDtypeStruct((s, 1), jnp.int32),
        in_specs=[pl.BlockSpec(memory_space=vmem)] * (1 + len(flat)),
        out_specs=pl.BlockSpec(memory_space=vmem),
    )(ids_col, *flat)
    return out.reshape(1, s)


# ----------------------------------------------------------------------------
# Deterministic parameter init (fused-QKV layout, bf16 weights, f32 LN/bias)
# ----------------------------------------------------------------------------
def _wn(key, shape, scale=0.02, dtype=BF16):
    return (scale * jax.random.normal(key, shape, dtype=jnp.float32)).astype(dtype)


def _zeros(shape):
    return jnp.zeros(shape, F32)


def _ones(shape):
    return jnp.ones(shape, F32)


def init_ffn(key):
    k1, k2 = jax.random.split(key)
    return {
        "w1": _wn(k1, (D, FFN_DIM)), "b1": _zeros((1, FFN_DIM)),
        "w2": _wn(k2, (FFN_DIM, D)), "b2": _zeros((1, D)),
    }


def init_encoder(key):
    k1, k2, k3 = jax.random.split(key, 3)
    p = {
        "wqkv": _wn(k1, (D, 3 * D)), "bqkv": _zeros((1, 3 * D)),
        "wo": _wn(k2, (D, D)), "bo": _zeros((1, D)),
        "ln1_g": _ones((1, D)), "ln1_b": _zeros((1, D)),
        "ln2_g": _ones((1, D)), "ln2_b": _zeros((1, D)),
    }
    p.update(init_ffn(k3))
    return p


def init_decoder(key):
    ks = jax.random.split(key, 6)
    p = {
        "self_wqkv": _wn(ks[0], (D, 3 * D)), "self_bqkv": _zeros((1, 3 * D)),
        "self_wo": _wn(ks[1], (D, D)), "self_bo": _zeros((1, D)),
        "cross_wq": _wn(ks[2], (D, D)), "cross_bq": _zeros((1, D)),
        "cross_wkv": _wn(ks[3], (D, 2 * D)), "cross_bkv": _zeros((1, 2 * D)),
        "cross_wo": _wn(ks[4], (D, D)), "cross_bo": _zeros((1, D)),
        "ln1_g": _ones((1, D)), "ln1_b": _zeros((1, D)),
        "ln2_g": _ones((1, D)), "ln2_b": _zeros((1, D)),
        "ln3_g": _ones((1, D)), "ln3_b": _zeros((1, D)),
    }
    p.update(init_ffn(ks[5]))
    return p


def init_seq2seq(key):
    ks = jax.random.split(key, 4)
    emb = _wn(ks[0], (V, D))
    return {
        "emb": emb,                       # (V, D) bf16 — embedding lookup
        "emb_t": emb.T,                   # (D, V) bf16 — pre-transposed LM head
        "pos": _wn(ks[1], (S, D), dtype=F32),
        "enc": init_encoder(ks[2]),
        "dec": init_decoder(ks[3]),
    }


# ----------------------------------------------------------------------------
# BackTranslationModule4Lang.forward equivalent
# ----------------------------------------------------------------------------
def back_translation_forward(model_dict, ids, type="tweet"):
    lang = random.choice(LANGS)  # same random language selection as the module
    m = model_dict[lang]
    # TODO(synk): AutoTokenizer encode/decode (strings <-> ids) has no Pallas
    # equivalent; the kernel pipeline operates directly on token ids.
    if type == "tweet":
        gen_ids = seq2seq_generate(m["translate"], ids)
        it_ids = seq2seq_generate(m["backtranslate"], gen_ids)
        return it_ids
    elif type == "article":
        if ids.shape[-1] > MAX_LEN:
            # TODO(synk): long-article chunking (len > 512) into (max_len-1)-sized
            # padded chunks is pure host-side list manipulation; example S << 512.
            pass
        gen_ids = seq2seq_generate(m["translate"], ids)
        it_ids = seq2seq_generate(m["backtranslate"], gen_ids)
        return it_ids


if __name__ == "__main__":
    random.seed(0)
    root = jax.random.PRNGKey(0)
    keys = jax.random.split(root, 1 + 2 * len(LANGS))

    model_dict = {}
    for i, lang in enumerate(LANGS):
        model_dict[lang] = {
            "translate": init_seq2seq(keys[1 + 2 * i]),
            "backtranslate": init_seq2seq(keys[2 + 2 * i]),
        }

    # "text" stand-in: a tokenized sentence of S ids (batch of 1, like [text]).
    ids = jax.random.randint(keys[0], (1, S), 0, V, dtype=jnp.int32)

    out = back_translation_forward(model_dict, ids, type="tweet")
    out = jax.block_until_ready(out)
    assert out.shape == (1, S) and out.dtype == jnp.int32
    print("KERNEL_OK")
</pallas_src>

<mosaic_0001>
module attributes {stable_mosaic.version = 11 : i64} {
  func.func @kernel(%arg0: memref<8x1xi32, #tpu.memory_space<vmem>>, %arg1: memref<1x256xf32, #tpu.memory_space<vmem>>, %arg2: memref<1x128xf32, #tpu.memory_space<vmem>>, %arg3: memref<1x256xf32, #tpu.memory_space<vmem>>, %arg4: memref<1x128xf32, #tpu.memory_space<vmem>>, %arg5: memref<1x128xf32, #tpu.memory_space<vmem>>, %arg6: memref<128x256xbf16, #tpu.memory_space<vmem>>, %arg7: memref<128x128xbf16, #tpu.memory_space<vmem>>, %arg8: memref<128x128xbf16, #tpu.memory_space<vmem>>, %arg9: memref<1x128xf32, #tpu.memory_space<vmem>>, %arg10: memref<1x128xf32, #tpu.memory_space<vmem>>, %arg11: memref<1x128xf32, #tpu.memory_space<vmem>>, %arg12: memref<1x128xf32, #tpu.memory_space<vmem>>, %arg13: memref<1x128xf32, #tpu.memory_space<vmem>>, %arg14: memref<1x128xf32, #tpu.memory_space<vmem>>, %arg15: memref<1x128xf32, #tpu.memory_space<vmem>>, %arg16: memref<1x384xf32, #tpu.memory_space<vmem>>, %arg17: memref<128x128xbf16, #tpu.memory_space<vmem>>, %arg18: memref<128x384xbf16, #tpu.memory_space<vmem>>, %arg19: memref<128x256xbf16, #tpu.memory_space<vmem>>, %arg20: memref<256x128xbf16, #tpu.memory_space<vmem>>, %arg21: memref<256x128xbf16, #tpu.memory_space<vmem>>, %arg22: memref<128x256xbf16, #tpu.memory_space<vmem>>, %arg23: memref<1x256xf32, #tpu.memory_space<vmem>>, %arg24: memref<1x128xf32, #tpu.memory_space<vmem>>, %arg25: memref<1x128xf32, #tpu.memory_space<vmem>>, %arg26: memref<1x384xf32, #tpu.memory_space<vmem>>, %arg27: memref<1x128xf32, #tpu.memory_space<vmem>>, %arg28: memref<1x128xf32, #tpu.memory_space<vmem>>, %arg29: memref<1x128xf32, #tpu.memory_space<vmem>>, %arg30: memref<1x128xf32, #tpu.memory_space<vmem>>, %arg31: memref<128x256xbf16, #tpu.memory_space<vmem>>, %arg32: memref<256x128xbf16, #tpu.memory_space<vmem>>, %arg33: memref<128x128xbf16, #tpu.memory_space<vmem>>, %arg34: memref<128x384xbf16, #tpu.memory_space<vmem>>, %arg35: memref<8x128xf32, #tpu.memory_space<vmem>>, %arg36: memref<8x1xi32, #tpu.memory_space<vmem>>) attributes {dimension_semantics = [], scalar_prefetch = 0 : i64, scratch_operands = 0 : i64, tpu.core_type = #tpu.core_type<tc>} {
    %c0 = arith.constant 0 : index
    %c0_0 = arith.constant 0 : index
    %0 = vector.load %arg1[%c0, %c0_0] : memref<1x256xf32, #tpu.memory_space<vmem>>, vector<1x256xf32>
    %c0_1 = arith.constant 0 : index
    %c0_2 = arith.constant 0 : index
    %1 = vector.load %arg2[%c0_1, %c0_2] : memref<1x128xf32, #tpu.memory_space<vmem>>, vector<1x128xf32>
    %c0_3 = arith.constant 0 : index
    %c0_4 = arith.constant 0 : index
    %2 = vector.load %arg3[%c0_3, %c0_4] : memref<1x256xf32, #tpu.memory_space<vmem>>, vector<1x256xf32>
    %c0_5 = arith.constant 0 : index
    %c0_6 = arith.constant 0 : index
    %3 = vector.load %arg4[%c0_5, %c0_6] : memref<1x128xf32, #tpu.memory_space<vmem>>, vector<1x128xf32>
    %c0_7 = arith.constant 0 : index
    %c0_8 = arith.constant 0 : index
    %4 = vector.load %arg5[%c0_7, %c0_8] : memref<1x128xf32, #tpu.memory_space<vmem>>, vector<1x128xf32>
    %c0_9 = arith.constant 0 : index
    %c0_10 = arith.constant 0 : index
    %5 = vector.load %arg6[%c0_9, %c0_10] : memref<128x256xbf16, #tpu.memory_space<vmem>>, vector<128x256xbf16>
    %c0_11 = arith.constant 0 : index
    %c0_12 = arith.constant 0 : index
    %6 = vector.load %arg7[%c0_11, %c0_12] : memref<128x128xbf16, #tpu.memory_space<vmem>>, vector<128x128xbf16>
    %c0_13 = arith.constant 0 : index
    %c0_14 = arith.constant 0 : index
    %7 = vector.load %arg8[%c0_13, %c0_14] : memref<128x128xbf16, #tpu.memory_space<vmem>>, vector<128x128xbf16>
    %c0_15 = arith.constant 0 : index
    %c0_16 = arith.constant 0 : index
    %8 = vector.load %arg9[%c0_15, %c0_16] : memref<1x128xf32, #tpu.memory_space<vmem>>, vector<1x128xf32>
    %c0_17 = arith.constant 0 : index
    %c0_18 = arith.constant 0 : index
    %9 = vector.load %arg10[%c0_17, %c0_18] : memref<1x128xf32, #tpu.memory_space<vmem>>, vector<1x128xf32>
    %c0_19 = arith.constant 0 : index
    %c0_20 = arith.constant 0 : index
    %10 = vector.load %arg11[%c0_19, %c0_20] : memref<1x128xf32, #tpu.memory_space<vmem>>, vector<1x128xf32>
    %c0_21 = arith.constant 0 : index
    %c0_22 = arith.constant 0 : index
    %11 = vector.load %arg12[%c0_21, %c0_22] : memref<1x128xf32, #tpu.memory_space<vmem>>, vector<1x128xf32>
    %c0_23 = arith.constant 0 : index
    %c0_24 = arith.constant 0 : index
    %12 = vector.load %arg13[%c0_23, %c0_24] : memref<1x128xf32, #tpu.memory_space<vmem>>, vector<1x128xf32>
    %c0_25 = arith.constant 0 : index
    %c0_26 = arith.constant 0 : index
    %13 = vector.load %arg14[%c0_25, %c0_26] : memref<1x128xf32, #tpu.memory_space<vmem>>, vector<1x128xf32>
    %c0_27 = arith.constant 0 : index
    %c0_28 = arith.constant 0 : index
    %14 = vector.load %arg15[%c0_27, %c0_28] : memref<1x128xf32, #tpu.memory_space<vmem>>, vector<1x128xf32>
    %c0_29 = arith.constant 0 : index
    %c0_30 = arith.constant 0 : index
    %15 = vector.load %arg16[%c0_29, %c0_30] : memref<1x384xf32, #tpu.memory_space<vmem>>, vector<1x384xf32>
    %c0_31 = arith.constant 0 : index
    %c0_32 = arith.constant 0 : index
    %16 = vector.load %arg17[%c0_31, %c0_32] : memref<128x128xbf16, #tpu.memory_space<vmem>>, vector<128x128xbf16>
    %c0_33 = arith.constant 0 : index
    %c0_34 = arith.constant 0 : index
    %17 = vector.load %arg18[%c0_33, %c0_34] : memref<128x384xbf16, #tpu.memory_space<vmem>>, vector<128x384xbf16>
    %c0_35 = arith.constant 0 : index
    %c0_36 = arith.constant 0 : index
    %18 = vector.load %arg19[%c0_35, %c0_36] : memref<128x256xbf16, #tpu.memory_space<vmem>>, vector<128x256xbf16>
    %c0_37 = arith.constant 0 : index
    %c0_38 = arith.constant 0 : index
    %19 = vector.load %arg20[%c0_37, %c0_38] : memref<256x128xbf16, #tpu.memory_space<vmem>>, vector<256x128xbf16>
    %c0_39 = arith.constant 0 : index
    %c0_40 = arith.constant 0 : index
    %20 = vector.load %arg21[%c0_39, %c0_40] : memref<256x128xbf16, #tpu.memory_space<vmem>>, vector<256x128xbf16>
    %c0_41 = arith.constant 0 : index
    %c0_42 = arith.constant 0 : index
    %21 = vector.load %arg22[%c0_41, %c0_42] : memref<128x256xbf16, #tpu.memory_space<vmem>>, vector<128x256xbf16>
    %c0_43 = arith.constant 0 : index
    %c0_44 = arith.constant 0 : index
    %22 = vector.load %arg23[%c0_43, %c0_44] : memref<1x256xf32, #tpu.memory_space<vmem>>, vector<1x256xf32>
    %c0_45 = arith.constant 0 : index
    %c0_46 = arith.constant 0 : index
    %23 = vector.load %arg24[%c0_45, %c0_46] : memref<1x128xf32, #tpu.memory_space<vmem>>, vector<1x128xf32>
    %c0_47 = arith.constant 0 : index
    %c0_48 = arith.constant 0 : index
    %24 = vector.load %arg25[%c0_47, %c0_48] : memref<1x128xf32, #tpu.memory_space<vmem>>, vector<1x128xf32>
    %c0_49 = arith.constant 0 : index
    %c0_50 = arith.constant 0 : index
    %25 = vector.load %arg26[%c0_49, %c0_50] : memref<1x384xf32, #tpu.memory_space<vmem>>, vector<1x384xf32>
    %c0_51 = arith.constant 0 : index
    %c0_52 = arith.constant 0 : index
    %26 = vector.load %arg27[%c0_51, %c0_52] : memref<1x128xf32, #tpu.memory_space<vmem>>, vector<1x128xf32>
    %c0_53 = arith.constant 0 : index
    %c0_54 = arith.constant 0 : index
    %27 = vector.load %arg28[%c0_53, %c0_54] : memref<1x128xf32, #tpu.memory_space<vmem>>, vector<1x128xf32>
    %c0_55 = arith.constant 0 : index
    %c0_56 = arith.constant 0 : index
    %28 = vector.load %arg29[%c0_55, %c0_56] : memref<1x128xf32, #tpu.memory_space<vmem>>, vector<1x128xf32>
    %c0_57 = arith.constant 0 : index
    %c0_58 = arith.constant 0 : index
    %29 = vector.load %arg30[%c0_57, %c0_58] : memref<1x128xf32, #tpu.memory_space<vmem>>, vector<1x128xf32>
    %c0_59 = arith.constant 0 : index
    %c0_60 = arith.constant 0 : index
    %30 = vector.load %arg31[%c0_59, %c0_60] : memref<128x256xbf16, #tpu.memory_space<vmem>>, vector<128x256xbf16>
    %c0_61 = arith.constant 0 : index
    %c0_62 = arith.constant 0 : index
    %31 = vector.load %arg32[%c0_61, %c0_62] : memref<256x128xbf16, #tpu.memory_space<vmem>>, vector<256x128xbf16>
    %c0_63 = arith.constant 0 : index
    %c0_64 = arith.constant 0 : index
    %32 = vector.load %arg33[%c0_63, %c0_64] : memref<128x128xbf16, #tpu.memory_space<vmem>>, vector<128x128xbf16>
    %c0_65 = arith.constant 0 : index
    %c0_66 = arith.constant 0 : index
    %33 = vector.load %arg34[%c0_65, %c0_66] : memref<128x384xbf16, #tpu.memory_space<vmem>>, vector<128x384xbf16>
    %c0_67 = arith.constant 0 : index
    %c0_68 = arith.constant 0 : index
    %34 = vector.load %arg35[%c0_67, %c0_68] : memref<8x128xf32, #tpu.memory_space<vmem>>, vector<8x128xf32>
    %35 = tpu.iota {dimensions = array<i32: 1>} : vector<8x256xi32>
    %c0_69 = arith.constant 0 : index
    %c0_70 = arith.constant 0 : index
    %36 = vector.load %arg0[%c0_69, %c0_70] : memref<8x1xi32, #tpu.memory_space<vmem>>, vector<8x1xi32>
    %37 = vector.broadcast %36 : vector<8x1xi32> to vector<8x256xi32>
    %38 = arith.cmpi eq, %35, %37 : vector<8x256xi32>
    %39 = arith.extui %38 : vector<8x256xi1> to vector<8x256xi32>
    %40 = arith.sitofp %39 : vector<8x256xi32> to vector<8x256xf32>
    %41 = arith.truncf %40 : vector<8x256xf32> to vector<8x256xbf16>
    %cst = arith.constant dense<0.000000e+00> : vector<8x128xf32>
    %42 = tpu.matmul %41, %20, %cst {dimension_numbers = #tpu.dot_dimension_numbers<[1], [0], [0], [1], [0, 0, 1, 1], [], []>} : vector<8x256xbf16>, vector<256x128xbf16>, vector<8x128xf32> -> vector<8x128xf32>
    %cst_71 = arith.constant 11.3137083 : f32
    %43 = vector.broadcast %cst_71 : f32 to vector<8x128xf32>
    %44 = arith.mulf %42, %43 : vector<8x128xf32>
    %45 = arith.addf %44, %34 : vector<8x128xf32>
    %46 = arith.truncf %45 : vector<8x128xf32> to vector<8x128xbf16>
    %cst_72 = arith.constant dense<0.000000e+00> : vector<8x384xf32>
    %47 = tpu.matmul %46, %33, %cst_72 {dimension_numbers = #tpu.dot_dimension_numbers<[1], [0], [0], [1], [0, 0, 1, 1], [], []>} : vector<8x128xbf16>, vector<128x384xbf16>, vector<8x384xf32> -> vector<8x384xf32>
    %48 = vector.broadcast %25 : vector<1x384xf32> to vector<8x384xf32>
    %49 = arith.addf %47, %48 : vector<8x384xf32>
    %50 = vector.extract_strided_slice %49 {offsets = [0, 0], sizes = [8, 128], strides = [1, 1]} : vector<8x384xf32> to vector<8x128xf32>
    %51 = vector.extract_strided_slice %49 {offsets = [0, 128], sizes = [8, 128], strides = [1, 1]} : vector<8x384xf32> to vector<8x128xf32>
    %52 = vector.extract_strided_slice %49 {offsets = [0, 256], sizes = [8, 128], strides = [1, 1]} : vector<8x384xf32> to vector<8x128xf32>
    %53 = vector.extract_strided_slice %50 {offsets = [0, 0], sizes = [8, 32], strides = [1, 1]} : vector<8x128xf32> to vector<8x32xf32>
    %cst_73 = arith.constant 0.176776692 : f32
    %54 = vector.broadcast %cst_73 : f32 to vector<8x32xf32>
    %55 = arith.mulf %53, %54 : vector<8x32xf32>
    %56 = arith.truncf %55 : vector<8x32xf32> to vector<8x32xbf16>
    %57 = vector.extract_strided_slice %51 {offsets = [0, 0], sizes = [8, 32], strides = [1, 1]} : vector<8x128xf32> to vector<8x32xf32>
    %58 = arith.truncf %57 : vector<8x32xf32> to vector<8x32xbf16>
    %59 = vector.extract_strided_slice %52 {offsets = [0, 0], sizes = [8, 32], strides = [1, 1]} : vector<8x128xf32> to vector<8x32xf32>
    %60 = arith.truncf %59 : vector<8x32xf32> to vector<8x32xbf16>
    %cst_74 = arith.constant dense<0.000000e+00> : vector<8x8xf32>
    %61 = tpu.matmul %56, %58, %cst_74 {dimension_numbers = #tpu.dot_dimension_numbers<[1], [1], [0], [0], [0, 0, 1, 0], [], []>} : vector<8x32xbf16>, vector<8x32xbf16>, vector<8x8xf32> -> vector<8x8xf32>
    %cst_75 = arith.constant dense<0xFF800000> : vector<8xf32>
    %62 = vector.multi_reduction <maximumf>, %61, %cst_75 [1] : vector<8x8xf32> to vector<8xf32>
    %63 = vector.shape_cast %62 : vector<8xf32> to vector<8x1xf32>
    %64 = vector.broadcast %63 : vector<8x1xf32> to vector<8x8xf32>
    %65 = arith.subf %61, %64 : vector<8x8xf32>
    %66 = math.exp %65 : vector<8x8xf32>
    %cst_76 = arith.constant dense<0.000000e+00> : vector<8xf32>
    %67 = vector.multi_reduction <add>, %66, %cst_76 [1] : vector<8x8xf32> to vector<8xf32>
    %68 = vector.shape_cast %67 : vector<8xf32> to vector<8x1xf32>
    %69 = tpu.reciprocal %68 {approx = true} : vector<8x1xf32> -> vector<8x1xf32>
    %70 = vector.broadcast %69 : vector<8x1xf32> to vector<8x8xf32>
    %71 = arith.mulf %66, %70 : vector<8x8xf32>
    %72 = arith.truncf %71 : vector<8x8xf32> to vector<8x8xbf16>
    %cst_77 = arith.constant dense<0.000000e+00> : vector<8x32xf32>
    %73 = tpu.matmul %72, %60, %cst_77 {dimension_numbers = #tpu.dot_dimension_numbers<[1], [0], [0], [1], [0, 0, 1, 1], [], []>} : vector<8x8xbf16>, vector<8x32xbf16>, vector<8x32xf32> -> vector<8x32xf32>
    %74 = vector.extract_strided_slice %50 {offsets = [0, 32], sizes = [8, 32], strides = [1, 1]} : vector<8x128xf32> to vector<8x32xf32>
    %cst_78 = arith.constant 0.176776692 : f32
    %75 = vector.broadcast %cst_78 : f32 to vector<8x32xf32>
    %76 = arith.mulf %74, %75 : vector<8x32xf32>
    %77 = arith.truncf %76 : vector<8x32xf32> to vector<8x32xbf16>
    %78 = vector.extract_strided_slice %51 {offsets = [0, 32], sizes = [8, 32], strides = [1, 1]} : vector<8x128xf32> to vector<8x32xf32>
    %79 = arith.truncf %78 : vector<8x32xf32> to vector<8x32xbf16>
    %80 = vector.extract_strided_slice %52 {offsets = [0, 32], sizes = [8, 32], strides = [1, 1]} : vector<8x128xf32> to vector<8x32xf32>
    %81 = arith.truncf %80 : vector<8x32xf32> to vector<8x32xbf16>
    %cst_79 = arith.constant dense<0.000000e+00> : vector<8x8xf32>
    %82 = tpu.matmul %77, %79, %cst_79 {dimension_numbers = #tpu.dot_dimension_numbers<[1], [1], [0], [0], [0, 0, 1, 0], [], []>} : vector<8x32xbf16>, vector<8x32xbf16>, vector<8x8xf32> -> vector<8x8xf32>
    %cst_80 = arith.constant dense<0xFF800000> : vector<8xf32>
    %83 = vector.multi_reduction <maximumf>, %82, %cst_80 [1] : vector<8x8xf32> to vector<8xf32>
    %84 = vector.shape_cast %83 : vector<8xf32> to vector<8x1xf32>
    %85 = vector.broadcast %84 : vector<8x1xf32> to vector<8x8xf32>
    %86 = arith.subf %82, %85 : vector<8x8xf32>
    %87 = math.exp %86 : vector<8x8xf32>
    %cst_81 = arith.constant dense<0.000000e+00> : vector<8xf32>
    %88 = vector.multi_reduction <add>, %87, %cst_81 [1] : vector<8x8xf32> to vector<8xf32>
    %89 = vector.shape_cast %88 : vector<8xf32> to vector<8x1xf32>
    %90 = tpu.reciprocal %89 {approx = true} : vector<8x1xf32> -> vector<8x1xf32>
    %91 = vector.broadcast %90 : vector<8x1xf32> to vector<8x8xf32>
    %92 = arith.mulf %87, %91 : vector<8x8xf32>
    %93 = arith.truncf %92 : vector<8x8xf32> to vector<8x8xbf16>
    %cst_82 = arith.constant dense<0.000000e+00> : vector<8x32xf32>
    %94 = tpu.matmul %93, %81, %cst_82 {dimension_numbers = #tpu.dot_dimension_numbers<[1], [0], [0], [1], [0, 0, 1, 1], [], []>} : vector<8x8xbf16>, vector<8x32xbf16>, vector<8x32xf32> -> vector<8x32xf32>
    %95 = vector.extract_strided_slice %50 {offsets = [0, 64], sizes = [8, 32], strides = [1, 1]} : vector<8x128xf32> to vector<8x32xf32>
    %cst_83 = arith.constant 0.176776692 : f32
    %96 = vector.broadcast %cst_83 : f32 to vector<8x32xf32>
    %97 = arith.mulf %95, %96 : vector<8x32xf32>
    %98 = arith.truncf %97 : vector<8x32xf32> to vector<8x32xbf16>
    %99 = vector.extract_strided_slice %51 {offsets = [0, 64], sizes = [8, 32], strides = [1, 1]} : vector<8x128xf32> to vector<8x32xf32>
    %100 = arith.truncf %99 : vector<8x32xf32> to vector<8x32xbf16>
    %101 = vector.extract_strided_slice %52 {offsets = [0, 64], sizes = [8, 32], strides = [1, 1]} : vector<8x128xf32> to vector<8x32xf32>
    %102 = arith.truncf %101 : vector<8x32xf32> to vector<8x32xbf16>
    %cst_84 = arith.constant dense<0.000000e+00> : vector<8x8xf32>
    %103 = tpu.matmul %98, %100, %cst_84 {dimension_numbers = #tpu.dot_dimension_numbers<[1], [1], [0], [0], [0, 0, 1, 0], [], []>} : vector<8x32xbf16>, vector<8x32xbf16>, vector<8x8xf32> -> vector<8x8xf32>
    %cst_85 = arith.constant dense<0xFF800000> : vector<8xf32>
    %104 = vector.multi_reduction <maximumf>, %103, %cst_85 [1] : vector<8x8xf32> to vector<8xf32>
    %105 = vector.shape_cast %104 : vector<8xf32> to vector<8x1xf32>
    %106 = vector.broadcast %105 : vector<8x1xf32> to vector<8x8xf32>
    %107 = arith.subf %103, %106 : vector<8x8xf32>
    %108 = math.exp %107 : vector<8x8xf32>
    %cst_86 = arith.constant dense<0.000000e+00> : vector<8xf32>
    %109 = vector.multi_reduction <add>, %108, %cst_86 [1] : vector<8x8xf32> to vector<8xf32>
    %110 = vector.shape_cast %109 : vector<8xf32> to vector<8x1xf32>
    %111 = tpu.reciprocal %110 {approx = true} : vector<8x1xf32> -> vector<8x1xf32>
    %112 = vector.broadcast %111 : vector<8x1xf32> to vector<8x8xf32>
    %113 = arith.mulf %108, %112 : vector<8x8xf32>
    %114 = arith.truncf %113 : vector<8x8xf32> to vector<8x8xbf16>
    %cst_87 = arith.constant dense<0.000000e+00> : vector<8x32xf32>
    %115 = tpu.matmul %114, %102, %cst_87 {dimension_numbers = #tpu.dot_dimension_numbers<[1], [0], [0], [1], [0, 0, 1, 1], [], []>} : vector<8x8xbf16>, vector<8x32xbf16>, vector<8x32xf32> -> vector<8x32xf32>
    %116 = vector.extract_strided_slice %50 {offsets = [0, 96], sizes = [8, 32], strides = [1, 1]} : vector<8x128xf32> to vector<8x32xf32>
    %cst_88 = arith.constant 0.176776692 : f32
    %117 = vector.broadcast %cst_88 : f32 to vector<8x32xf32>
    %118 = arith.mulf %116, %117 : vector<8x32xf32>
    %119 = arith.truncf %118 : vector<8x32xf32> to vector<8x32xbf16>
    %120 = vector.extract_strided_slice %51 {offsets = [0, 96], sizes = [8, 32], strides = [1, 1]} : vector<8x128xf32> to vector<8x32xf32>
    %121 = arith.truncf %120 : vector<8x32xf32> to vector<8x32xbf16>
    %122 = vector.extract_strided_slice %52 {offsets = [0, 96], sizes = [8, 32], strides = [1, 1]} : vector<8x128xf32> to vector<8x32xf32>
    %123 = arith.truncf %122 : vector<8x32xf32> to vector<8x32xbf16>
    %cst_89 = arith.constant dense<0.000000e+00> : vector<8x8xf32>
    %124 = tpu.matmul %119, %121, %cst_89 {dimension_numbers = #tpu.dot_dimension_numbers<[1], [1], [0], [0], [0, 0, 1, 0], [], []>} : vector<8x32xbf16>, vector<8x32xbf16>, vector<8x8xf32> -> vector<8x8xf32>
    %cst_90 = arith.constant dense<0xFF800000> : vector<8xf32>
    %125 = vector.multi_reduction <maximumf>, %124, %cst_90 [1] : vector<8x8xf32> to vector<8xf32>
    %126 = vector.shape_cast %125 : vector<8xf32> to vector<8x1xf32>
    %127 = vector.broadcast %126 : vector<8x1xf32> to vector<8x8xf32>
    %128 = arith.subf %124, %127 : vector<8x8xf32>
    %129 = math.exp %128 : vector<8x8xf32>
    %cst_91 = arith.constant dense<0.000000e+00> : vector<8xf32>
    %130 = vector.multi_reduction <add>, %129, %cst_91 [1] : vector<8x8xf32> to vector<8xf32>
    %131 = vector.shape_cast %130 : vector<8xf32> to vector<8x1xf32>
    %132 = tpu.reciprocal %131 {approx = true} : vector<8x1xf32> -> vector<8x1xf32>
    %133 = vector.broadcast %132 : vector<8x1xf32> to vector<8x8xf32>
    %134 = arith.mulf %129, %133 : vector<8x8xf32>
    %135 = arith.truncf %134 : vector<8x8xf32> to vector<8x8xbf16>
    %cst_92 = arith.constant dense<0.000000e+00> : vector<8x32xf32>
    %136 = tpu.matmul %135, %123, %cst_92 {dimension_numbers = #tpu.dot_dimension_numbers<[1], [0], [0], [1], [0, 0, 1, 1], [], []>} : vector<8x8xbf16>, vector<8x32xbf16>, vector<8x32xf32> -> vector<8x32xf32>
    %137 = tpu.concatenate %73, %94, %115, %136 in 1 : vector<8x32xf32>, vector<8x32xf32>, vector<8x32xf32>, vector<8x32xf32> -> vector<8x128xf32>
    %138 = arith.truncf %137 : vector<8x128xf32> to vector<8x128xbf16>
    %cst_93 = arith.constant dense<0.000000e+00> : vector<8x128xf32>
    %139 = tpu.matmul %138, %32, %cst_93 {dimension_numbers = #tpu.dot_dimension_numbers<[1], [0], [0], [1], [0, 0, 1, 1], [], []>} : vector<8x128xbf16>, vector<128x128xbf16>, vector<8x128xf32> -> vector<8x128xf32>
    %140 = vector.broadcast %24 : vector<1x128xf32> to vector<8x128xf32>
    %141 = arith.addf %139, %140 : vector<8x128xf32>
    %142 = arith.addf %45, %141 : vector<8x128xf32>
    %cst_94 = arith.constant dense<0.000000e+00> : vector<8xf32>
    %143 = vector.multi_reduction <add>, %142, %cst_94 [1] : vector<8x128xf32> to vector<8xf32>
    %144 = vector.shape_cast %143 : vector<8xf32> to vector<8x1xf32>
    %cst_95 = arith.constant 1.280000e+02 : f32
    %145 = vector.broadcast %cst_95 : f32 to vector<8x1xf32>
    %146 = arith.divf %144, %145 : vector<8x1xf32>
    %147 = vector.broadcast %146 : vector<8x1xf32> to vector<8x128xf32>
    %148 = arith.subf %142, %147 : vector<8x128xf32>
    %149 = arith.mulf %148, %148 : vector<8x128xf32>
    %cst_96 = arith.constant dense<0.000000e+00> : vector<8xf32>
    %150 = vector.multi_reduction <add>, %149, %cst_96 [1] : vector<8x128xf32> to vector<8xf32>
    %151 = vector.shape_cast %150 : vector<8xf32> to vector<8x1xf32>
    %cst_97 = arith.constant 1.280000e+02 : f32
    %152 = vector.broadcast %cst_97 : f32 to vector<8x1xf32>
    %153 = arith.divf %151, %152 : vector<8x1xf32>
    %cst_98 = arith.constant 9.99999974E-6 : f32
    %154 = vector.broadcast %cst_98 : f32 to vector<8x1xf32>
    %155 = arith.addf %153, %154 : vector<8x1xf32>
    %156 = math.rsqrt %155 : vector<8x1xf32>
    %157 = vector.broadcast %156 : vector<8x1xf32> to vector<8x128xf32>
    %158 = arith.mulf %148, %157 : vector<8x128xf32>
    %159 = vector.broadcast %27 : vector<1x128xf32> to vector<8x128xf32>
    %160 = arith.mulf %158, %159 : vector<8x128xf32>
    %161 = vector.broadcast %26 : vector<1x128xf32> to vector<8x128xf32>
    %162 = arith.addf %160, %161 : vector<8x128xf32>
    %163 = arith.truncf %162 : vector<8x128xf32> to vector<8x128xbf16>
    %cst_99 = arith.constant dense<0.000000e+00> : vector<8x256xf32>
    %164 = tpu.matmul %163, %30, %cst_99 {dimension_numbers = #tpu.dot_dimension_numbers<[1], [0], [0], [1], [0, 0, 1, 1], [], []>} : vector<8x128xbf16>, vector<128x256xbf16>, vector<8x256xf32> -> vector<8x256xf32>
    %165 = vector.broadcast %22 : vector<1x256xf32> to vector<8x256xf32>
    %166 = arith.addf %164, %165 : vector<8x256xf32>
    %167 = arith.mulf %166, %166 : vector<8x256xf32>
    %168 = arith.mulf %166, %167 : vector<8x256xf32>
    %cst_100 = arith.constant 4.471500e-02 : f32
    %169 = vector.broadcast %cst_100 : f32 to vector<8x256xf32>
    %170 = arith.mulf %169, %168 : vector<8x256xf32>
    %171 = arith.addf %166, %170 : vector<8x256xf32>
    %cst_101 = arith.constant 0.797884583 : f32
    %172 = vector.broadcast %cst_101 : f32 to vector<8x256xf32>
    %173 = arith.mulf %172, %171 : vector<8x256xf32>
    %174 = math.tanh %173 : vector<8x256xf32>
    %cst_102 = arith.constant 1.000000e+00 : f32
    %175 = vector.broadcast %cst_102 : f32 to vector<8x256xf32>
    %176 = arith.addf %175, %174 : vector<8x256xf32>
    %cst_103 = arith.constant 5.000000e-01 : f32
    %177 = vector.broadcast %cst_103 : f32 to vector<8x256xf32>
    %178 = arith.mulf %177, %176 : vector<8x256xf32>
    %179 = arith.mulf %166, %178 : vector<8x256xf32>
    %180 = arith.truncf %179 : vector<8x256xf32> to vector<8x256xbf16>
    %cst_104 = arith.constant dense<0.000000e+00> : vector<8x128xf32>
    %181 = tpu.matmul %180, %31, %cst_104 {dimension_numbers = #tpu.dot_dimension_numbers<[1], [0], [0], [1], [0, 0, 1, 1], [], []>} : vector<8x256xbf16>, vector<256x128xbf16>, vector<8x128xf32> -> vector<8x128xf32>
    %182 = vector.broadcast %23 : vector<1x128xf32> to vector<8x128xf32>
    %183 = arith.addf %181, %182 : vector<8x128xf32>
    %184 = arith.addf %162, %183 : vector<8x128xf32>
    %cst_105 = arith.constant dense<0.000000e+00> : vector<8xf32>
    %185 = vector.multi_reduction <add>, %184, %cst_105 [1] : vector<8x128xf32> to vector<8xf32>
    %186 = vector.shape_cast %185 : vector<8xf32> to vector<8x1xf32>
    %cst_106 = arith.constant 1.280000e+02 : f32
    %187 = vector.broadcast %cst_106 : f32 to vector<8x1xf32>
    %188 = arith.divf %186, %187 : vector<8x1xf32>
    %189 = vector.broadcast %188 : vector<8x1xf32> to vector<8x128xf32>
    %190 = arith.subf %184, %189 : vector<8x128xf32>
    %191 = arith.mulf %190, %190 : vector<8x128xf32>
    %cst_107 = arith.constant dense<0.000000e+00> : vector<8xf32>
    %192 = vector.multi_reduction <add>, %191, %cst_107 [1] : vector<8x128xf32> to vector<8xf32>
    %193 = vector.shape_cast %192 : vector<8xf32> to vector<8x1xf32>
    %cst_108 = arith.constant 1.280000e+02 : f32
    %194 = vector.broadcast %cst_108 : f32 to vector<8x1xf32>
    %195 = arith.divf %193, %194 : vector<8x1xf32>
    %cst_109 = arith.constant 9.99999974E-6 : f32
    %196 = vector.broadcast %cst_109 : f32 to vector<8x1xf32>
    %197 = arith.addf %195, %196 : vector<8x1xf32>
    %198 = math.rsqrt %197 : vector<8x1xf32>
    %199 = vector.broadcast %198 : vector<8x1xf32> to vector<8x128xf32>
    %200 = arith.mulf %190, %199 : vector<8x128xf32>
    %201 = vector.broadcast %29 : vector<1x128xf32> to vector<8x128xf32>
    %202 = arith.mulf %200, %201 : vector<8x128xf32>
    %203 = vector.broadcast %28 : vector<1x128xf32> to vector<8x128xf32>
    %204 = arith.addf %202, %203 : vector<8x128xf32>
    %c0_i32 = arith.constant 0 : i32
    %205 = vector.broadcast %c0_i32 : i32 to vector<8x256xi32>
    %206 = arith.cmpi eq, %35, %205 : vector<8x256xi32>
    %207 = arith.extui %206 : vector<8x256xi1> to vector<8x256xi32>
    %208 = arith.sitofp %207 : vector<8x256xi32> to vector<8x256xf32>
    %209 = arith.truncf %208 : vector<8x256xf32> to vector<8x256xbf16>
    %cst_110 = arith.constant dense<0.000000e+00> : vector<8x128xf32>
    %210 = tpu.matmul %209, %20, %cst_110 {dimension_numbers = #tpu.dot_dimension_numbers<[1], [0], [0], [1], [0, 0, 1, 1], [], []>} : vector<8x256xbf16>, vector<256x128xbf16>, vector<8x128xf32> -> vector<8x128xf32>
    %cst_111 = arith.constant 11.3137083 : f32
    %211 = vector.broadcast %cst_111 : f32 to vector<8x128xf32>
    %212 = arith.mulf %210, %211 : vector<8x128xf32>
    %213 = arith.addf %212, %34 : vector<8x128xf32>
    %214 = tpu.iota {dimensions = array<i32: 0>} : vector<8x8xi32>
    %215 = tpu.iota {dimensions = array<i32: 1>} : vector<8x8xi32>
    %216 = arith.cmpi sge, %214, %215 : vector<8x8xi32>
    %cst_112 = arith.constant 0.000000e+00 : f32
    %cst_113 = arith.constant -1.000000e+09 : f32
    %217 = vector.broadcast %cst_112 : f32 to vector<8x8xf32>
    %218 = vector.broadcast %cst_113 : f32 to vector<8x8xf32>
    %219 = arith.select %216, %217, %218 : vector<8x8xi1>, vector<8x8xf32>
    %220 = arith.truncf %213 : vector<8x128xf32> to vector<8x128xbf16>
    %cst_114 = arith.constant dense<0.000000e+00> : vector<8x384xf32>
    %221 = tpu.matmul %220, %17, %cst_114 {dimension_numbers = #tpu.dot_dimension_numbers<[1], [0], [0], [1], [0, 0, 1, 1], [], []>} : vector<8x128xbf16>, vector<128x384xbf16>, vector<8x384xf32> -> vector<8x384xf32>
    %222 = vector.broadcast %15 : vector<1x384xf32> to vector<8x384xf32>
    %223 = arith.addf %221, %222 : vector<8x384xf32>
    %224 = vector.extract_strided_slice %223 {offsets = [0, 0], sizes = [8, 128], strides = [1, 1]} : vector<8x384xf32> to vector<8x128xf32>
    %225 = vector.extract_strided_slice %223 {offsets = [0, 128], sizes = [8, 128], strides = [1, 1]} : vector<8x384xf32> to vector<8x128xf32>
    %226 = vector.extract_strided_slice %223 {offsets = [0, 256], sizes = [8, 128], strides = [1, 1]} : vector<8x384xf32> to vector<8x128xf32>
    %227 = vector.extract_strided_slice %224 {offsets = [0, 0], sizes = [8, 32], strides = [1, 1]} : vector<8x128xf32> to vector<8x32xf32>
    %cst_115 = arith.constant 0.176776692 : f32
    %228 = vector.broadcast %cst_115 : f32 to vector<8x32xf32>
    %229 = arith.mulf %227, %228 : vector<8x32xf32>
    %230 = arith.truncf %229 : vector<8x32xf32> to vector<8x32xbf16>
    %231 = vector.extract_strided_slice %225 {offsets = [0, 0], sizes = [8, 32], strides = [1, 1]} : vector<8x128xf32> to vector<8x32xf32>
    %232 = arith.truncf %231 : vector<8x32xf32> to vector<8x32xbf16>
    %233 = vector.extract_strided_slice %226 {offsets = [0, 0], sizes = [8, 32], strides = [1, 1]} : vector<8x128xf32> to vector<8x32xf32>
    %234 = arith.truncf %233 : vector<8x32xf32> to vector<8x32xbf16>
    %cst_116 = arith.constant dense<0.000000e+00> : vector<8x8xf32>
    %235 = tpu.matmul %230, %232, %cst_116 {dimension_numbers = #tpu.dot_dimension_numbers<[1], [1], [0], [0], [0, 0, 1, 0], [], []>} : vector<8x32xbf16>, vector<8x32xbf16>, vector<8x8xf32> -> vector<8x8xf32>
    %236 = arith.addf %235, %219 : vector<8x8xf32>
    %cst_117 = arith.constant dense<0xFF800000> : vector<8xf32>
    %237 = vector.multi_reduction <maximumf>, %236, %cst_117 [1] : vector<8x8xf32> to vector<8xf32>
    %238 = vector.shape_cast %237 : vector<8xf32> to vector<8x1xf32>
    %239 = vector.broadcast %238 : vector<8x1xf32> to vector<8x8xf32>
    %240 = arith.subf %236, %239 : vector<8x8xf32>
    %241 = math.exp %240 : vector<8x8xf32>
    %cst_118 = arith.constant dense<0.000000e+00> : vector<8xf32>
    %242 = vector.multi_reduction <add>, %241, %cst_118 [1] : vector<8x8xf32> to vector<8xf32>
    %243 = vector.shape_cast %242 : vector<8xf32> to vector<8x1xf32>
    %244 = tpu.reciprocal %243 {approx = true} : vector<8x1xf32> -> vector<8x1xf32>
    %245 = vector.broadcast %244 : vector<8x1xf32> to vector<8x8xf32>
    %246 = arith.mulf %241, %245 : vector<8x8xf32>
    %247 = arith.truncf %246 : vector<8x8xf32> to vector<8x8xbf16>
    %cst_119 = arith.constant dense<0.000000e+00> : vector<8x32xf32>
    %248 = tpu.matmul %247, %234, %cst_119 {dimension_numbers = #tpu.dot_dimension_numbers<[1], [0], [0], [1], [0, 0, 1, 1], [], []>} : vector<8x8xbf16>, vector<8x32xbf16>, vector<8x32xf32> -> vector<8x32xf32>
    %249 = vector.extract_strided_slice %224 {offsets = [0, 32], sizes = [8, 32], strides = [1, 1]} : vector<8x128xf32> to vector<8x32xf32>
    %cst_120 = arith.constant 0.176776692 : f32
    %250 = vector.broadcast %cst_120 : f32 to vector<8x32xf32>
    %251 = arith.mulf %249, %250 : vector<8x32xf32>
    %252 = arith.truncf %251 : vector<8x32xf32> to vector<8x32xbf16>
    %253 = vector.extract_strided_slice %225 {offsets = [0, 32], sizes = [8, 32], strides = [1, 1]} : vector<8x128xf32> to vector<8x32xf32>
    %254 = arith.truncf %253 : vector<8x32xf32> to vector<8x32xbf16>
    %255 = vector.extract_strided_slice %226 {offsets = [0, 32], sizes = [8, 32], strides = [1, 1]} : vector<8x128xf32> to vector<8x32xf32>
    %256 = arith.truncf %255 : vector<8x32xf32> to vector<8x32xbf16>
    %cst_121 = arith.constant dense<0.000000e+00> : vector<8x8xf32>
    %257 = tpu.matmul %252, %254, %cst_121 {dimension_numbers = #tpu.dot_dimension_numbers<[1], [1], [0], [0], [0, 0, 1, 0], [], []>} : vector<8x32xbf16>, vector<8x32xbf16>, vector<8x8xf32> -> vector<8x8xf32>
    %258 = arith.addf %257, %219 : vector<8x8xf32>
    %cst_122 = arith.constant dense<0xFF800000> : vector<8xf32>
    %259 = vector.multi_reduction <maximumf>, %258, %cst_122 [1] : vector<8x8xf32> to vector<8xf32>
    %260 = vector.shape_cast %259 : vector<8xf32> to vector<8x1xf32>
    %261 = vector.broadcast %260 : vector<8x1xf32> to vector<8x8xf32>
    %262 = arith.subf %258, %261 : vector<8x8xf32>
    %263 = math.exp %262 : vector<8x8xf32>
    %cst_123 = arith.constant dense<0.000000e+00> : vector<8xf32>
    %264 = vector.multi_reduction <add>, %263, %cst_123 [1] : vector<8x8xf32> to vector<8xf32>
    %265 = vector.shape_cast %264 : vector<8xf32> to vector<8x1xf32>
    %266 = tpu.reciprocal %265 {approx = true} : vector<8x1xf32> -> vector<8x1xf32>
    %267 = vector.broadcast %266 : vector<8x1xf32> to vector<8x8xf32>
    %268 = arith.mulf %263, %267 : vector<8x8xf32>
    %269 = arith.truncf %268 : vector<8x8xf32> to vector<8x8xbf16>
    %cst_124 = arith.constant dense<0.000000e+00> : vector<8x32xf32>
    %270 = tpu.matmul %269, %256, %cst_124 {dimension_numbers = #tpu.dot_dimension_numbers<[1], [0], [0], [1], [0, 0, 1, 1], [], []>} : vector<8x8xbf16>, vector<8x32xbf16>, vector<8x32xf32> -> vector<8x32xf32>
    %271 = vector.extract_strided_slice %224 {offsets = [0, 64], sizes = [8, 32], strides = [1, 1]} : vector<8x128xf32> to vector<8x32xf32>
    %cst_125 = arith.constant 0.176776692 : f32
    %272 = vector.broadcast %cst_125 : f32 to vector<8x32xf32>
    %273 = arith.mulf %271, %272 : vector<8x32xf32>
    %274 = arith.truncf %273 : vector<8x32xf32> to vector<8x32xbf16>
    %275 = vector.extract_strided_slice %225 {offsets = [0, 64], sizes = [8, 32], strides = [1, 1]} : vector<8x128xf32> to vector<8x32xf32>
    %276 = arith.truncf %275 : vector<8x32xf32> to vector<8x32xbf16>
    %277 = vector.extract_strided_slice %226 {offsets = [0, 64], sizes = [8, 32], strides = [1, 1]} : vector<8x128xf32> to vector<8x32xf32>
    %278 = arith.truncf %277 : vector<8x32xf32> to vector<8x32xbf16>
    %cst_126 = arith.constant dense<0.000000e+00> : vector<8x8xf32>
    %279 = tpu.matmul %274, %276, %cst_126 {dimension_numbers = #tpu.dot_dimension_numbers<[1], [1], [0], [0], [0, 0, 1, 0], [], []>} : vector<8x32xbf16>, vector<8x32xbf16>, vector<8x8xf32> -> vector<8x8xf32>
    %280 = arith.addf %279, %219 : vector<8x8xf32>
    %cst_127 = arith.constant dense<0xFF800000> : vector<8xf32>
    %281 = vector.multi_reduction <maximumf>, %280, %cst_127 [1] : vector<8x8xf32> to vector<8xf32>
    %282 = vector.shape_cast %281 : vector<8xf32> to vector<8x1xf32>
    %283 = vector.broadcast %282 : vector<8x1xf32> to vector<8x8xf32>
    %284 = arith.subf %280, %283 : vector<8x8xf32>
    %285 = math.exp %284 : vector<8x8xf32>
    %cst_128 = arith.constant dense<0.000000e+00> : vector<8xf32>
    %286 = vector.multi_reduction <add>, %285, %cst_128 [1] : vector<8x8xf32> to vector<8xf32>
    %287 = vector.shape_cast %286 : vector<8xf32> to vector<8x1xf32>
    %288 = tpu.reciprocal %287 {approx = true} : vector<8x1xf32> -> vector<8x1xf32>
    %289 = vector.broadcast %288 : vector<8x1xf32> to vector<8x8xf32>
    %290 = arith.mulf %285, %289 : vector<8x8xf32>
    %291 = arith.truncf %290 : vector<8x8xf32> to vector<8x8xbf16>
    %cst_129 = arith.constant dense<0.000000e+00> : vector<8x32xf32>
    %292 = tpu.matmul %291, %278, %cst_129 {dimension_numbers = #tpu.dot_dimension_numbers<[1], [0], [0], [1], [0, 0, 1, 1], [], []>} : vector<8x8xbf16>, vector<8x32xbf16>, vector<8x32xf32> -> vector<8x32xf32>
    %293 = vector.extract_strided_slice %224 {offsets = [0, 96], sizes = [8, 32], strides = [1, 1]} : vector<8x128xf32> to vector<8x32xf32>
    %cst_130 = arith.constant 0.176776692 : f32
    %294 = vector.broadcast %cst_130 : f32 to vector<8x32xf32>
    %295 = arith.mulf %293, %294 : vector<8x32xf32>
    %296 = arith.truncf %295 : vector<8x32xf32> to vector<8x32xbf16>
    %297 = vector.extract_strided_slice %225 {offsets = [0, 96], sizes = [8, 32], strides = [1, 1]} : vector<8x128xf32> to vector<8x32xf32>
    %298 = arith.truncf %297 : vector<8x32xf32> to vector<8x32xbf16>
    %299 = vector.extract_strided_slice %226 {offsets = [0, 96], sizes = [8, 32], strides = [1, 1]} : vector<8x128xf32> to vector<8x32xf32>
    %300 = arith.truncf %299 : vector<8x32xf32> to vector<8x32xbf16>
    %cst_131 = arith.constant dense<0.000000e+00> : vector<8x8xf32>
    %301 = tpu.matmul %296, %298, %cst_131 {dimension_numbers = #tpu.dot_dimension_numbers<[1], [1], [0], [0], [0, 0, 1, 0], [], []>} : vector<8x32xbf16>, vector<8x32xbf16>, vector<8x8xf32> -> vector<8x8xf32>
    %302 = arith.addf %301, %219 : vector<8x8xf32>
    %cst_132 = arith.constant dense<0xFF800000> : vector<8xf32>
    %303 = vector.multi_reduction <maximumf>, %302, %cst_132 [1] : vector<8x8xf32> to vector<8xf32>
    %304 = vector.shape_cast %303 : vector<8xf32> to vector<8x1xf32>
    %305 = vector.broadcast %304 : vector<8x1xf32> to vector<8x8xf32>
    %306 = arith.subf %302, %305 : vector<8x8xf32>
    %307 = math.exp %306 : vector<8x8xf32>
    %cst_133 = arith.constant dense<0.000000e+00> : vector<8xf32>
    %308 = vector.multi_reduction <add>, %307, %cst_133 [1] : vector<8x8xf32> to vector<8xf32>
    %309 = vector.shape_cast %308 : vector<8xf32> to vector<8x1xf32>
    %310 = tpu.reciprocal %309 {approx = true} : vector<8x1xf32> -> vector<8x1xf32>
    %311 = vector.broadcast %310 : vector<8x1xf32> to vector<8x8xf32>
    %312 = arith.mulf %307, %311 : vector<8x8xf32>
    %313 = arith.truncf %312 : vector<8x8xf32> to vector<8x8xbf16>
    %cst_134 = arith.constant dense<0.000000e+00> : vector<8x32xf32>
    %314 = tpu.matmul %313, %300, %cst_134 {dimension_numbers = #tpu.dot_dimension_numbers<[1], [0], [0], [1], [0, 0, 1, 1], [], []>} : vector<8x8xbf16>, vector<8x32xbf16>, vector<8x32xf32> -> vector<8x32xf32>
    %315 = tpu.concatenate %248, %270, %292, %314 in 1 : vector<8x32xf32>, vector<8x32xf32>, vector<8x32xf32>, vector<8x32xf32> -> vector<8x128xf32>
    %316 = arith.truncf %315 : vector<8x128xf32> to vector<8x128xbf16>
    %cst_135 = arith.constant dense<0.000000e+00> : vector<8x128xf32>
    %317 = tpu.matmul %316, %16, %cst_135 {dimension_numbers = #tpu.dot_dimension_numbers<[1], [0], [0], [1], [0, 0, 1, 1], [], []>} : vector<8x128xbf16>, vector<128x128xbf16>, vector<8x128xf32> -> vector<8x128xf32>
    %318 = vector.broadcast %14 : vector<1x128xf32> to vector<8x128xf32>
    %319 = arith.addf %317, %318 : vector<8x128xf32>
    %320 = arith.addf %213, %319 : vector<8x128xf32>
    %cst_136 = arith.constant dense<0.000000e+00> : vector<8xf32>
    %321 = vector.multi_reduction <add>, %320, %cst_136 [1] : vector<8x128xf32> to vector<8xf32>
    %322 = vector.shape_cast %321 : vector<8xf32> to vector<8x1xf32>
    %cst_137 = arith.constant 1.280000e+02 : f32
    %323 = vector.broadcast %cst_137 : f32 to vector<8x1xf32>
    %324 = arith.divf %322, %323 : vector<8x1xf32>
    %325 = vector.broadcast %324 : vector<8x1xf32> to vector<8x128xf32>
    %326 = arith.subf %320, %325 : vector<8x128xf32>
    %327 = arith.mulf %326, %326 : vector<8x128xf32>
    %cst_138 = arith.constant dense<0.000000e+00> : vector<8xf32>
    %328 = vector.multi_reduction <add>, %327, %cst_138 [1] : vector<8x128xf32> to vector<8xf32>
    %329 = vector.shape_cast %328 : vector<8xf32> to vector<8x1xf32>
    %cst_139 = arith.constant 1.280000e+02 : f32
    %330 = vector.broadcast %cst_139 : f32 to vector<8x1xf32>
    %331 = arith.divf %329, %330 : vector<8x1xf32>
    %cst_140 = arith.constant 9.99999974E-6 : f32
    %332 = vector.broadcast %cst_140 : f32 to vector<8x1xf32>
    %333 = arith.addf %331, %332 : vector<8x1xf32>
    %334 = math.rsqrt %333 : vector<8x1xf32>
    %335 = vector.broadcast %334 : vector<8x1xf32> to vector<8x128xf32>
    %336 = arith.mulf %326, %335 : vector<8x128xf32>
    %337 = vector.broadcast %9 : vector<1x128xf32> to vector<8x128xf32>
    %338 = arith.mulf %336, %337 : vector<8x128xf32>
    %339 = vector.broadcast %8 : vector<1x128xf32> to vector<8x128xf32>
    %340 = arith.addf %338, %339 : vector<8x128xf32>
    %341 = arith.truncf %340 : vector<8x128xf32> to vector<8x128xbf16>
    %cst_141 = arith.constant dense<0.000000e+00> : vector<8x128xf32>
    %342 = tpu.matmul %341, %7, %cst_141 {dimension_numbers = #tpu.dot_dimension_numbers<[1], [0], [0], [1], [0, 0, 1, 1], [], []>} : vector<8x128xbf16>, vector<128x128xbf16>, vector<8x128xf32> -> vector<8x128xf32>
    %343 = vector.broadcast %4 : vector<1x128xf32> to vector<8x128xf32>
    %344 = arith.addf %342, %343 : vector<8x128xf32>
    %345 = arith.truncf %204 : vector<8x128xf32> to vector<8x128xbf16>
    %cst_142 = arith.constant dense<0.000000e+00> : vector<8x256xf32>
    %346 = tpu.matmul %345, %5, %cst_142 {dimension_numbers = #tpu.dot_dimension_numbers<[1], [0], [0], [1], [0, 0, 1, 1], [], []>} : vector<8x128xbf16>, vector<128x256xbf16>, vector<8x256xf32> -> vector<8x256xf32>
    %347 = vector.broadcast %2 : vector<1x256xf32> to vector<8x256xf32>
    %348 = arith.addf %346, %347 : vector<8x256xf32>
    %349 = vector.extract_strided_slice %348 {offsets = [0, 0], sizes = [8, 128], strides = [1, 1]} : vector<8x256xf32> to vector<8x128xf32>
    %350 = vector.extract_strided_slice %348 {offsets = [0, 128], sizes = [8, 128], strides = [1, 1]} : vector<8x256xf32> to vector<8x128xf32>
    %351 = vector.extract_strided_slice %344 {offsets = [0, 0], sizes = [8, 32], strides = [1, 1]} : vector<8x128xf32> to vector<8x32xf32>
    %cst_143 = arith.constant 0.176776692 : f32
    %352 = vector.broadcast %cst_143 : f32 to vector<8x32xf32>
    %353 = arith.mulf %351, %352 : vector<8x32xf32>
    %354 = arith.truncf %353 : vector<8x32xf32> to vector<8x32xbf16>
    %355 = vector.extract_strided_slice %349 {offsets = [0, 0], sizes = [8, 32], strides = [1, 1]} : vector<8x128xf32> to vector<8x32xf32>
    %356 = arith.truncf %355 : vector<8x32xf32> to vector<8x32xbf16>
    %357 = vector.extract_strided_slice %350 {offsets = [0, 0], sizes = [8, 32], strides = [1, 1]} : vector<8x128xf32> to vector<8x32xf32>
    %358 = arith.truncf %357 : vector<8x32xf32> to vector<8x32xbf16>
    %cst_144 = arith.constant dense<0.000000e+00> : vector<8x8xf32>
    %359 = tpu.matmul %354, %356, %cst_144 {dimension_numbers = #tpu.dot_dimension_numbers<[1], [1], [0], [0], [0, 0, 1, 0], [], []>} : vector<8x32xbf16>, vector<8x32xbf16>, vector<8x8xf32> -> vector<8x8xf32>
    %cst_145 = arith.constant dense<0xFF800000> : vector<8xf32>
    %360 = vector.multi_reduction <maximumf>, %359, %cst_145 [1] : vector<8x8xf32> to vector<8xf32>
    %361 = vector.shape_cast %360 : vector<8xf32> to vector<8x1xf32>
    %362 = vector.broadcast %361 : vector<8x1xf32> to vector<8x8xf32>
    %363 = arith.subf %359, %362 : vector<8x8xf32>
    %364 = math.exp %363 : vector<8x8xf32>
    %cst_146 = arith.constant dense<0.000000e+00> : vector<8xf32>
    %365 = vector.multi_reduction <add>, %364, %cst_146 [1] : vector<8x8xf32> to vector<8xf32>
    %366 = vector.shape_cast %365 : vector<8xf32> to vector<8x1xf32>
    %367 = tpu.reciprocal %366 {approx = true} : vector<8x1xf32> -> vector<8x1xf32>
    %368 = vector.broadcast %367 : vector<8x1xf32> to vector<8x8xf32>
    %369 = arith.mulf %364, %368 : vector<8x8xf32>
    %370 = arith.truncf %369 : vector<8x8xf32> to vector<8x8xbf16>
    %cst_147 = arith.constant dense<0.000000e+00> : vector<8x32xf32>
    %371 = tpu.matmul %370, %358, %cst_147 {dimension_numbers = #tpu.dot_dimension_numbers<[1], [0], [0], [1], [0, 0, 1, 1], [], []>} : vector<8x8xbf16>, vector<8x32xbf16>, vector<8x32xf32> -> vector<8x32xf32>
    %372 = vector.extract_strided_slice %344 {offsets = [0, 32], sizes = [8, 32], strides = [1, 1]} : vector<8x128xf32> to vector<8x32xf32>
    %cst_148 = arith.constant 0.176776692 : f32
    %373 = vector.broadcast %cst_148 : f32 to vector<8x32xf32>
    %374 = arith.mulf %372, %373 : vector<8x32xf32>
    %375 = arith.truncf %374 : vector<8x32xf32> to vector<8x32xbf16>
    %376 = vector.extract_strided_slice %349 {offsets = [0, 32], sizes = [8, 32], strides = [1, 1]} : vector<8x128xf32> to vector<8x32xf32>
    %377 = arith.truncf %376 : vector<8x32xf32> to vector<8x32xbf16>
    %378 = vector.extract_strided_slice %350 {offsets = [0, 32], sizes = [8, 32], strides = [1, 1]} : vector<8x128xf32> to vector<8x32xf32>
    %379 = arith.truncf %378 : vector<8x32xf32> to vector<8x32xbf16>
    %cst_149 = arith.constant dense<0.000000e+00> : vector<8x8xf32>
    %380 = tpu.matmul %375, %377, %cst_149 {dimension_numbers = #tpu.dot_dimension_numbers<[1], [1], [0], [0], [0, 0, 1, 0], [], []>} : vector<8x32xbf16>, vector<8x32xbf16>, vector<8x8xf32> -> vector<8x8xf32>
    %cst_150 = arith.constant dense<0xFF800000> : vector<8xf32>
    %381 = vector.multi_reduction <maximumf>, %380, %cst_150 [1] : vector<8x8xf32> to vector<8xf32>
    %382 = vector.shape_cast %381 : vector<8xf32> to vector<8x1xf32>
    %383 = vector.broadcast %382 : vector<8x1xf32> to vector<8x8xf32>
    %384 = arith.subf %380, %383 : vector<8x8xf32>
    %385 = math.exp %384 : vector<8x8xf32>
    %cst_151 = arith.constant dense<0.000000e+00> : vector<8xf32>
    %386 = vector.multi_reduction <add>, %385, %cst_151 [1] : vector<8x8xf32> to vector<8xf32>
    %387 = vector.shape_cast %386 : vector<8xf32> to vector<8x1xf32>
    %388 = tpu.reciprocal %387 {approx = true} : vector<8x1xf32> -> vector<8x1xf32>
    %389 = vector.broadcast %388 : vector<8x1xf32> to vector<8x8xf32>
    %390 = arith.mulf %385, %389 : vector<8x8xf32>
    %391 = arith.truncf %390 : vector<8x8xf32> to vector<8x8xbf16>
    %cst_152 = arith.constant dense<0.000000e+00> : vector<8x32xf32>
    %392 = tpu.matmul %391, %379, %cst_152 {dimension_numbers = #tpu.dot_dimension_numbers<[1], [0], [0], [1], [0, 0, 1, 1], [], []>} : vector<8x8xbf16>, vector<8x32xbf16>, vector<8x32xf32> -> vector<8x32xf32>
    %393 = vector.extract_strided_slice %344 {offsets = [0, 64], sizes = [8, 32], strides = [1, 1]} : vector<8x128xf32> to vector<8x32xf32>
    %cst_153 = arith.constant 0.176776692 : f32
    %394 = vector.broadcast %cst_153 : f32 to vector<8x32xf32>
    %395 = arith.mulf %393, %394 : vector<8x32xf32>
    %396 = arith.truncf %395 : vector<8x32xf32> to vector<8x32xbf16>
    %397 = vector.extract_strided_slice %349 {offsets = [0, 64], sizes = [8, 32], strides = [1, 1]} : vector<8x128xf32> to vector<8x32xf32>
    %398 = arith.truncf %397 : vector<8x32xf32> to vector<8x32xbf16>
    %399 = vector.extract_strided_slice %350 {offsets = [0, 64], sizes = [8, 32], strides = [1, 1]} : vector<8x128xf32> to vector<8x32xf32>
    %400 = arith.truncf %399 : vector<8x32xf32> to vector<8x32xbf16>
    %cst_154 = arith.constant dense<0.000000e+00> : vector<8x8xf32>
    %401 = tpu.matmul %396, %398, %cst_154 {dimension_numbers = #tpu.dot_dimension_numbers<[1], [1], [0], [0], [0, 0, 1, 0], [], []>} : vector<8x32xbf16>, vector<8x32xbf16>, vector<8x8xf32> -> vector<8x8xf32>
    %cst_155 = arith.constant dense<0xFF800000> : vector<8xf32>
    %402 = vector.multi_reduction <maximumf>, %401, %cst_155 [1] : vector<8x8xf32> to vector<8xf32>
    %403 = vector.shape_cast %402 : vector<8xf32> to vector<8x1xf32>
    %404 = vector.broadcast %403 : vector<8x1xf32> to vector<8x8xf32>
    %405 = arith.subf %401, %404 : vector<8x8xf32>
    %406 = math.exp %405 : vector<8x8xf32>
    %cst_156 = arith.constant dense<0.000000e+00> : vector<8xf32>
    %407 = vector.multi_reduction <add>, %406, %cst_156 [1] : vector<8x8xf32> to vector<8xf32>
    %408 = vector.shape_cast %407 : vector<8xf32> to vector<8x1xf32>
    %409 = tpu.reciprocal %408 {approx = true} : vector<8x1xf32> -> vector<8x1xf32>
    %410 = vector.broadcast %409 : vector<8x1xf32> to vector<8x8xf32>
    %411 = arith.mulf %406, %410 : vector<8x8xf32>
    %412 = arith.truncf %411 : vector<8x8xf32> to vector<8x8xbf16>
    %cst_157 = arith.constant dense<0.000000e+00> : vector<8x32xf32>
    %413 = tpu.matmul %412, %400, %cst_157 {dimension_numbers = #tpu.dot_dimension_numbers<[1], [0], [0], [1], [0, 0, 1, 1], [], []>} : vector<8x8xbf16>, vector<8x32xbf16>, vector<8x32xf32> -> vector<8x32xf32>
    %414 = vector.extract_strided_slice %344 {offsets = [0, 96], sizes = [8, 32], strides = [1, 1]} : vector<8x128xf32> to vector<8x32xf32>
    %cst_158 = arith.constant 0.176776692 : f32
    %415 = vector.broadcast %cst_158 : f32 to vector<8x32xf32>
    %416 = arith.mulf %414, %415 : vector<8x32xf32>
    %417 = arith.truncf %416 : vector<8x32xf32> to vector<8x32xbf16>
    %418 = vector.extract_strided_slice %349 {offsets = [0, 96], sizes = [8, 32], strides = [1, 1]} : vector<8x128xf32> to vector<8x32xf32>
    %419 = arith.truncf %418 : vector<8x32xf32> to vector<8x32xbf16>
    %420 = vector.extract_strided_slice %350 {offsets = [0, 96], sizes = [8, 32], strides = [1, 1]} : vector<8x128xf32> to vector<8x32xf32>
    %421 = arith.truncf %420 : vector<8x32xf32> to vector<8x32xbf16>
    %cst_159 = arith.constant dense<0.000000e+00> : vector<8x8xf32>
    %422 = tpu.matmul %417, %419, %cst_159 {dimension_numbers = #tpu.dot_dimension_numbers<[1], [1], [0], [0], [0, 0, 1, 0], [], []>} : vector<8x32xbf16>, vector<8x32xbf16>, vector<8x8xf32> -> vector<8x8xf32>
    %cst_160 = arith.constant dense<0xFF800000> : vector<8xf32>
    %423 = vector.multi_reduction <maximumf>, %422, %cst_160 [1] : vector<8x8xf32> to vector<8xf32>
    %424 = vector.shape_cast %423 : vector<8xf32> to vector<8x1xf32>
    %425 = vector.broadcast %424 : vector<8x1xf32> to vector<8x8xf32>
    %426 = arith.subf %422, %425 : vector<8x8xf32>
    %427 = math.exp %426 : vector<8x8xf32>
    %cst_161 = arith.constant dense<0.000000e+00> : vector<8xf32>
    %428 = vector.multi_reduction <add>, %427, %cst_161 [1] : vector<8x8xf32> to vector<8xf32>
    %429 = vector.shape_cast %428 : vector<8xf32> to vector<8x1xf32>
    %430 = tpu.reciprocal %429 {approx = true} : vector<8x1xf32> -> vector<8x1xf32>
    %431 = vector.broadcast %430 : vector<8x1xf32> to vector<8x8xf32>
    %432 = arith.mulf %427, %431 : vector<8x8xf32>
    %433 = arith.truncf %432 : vector<8x8xf32> to vector<8x8xbf16>
    %cst_162 = arith.constant dense<0.000000e+00> : vector<8x32xf32>
    %434 = tpu.matmul %433, %421, %cst_162 {dimension_numbers = #tpu.dot_dimension_numbers<[1], [0], [0], [1], [0, 0, 1, 1], [], []>} : vector<8x8xbf16>, vector<8x32xbf16>, vector<8x32xf32> -> vector<8x32xf32>
    %435 = tpu.concatenate %371, %392, %413, %434 in 1 : vector<8x32xf32>, vector<8x32xf32>, vector<8x32xf32>, vector<8x32xf32> -> vector<8x128xf32>
    %436 = arith.truncf %435 : vector<8x128xf32> to vector<8x128xbf16>
    %cst_163 = arith.constant dense<0.000000e+00> : vector<8x128xf32>
    %437 = tpu.matmul %436, %6, %cst_163 {dimension_numbers = #tpu.dot_dimension_numbers<[1], [0], [0], [1], [0, 0, 1, 1], [], []>} : vector<8x128xbf16>, vector<128x128xbf16>, vector<8x128xf32> -> vector<8x128xf32>
    %438 = vector.broadcast %3 : vector<1x128xf32> to vector<8x128xf32>
    %439 = arith.addf %437, %438 : vector<8x128xf32>
    %440 = arith.addf %340, %439 : vector<8x128xf32>
    %cst_164 = arith.constant dense<0.000000e+00> : vector<8xf32>
    %441 = vector.multi_reduction <add>, %440, %cst_164 [1] : vector<8x128xf32> to vector<8xf32>
    %442 = vector.shape_cast %441 : vector<8xf32> to vector<8x1xf32>
    %cst_165 = arith.constant 1.280000e+02 : f32
    %443 = vector.broadcast %cst_165 : f32 to vector<8x1xf32>
    %444 = arith.divf %442, %443 : vector<8x1xf32>
    %445 = vector.broadcast %444 : vector<8x1xf32> to vector<8x128xf32>
    %446 = arith.subf %440, %445 : vector<8x128xf32>
    %447 = arith.mulf %446, %446 : vector<8x128xf32>
    %cst_166 = arith.constant dense<0.000000e+00> : vector<8xf32>
    %448 = vector.multi_reduction <add>, %447, %cst_166 [1] : vector<8x128xf32> to vector<8xf32>
    %449 = vector.shape_cast %448 : vector<8xf32> to vector<8x1xf32>
    %cst_167 = arith.constant 1.280000e+02 : f32
    %450 = vector.broadcast %cst_167 : f32 to vector<8x1xf32>
    %451 = arith.divf %449, %450 : vector<8x1xf32>
    %cst_168 = arith.constant 9.99999974E-6 : f32
    %452 = vector.broadcast %cst_168 : f32 to vector<8x1xf32>
    %453 = arith.addf %451, %452 : vector<8x1xf32>
    %454 = math.rsqrt %453 : vector<8x1xf32>
    %455 = vector.broadcast %454 : vector<8x1xf32> to vector<8x128xf32>
    %456 = arith.mulf %446, %455 : vector<8x128xf32>
    %457 = vector.broadcast %11 : vector<1x128xf32> to vector<8x128xf32>
    %458 = arith.mulf %456, %457 : vector<8x128xf32>
    %459 = vector.broadcast %10 : vector<1x128xf32> to vector<8x128xf32>
    %460 = arith.addf %458, %459 : vector<8x128xf32>
    %461 = arith.truncf %460 : vector<8x128xf32> to vector<8x128xbf16>
    %cst_169 = arith.constant dense<0.000000e+00> : vector<8x256xf32>
    %462 = tpu.matmul %461, %18, %cst_169 {dimension_numbers = #tpu.dot_dimension_numbers<[1], [0], [0], [1], [0, 0, 1, 1], [], []>} : vector<8x128xbf16>, vector<128x256xbf16>, vector<8x256xf32> -> vector<8x256xf32>
    %463 = vector.broadcast %0 : vector<1x256xf32> to vector<8x256xf32>
    %464 = arith.addf %462, %463 : vector<8x256xf32>
    %465 = arith.mulf %464, %464 : vector<8x256xf32>
    %466 = arith.mulf %464, %465 : vector<8x256xf32>
    %cst_170 = arith.constant 4.471500e-02 : f32
    %467 = vector.broadcast %cst_170 : f32 to vector<8x256xf32>
    %468 = arith.mulf %467, %466 : vector<8x256xf32>
    %469 = arith.addf %464, %468 : vector<8x256xf32>
    %cst_171 = arith.constant 0.797884583 : f32
    %470 = vector.broadcast %cst_171 : f32 to vector<8x256xf32>
    %471 = arith.mulf %470, %469 : vector<8x256xf32>
    %472 = math.tanh %471 : vector<8x256xf32>
    %cst_172 = arith.constant 1.000000e+00 : f32
    %473 = vector.broadcast %cst_172 : f32 to vector<8x256xf32>
    %474 = arith.addf %473, %472 : vector<8x256xf32>
    %cst_173 = arith.constant 5.000000e-01 : f32
    %475 = vector.broadcast %cst_173 : f32 to vector<8x256xf32>
    %476 = arith.mulf %475, %474 : vector<8x256xf32>
    %477 = arith.mulf %464, %476 : vector<8x256xf32>
    %478 = arith.truncf %477 : vector<8x256xf32> to vector<8x256xbf16>
    %cst_174 = arith.constant dense<0.000000e+00> : vector<8x128xf32>
    %479 = tpu.matmul %478, %19, %cst_174 {dimension_numbers = #tpu.dot_dimension_numbers<[1], [0], [0], [1], [0, 0, 1, 1], [], []>} : vector<8x256xbf16>, vector<256x128xbf16>, vector<8x128xf32> -> vector<8x128xf32>
    %480 = vector.broadcast %1 : vector<1x128xf32> to vector<8x128xf32>
    %481 = arith.addf %479, %480 : vector<8x128xf32>
    %482 = arith.addf %460, %481 : vector<8x128xf32>
    %cst_175 = arith.constant dense<0.000000e+00> : vector<8xf32>
    %483 = vector.multi_reduction <add>, %482, %cst_175 [1] : vector<8x128xf32> to vector<8xf32>
    %484 = vector.shape_cast %483 : vector<8xf32> to vector<8x1xf32>
    %cst_176 = arith.constant 1.280000e+02 : f32
    %485 = vector.broadcast %cst_176 : f32 to vector<8x1xf32>
    %486 = arith.divf %484, %485 : vector<8x1xf32>
    %487 = vector.broadcast %486 : vector<8x1xf32> to vector<8x128xf32>
    %488 = arith.subf %482, %487 : vector<8x128xf32>
    %489 = arith.mulf %488, %488 : vector<8x128xf32>
    %cst_177 = arith.constant dense<0.000000e+00> : vector<8xf32>
    %490 = vector.multi_reduction <add>, %489, %cst_177 [1] : vector<8x128xf32> to vector<8xf32>
    %491 = vector.shape_cast %490 : vector<8xf32> to vector<8x1xf32>
    %cst_178 = arith.constant 1.280000e+02 : f32
    %492 = vector.broadcast %cst_178 : f32 to vector<8x1xf32>
    %493 = arith.divf %491, %492 : vector<8x1xf32>
    %cst_179 = arith.constant 9.99999974E-6 : f32
    %494 = vector.broadcast %cst_179 : f32 to vector<8x1xf32>
    %495 = arith.addf %493, %494 : vector<8x1xf32>
    %496 = math.rsqrt %495 : vector<8x1xf32>
    %497 = vector.broadcast %496 : vector<8x1xf32> to vector<8x128xf32>
    %498 = arith.mulf %488, %497 : vector<8x128xf32>
    %499 = vector.broadcast %13 : vector<1x128xf32> to vector<8x128xf32>
    %500 = arith.mulf %498, %499 : vector<8x128xf32>
    %501 = vector.broadcast %12 : vector<1x128xf32> to vector<8x128xf32>
    %502 = arith.addf %500, %501 : vector<8x128xf32>
    %503 = arith.truncf %502 : vector<8x128xf32> to vector<8x128xbf16>
    %cst_180 = arith.constant dense<0.000000e+00> : vector<8x256xf32>
    %504 = tpu.matmul %503, %21, %cst_180 {dimension_numbers = #tpu.dot_dimension_numbers<[1], [0], [0], [1], [0, 0, 1, 1], [], []>} : vector<8x128xbf16>, vector<128x256xbf16>, vector<8x256xf32> -> vector<8x256xf32>
    %cst_181 = arith.constant dense<0xFF800000> : vector<8xf32>
    %505 = vector.multi_reduction <maximumf>, %504, %cst_181 [1] : vector<8x256xf32> to vector<8xf32>
    %506 = vector.shape_cast %505 : vector<8xf32> to vector<8x1xf32>
    %507 = vector.broadcast %506 : vector<8x1xf32> to vector<8x256xf32>
    %508 = arith.cmpf oeq, %504, %507 : vector<8x256xf32>
    %c256_i32 = arith.constant 256 : i32
    %509 = vector.broadcast %c256_i32 : i32 to vector<8x256xi32>
    %510 = arith.select %508, %35, %509 : vector<8x256xi1>, vector<8x256xi32>
    %cst_182 = arith.constant dense<2147483647> : vector<8xi32>
    %511 = vector.multi_reduction <minsi>, %510, %cst_182 [1] : vector<8x256xi32> to vector<8xi32>
    %512 = vector.shape_cast %511 : vector<8xi32> to vector<8x1xi32>
    %c0_183 = arith.constant 0 : index
    %c0_184 = arith.constant 0 : index
    %513 = vector.load %arg36[%c0_183, %c0_184] : memref<8x1xi32, #tpu.memory_space<vmem>>, vector<8x1xi32>
    tpu.vector_store %arg36[%c0_183, %c0_184], %512 {strides = array<i32>} : memref<8x1xi32, #tpu.memory_space<vmem>>, vector<8x1xi32>,
    return
  }
}

</mosaic_0001>

<bundles_post_ra>
// kernel: seq2seq_generate.1
= control target key start
LH: loop header
LB: loop body
LE: loop exit
PB: predicated region body
PF: predicated region fallthrough
CT: control target
= control target key end

     0   :  { %s6162_s6 = smov 1   ;;  %s6163_s10 = smov 2   ;;  %s7003_s0 = inlined_call_operand.smem [shape: u32[37], index: -1, kind: input, shape index: {}] }
   0x1   :  { %s6252_s5 = sld [smem:[%s7003_s0]]   ;;  %s6164_s14 = smov 3  }
   0x2   :  { %s6257_s9 = sld [smem:[%s7003_s0 + %s6162_s6]]   ;;  %s6165_s18 = smov 4  }
   0x3   :  { %s6262_s13 = sld [smem:[%s7003_s0 + %s6163_s10]]   ;;  %s6166_s22 = smov 5  }
   0x4   :  { %s6267_s17 = sld [smem:[%s7003_s0 + %s6164_s14]]   ;;  %s6167_s26 = smov 6  }
   0x5   :  { %s6272_s21 = sld [smem:[%s7003_s0 + %s6165_s18]]   ;;  %s6168_s30 = smov 7  }
   0x6   :  { %s6277_s25 = sld [smem:[%s7003_s0 + %s6166_s22]]   ;;  %s6169_s4 = smov 8  }
   0x7   :  { %7021 = sst [smem:[#allocation68_spill]] %s6252_s5  ;;  %s6170_s10 = smov 9  }
   0x8   :  { %7022 = sst [smem:[#allocation69_spill]] %s6257_s9  ;;  %s6171_s15 = smov 10  }
   0x9   :  { %7023 = sst [smem:[#allocation70_spill]] %s6262_s13  ;;  %s6172_s20 = smov 11  }
   0xa   :  { %s6282_s29 = sld [smem:[%s7003_s0 + %s6167_s26]]   ;;  %s6173_s26 = smov 12  }
   0xb   :  { %7024 = sst [smem:[#allocation71_spill]] %s6272_s21  ;;  %s6174_s1 = smov 13  }
   0xc   :  { %s6287_s3 = sld [smem:[%s7003_s0 + %s6168_s30]]   ;;  %s6175_s7 = smov 14  }
   0xd   :  { %s6292_s8 = sld [smem:[%s7003_s0 + %s6169_s4]]   ;;  %s6177_s22 = smov 16  }
   0xe   :  { %s6297_s14 = sld [smem:[%s7003_s0 + %s6170_s10]]   ;;  %s6178_s28 = smov 17  }
   0xf   :  { %s6302_s19 = sld [smem:[%s7003_s0 + %s6171_s15]]   ;;  %s6176_s15 = smov 15  }
  0x10   :  { %7025 = sst [smem:[#allocation72_spill]] %s6282_s29 }
  0x11   :  { %s6307_s24 = sld [smem:[%s7003_s0 + %s6172_s20]]  }
  0x12   :  { %s6312_s30 = sld [smem:[%s7003_s0 + %s6173_s26]]  }
  0x13   :  { %7026 = sst [smem:[#allocation73_spill]] %s6292_s8 }
  0x14   :  { %s6317_s6 = sld [smem:[%s7003_s0 + %s6174_s1]]  }
  0x15   :  { %7027 = sst [smem:[#allocation74_spill]] %s6302_s19 }
  0x16   :  { %s6322_s12 = sld [smem:[%s7003_s0 + %s6175_s7]]   ;;  %s6179_s7 = smov 18  }
  0x17   :  { %s6327_s20 = sld [smem:[%s7003_s0 + %s6176_s15]]   ;;  %s6180_s15 = smov 19  }
  0x18   :  { %7028 = sst [smem:[#allocation75_spill]] %s6312_s30 }
  0x19   :  { %s6332_s27 = sld [smem:[%s7003_s0 + %s6177_s22]]   ;;  %s6181_s22 = smov 20  }
  0x1a   :  { %s6337_s4 = sld [smem:[%s7003_s0 + %s6178_s28]]   ;;  %s6182_s28 = smov 21  }
  0x1b   :  { %s6342_s13 = sld [smem:[%s7003_s0 + %s6179_s7]]   ;;  %s6183_s7 = smov 22  }
  0x1c   :  { %7029 = sst [smem:[#allocation76_spill]] %s6322_s12 }
  0x1d   :  { %s6347_s5 = sld [smem:[%s7003_s0 + %s6180_s15]]   ;;  %s6184_s15 = smov 23  }
  0x1e   :  { %s6357_s12 = sld [smem:[%s7003_s0 + %s6182_s28]]   ;;  %s6186_s28 = smov 25  }
  0x1f   :  { %7030 = sst [smem:[#allocation77_spill]] %s6332_s27 }
  0x20   :  { %s6352_s27 = sld [smem:[%s7003_s0 + %s6181_s22]]   ;;  %s6185_s22 = smov 24  }
  0x21   :  { %7031 = sst [smem:[#allocation78_spill]] %s6342_s13 }
  0x22   :  { %s6362_s13 = sld [smem:[%s7003_s0 + %s6183_s7]]   ;;  %s6187_s7 = smov 26  }
  0x23   :  { %s6367_s30 = sld [smem:[%s7003_s0 + %s6184_s15]]   ;;  %s6188_s15 = smov 27  }
  0x24   :  { %s6377_s19 = sld [smem:[%s7003_s0 + %s6186_s28]]   ;;  %s6190_s28 = smov 29  }
  0x25   :  { %s6387_s8 = sld [smem:[%s7003_s0 + %s6188_s15]]   ;;  %s6192_s15 = smov 31  }
  0x26   :  { %7032 = sst [smem:[#allocation79_spill]] %s6352_s27 }
  0x27   :  { %s6372_s27 = sld [smem:[%s7003_s0 + %s6185_s22]]   ;;  %s6189_s22 = smov 28  }
  0x28   :  { %7033 = sst [smem:[#allocation80_spill]] %s6362_s13 }
  0x29   :  { %s6382_s13 = sld [smem:[%s7003_s0 + %s6187_s7]]   ;;  %s6191_s7 = smov 30  }
  0x2a   :  { %s6397_s29 = sld [smem:[%s7003_s0 + %s6190_s28]]   ;;  %s6194_s28 = smov 33  }
  0x2b   :  { %s6407_s21 = sld [smem:[%s7003_s0 + %s6192_s15]]   ;;  %s6196_s15 = smov 35  }
  0x2c   :  { %s6417_s9 = sld [smem:[%s7003_s0 + %s6194_s28]]  }
  0x2d   :  { %7034 = sst [smem:[#allocation81_spill]] %s6372_s27 }
  0x2e   :  { %s6392_s27 = sld [smem:[%s7003_s0 + %s6189_s22]]   ;;  %s6193_s22 = smov 32  }
  0x2f   :  { %7035 = sst [smem:[#allocation82_spill]] %s6382_s13 }
  0x30   :  { %s6402_s13 = sld [smem:[%s7003_s0 + %s6191_s7]]   ;;  %s6195_s7 = smov 34  }
  0x31   :  { %7038 = sst [smem:[#allocation85_spill]] %s6407_s21 }
  0x32   :  { %s6427_s21 = sld [smem:[%s7003_s0 + %s6196_s15]]  }
  0x34   :  { %7036 = sst [smem:[#allocation83_spill]] %s6392_s27 }
  0x35   :  { %s6412_s27 = sld [smem:[%s7003_s0 + %s6193_s22]]   ;;  %s6197_s22 = smov 36  }
  0x36   :  { %7037 = sst [smem:[#allocation84_spill]] %s6402_s13 }
  0x37   :  { %s6422_s13 = sld [smem:[%s7003_s0 + %s6195_s7]]  }
  0x3b   :  { %7039 = sst [smem:[#allocation86_spill]] %s6412_s27 }
  0x3c   :  { %s6432_s27 = sld [smem:[%s7003_s0 + %s6197_s22]]  }
  0x3d   :  { %78 = vsyncpa [#allocation3], 0 }
  0x3e   :  { %79 = vsyncpa [#allocation5], 0 }
  0x3f   :  { %80 = vsyncpa [#allocation8], 0 }
  0x40   :  { %81 = vsyncpa [#allocation11], 0 }
  0x41   :  { %82 = vsyncpa [#allocation14], 0 }
  0x42   :  { %83 = vsyncpa [#allocation17], 0 }
  0x43   :  { %84 = vsyncpa [#allocation20], 0 }
  0x44   :  { %85 = vsyncpa [#allocation23], 0 }
  0x45   :  { %86 = vsyncpa [#allocation26], 0 }
  0x46   :  { %87 = vsyncpa [#allocation29], 0 }
  0x47   :  { %88 = vsyncpa [#allocation32], 0 }
  0x48   :  { %89 = vsyncpa [#allocation35], 0 }
  0x49   :  { %90 = vsyncpa [#allocation38], 0 }
  0x4a   :  { %91 = vsyncpa [#allocation41], 0 }
  0x4b   :  { %92 = vsyncpa [#allocation44], 0 }
  0x4c   :  { %93 = vsyncpa [#allocation47], 0 }
  0x4d   :  { %94 = vsyncpa [#allocation50], 0  ;;  %s6198_s0 = smov [#allocation4]   ;;  %s6199_s1 = smov [#allocation7]  }
  0x4e   :  { %s115_s28 = sshll.u32 %s6198_s0, 4  ;;  %s135_s2 = sshll.u32 %s6199_s1, 4  ;;  %s116_s28 = int_to_ptr.vmem [resolvable:$true] %s115_s28  ;;  %s136_s2 = int_to_ptr.vmem [resolvable:$true] %s135_s2 }
  0x4f   :  { %s5424_s7 = scalar_lea.hbm %s6267_s17, 32 }
  0x50   :  { %p5425_p0 = scmp.ne.s32.totalorder %s6267_s17, %s5424_s7  ;;  %p5428_p1 = scmp.lt.u32.totalorder %s5424_s7, %s6267_s17 }
  0x52   :  { %p5430_p2 = pnand %p5428_p1, %p5425_p0 }
  0x54   :  { %5433 = shalt.err (!%p5430_p2)
}
  0x55   :  { %s5434_s10 = scalar_lea.vmem %s116_s28, 32  ;;  %p5439_p4 = scmp.lt.s32.totalorder %s116_s28, %s116_s28 }
  0x56   :  { %p5435_p3 = scmp.ne.s32.totalorder %s116_s28, %s5434_s10  ;;  %p5440_p5 = scmp.lt.s32.totalorder %s5434_s10, %s5434_s10 }
  0x58   :  { %p5441_p6 = por %p5440_p5, %p5439_p4 }
  0x5a   :  { %p5442_p7 = pnand %p5441_p6, %p5435_p3 }
  0x5c   :  { %5445 = shalt.err (!%p5442_p7)
}
  0x5d   :  { %118 = dma.hbm_to_vmem [thread:$0]  %s6267_s17, 32, %s116_s28, [#allocation5]  }
  0x5e   :  { %s5446_s11 = scalar_lea.hbm %s6277_s25, 16 }
  0x5f   :  { %p5447_p8 = scmp.ne.s32.totalorder %s6277_s25, %s5446_s11  ;;  %p5450_p9 = scmp.lt.u32.totalorder %s5446_s11, %s6277_s25 }
  0x61   :  { %p5452_p10 = pnand %p5450_p9, %p5447_p8 }
  0x63   :  { %5455 = shalt.err (!%p5452_p10)
}
  0x64   :  { %s5456_s15 = scalar_lea.vmem %s136_s2, 16  ;;  %s5460_s16 = scalar_lea.vmem %s136_s2, 32 }
  0x65   :  { %p5457_p11 = scmp.ne.s32.totalorder %s136_s2, %s5456_s15  ;;  %p5461_p12 = scmp.lt.s32.totalorder %s136_s2, %s136_s2 }
  0x66   :  { %p5462_p13 = scmp.lt.s32.totalorder %s5460_s16, %s5456_s15 }
  0x68   :  { %p5463_p0 = por %p5462_p13, %p5461_p12 }
  0x6a   :  { %p5464_p1 = pnand %p5463_p0, %p5457_p11 }
  0x6c   :  { %5467 = shalt.err (!%p5464_p1)
}
  0x6d   :  { %138 = dma.hbm_to_vmem [thread:$0]  %s6277_s25, 16, %s136_s2, [#allocation8]  }
  0x6e   :  { %s6200_s18 = smov [#allocation10]   ;;  %s5468_s22 = scalar_lea.hbm %s6287_s3, 1024 }
  0x6f   :  { %s156_s17 = sshll.u32 %s6200_s18, 4  ;;  %p5469_p2 = scmp.ne.s32.totalorder %s6287_s3, %s5468_s22  ;;  %s157_s17 = int_to_ptr.vmem [resolvable:$true] %s156_s17 }
  0x70   :  { %p5472_p3 = scmp.lt.u32.totalorder %s5468_s22, %s6287_s3 }
  0x72   :  { %p5474_p4 = pnand %p5472_p3, %p5469_p2 }
  0x74   :  { %5477 = shalt.err (!%p5474_p4)
}
  0x75   :  { %s5478_s23 = scalar_lea.vmem %s157_s17, 1024  ;;  %p5483_p6 = scmp.lt.s32.totalorder %s157_s17, %s157_s17 }
  0x76   :  { %p5479_p5 = scmp.ne.s32.totalorder %s157_s17, %s5478_s23  ;;  %p5484_p7 = scmp.lt.s32.totalorder %s5478_s23, %s5478_s23 }
  0x78   :  { %p5485_p8 = por %p5484_p7, %p5483_p6 }
  0x7a   :  { %p5486_p9 = pnand %p5485_p8, %p5479_p5 }
  0x7c   :  { %5489 = shalt.err (!%p5486_p9)
}
  0x7d   :  { %s6201_s26 = smov 64   ;;  %s6202_s25 = smov 4  }
  0x7e   :  { %162 = dma.hbm_to_vmem [thread:$0]  %s6287_s3, 1024, %s157_s17, [#allocation11], %s6201_s26, %s6201_s26, %s6202_s25  }
  0x7f   :  { %s6203_s0 = smov [#allocation13]   ;;  %s6204_s1 = smov [#allocation16]  }
  0x80   :  { %s181_s28 = sshll.u32 %s6203_s0, 4  ;;  %s201_s2 = sshll.u32 %s6204_s1, 4  ;;  %s182_s28 = int_to_ptr.vmem [resolvable:$true] %s181_s28  ;;  %s202_s2 = int_to_ptr.vmem [resolvable:$true] %s201_s2 }
  0x81   :  { %s5490_s7 = scalar_lea.hbm %s6297_s14, 16 }
  0x82   :  { %p5491_p10 = scmp.ne.s32.totalorder %s6297_s14, %s5490_s7  ;;  %p5494_p11 = scmp.lt.u32.totalorder %s5490_s7, %s6297_s14 }
  0x84   :  { %p5496_p12 = pnand %p5494_p11, %p5491_p10 }
  0x86   :  { %5499 = shalt.err (!%p5496_p12)
}
  0x87   :  { %s5500_s10 = scalar_lea.vmem %s182_s28, 16  ;;  %s5504_s11 = scalar_lea.vmem %s182_s28, 32 }
  0x88   :  { %p5501_p13 = scmp.ne.s32.totalorder %s182_s28, %s5500_s10  ;;  %p5505_p0 = scmp.lt.s32.totalorder %s182_s28, %s182_s28 }
  0x89   :  { %p5506_p1 = scmp.lt.s32.totalorder %s5504_s11, %s5500_s10 }
  0x8b   :  { %p5507_p2 = por %p5506_p1, %p5505_p0 }
  0x8d   :  { %p5508_p3 = pnand %p5507_p2, %p5501_p13 }
  0x8f   :  { %5511 = shalt.err (!%p5508_p3)
}
  0x90   :  { %184 = dma.hbm_to_vmem [thread:$0]  %s6297_s14, 16, %s182_s28, [#allocation14]  }
  0x91   :  { %s5512_s3 = scalar_lea.hbm %s6307_s24, 16 }
  0x92   :  { %p5513_p4 = scmp.ne.s32.totalorder %s6307_s24, %s5512_s3  ;;  %p5516_p5 = scmp.lt.u32.totalorder %s5512_s3, %s6307_s24 }
  0x94   :  { %p5518_p6 = pnand %p5516_p5, %p5513_p4 }
  0x96   :  { %5521 = shalt.err (!%p5518_p6)
}
  0x97   :  { %s5522_s15 = scalar_lea.vmem %s202_s2, 16  ;;  %s5526_s16 = scalar_lea.vmem %s202_s2, 32 }
  0x98   :  { %p5523_p7 = scmp.ne.s32.totalorder %s202_s2, %s5522_s15  ;;  %p5527_p8 = scmp.lt.s32.totalorder %s202_s2, %s202_s2 }
  0x99   :  { %p5528_p9 = scmp.lt.s32.totalorder %s5526_s16, %s5522_s15 }
  0x9b   :  { %p5529_p10 = por %p5528_p9, %p5527_p8 }
  0x9d   :  { %p5530_p11 = pnand %p5529_p10, %p5523_p7 }
  0x9f   :  { %5533 = shalt.err (!%p5530_p11)
}
  0xa0   :  { %204 = dma.hbm_to_vmem [thread:$0]  %s6307_s24, 16, %s202_s2, [#allocation17]  }
  0xa1   :  { %s6205_s14 = smov [#allocation19]   ;;  %s6206_s17 = smov [#allocation22]  }
  0xa2   :  { %s221_s18 = sshll.u32 %s6205_s14, 4  ;;  %s241_s22 = sshll.u32 %s6206_s17, 4  ;;  %s222_s18 = int_to_ptr.vmem [resolvable:$true] %s221_s18  ;;  %s242_s22 = int_to_ptr.vmem [resolvable:$true] %s241_s22 }
  0xa3   :  { %s5534_s23 = scalar_lea.hbm %s6317_s6, 16 }
  0xa4   :  { %p5535_p12 = scmp.ne.s32.totalorder %s6317_s6, %s5534_s23  ;;  %p5538_p13 = scmp.lt.u32.totalorder %s5534_s23, %s6317_s6 }
  0xa6   :  { %p5540_p0 = pnand %p5538_p13, %p5535_p12 }
  0xa8   :  { %5543 = shalt.err (!%p5540_p0)
}
  0xa9   :  { %s5544_s0 = scalar_lea.vmem %s222_s18, 16  ;;  %s5548_s28 = scalar_lea.vmem %s222_s18, 32 }
  0xaa   :  { %p5545_p1 = scmp.ne.s32.totalorder %s222_s18, %s5544_s0  ;;  %p5549_p2 = scmp.lt.s32.totalorder %s222_s18, %s222_s18 }
  0xab   :  { %p5550_p3 = scmp.lt.s32.totalorder %s5548_s28, %s5544_s0 }
  0xad   :  { %p5551_p4 = por %p5550_p3, %p5549_p2 }
  0xaf   :  { %p5552_p5 = pnand %p5551_p4, %p5545_p1 }
  0xb1   :  { %5555 = shalt.err (!%p5552_p5)
}
  0xb2   :  { %224 = dma.hbm_to_vmem [thread:$0]  %s6317_s6, 16, %s222_s18, [#allocation20]  }
  0xb3   :  { %s5556_s24 = scalar_lea.hbm %s6327_s20, 16 }
  0xb4   :  { %p5557_p6 = scmp.ne.s32.totalorder %s6327_s20, %s5556_s24  ;;  %p5560_p7 = scmp.lt.u32.totalorder %s5556_s24, %s6327_s20 }
  0xb6   :  { %p5562_p8 = pnand %p5560_p7, %p5557_p6 }
  0xb8   :  { %5565 = shalt.err (!%p5562_p8)
}
  0xb9   :  { %s5566_s1 = scalar_lea.vmem %s242_s22, 16  ;;  %s5570_s2 = scalar_lea.vmem %s242_s22, 32 }
  0xba   :  { %p5567_p9 = scmp.ne.s32.totalorder %s242_s22, %s5566_s1  ;;  %p5571_p10 = scmp.lt.s32.totalorder %s242_s22, %s242_s22 }
  0xbb   :  { %p5572_p11 = scmp.lt.s32.totalorder %s5570_s2, %s5566_s1 }
  0xbd   :  { %p5573_p12 = por %p5572_p11, %p5571_p10 }
  0xbf   :  { %p5574_p13 = pnand %p5573_p12, %p5567_p9 }
  0xc1   :  { %5577 = shalt.err (!%p5574_p13)
}
  0xc2   :  { %244 = dma.hbm_to_vmem [thread:$0]  %s6327_s20, 16, %s242_s22, [#allocation23]  }
  0xc3   :  { %s6207_s6 = smov [#allocation25]   ;;  %s5578_s10 = scalar_lea.hbm %s6337_s4, 1024 }
  0xc4   :  { %s260_s7 = sshll.u32 %s6207_s6, 4  ;;  %p5579_p0 = scmp.ne.s32.totalorder %s6337_s4, %s5578_s10  ;;  %s261_s7 = int_to_ptr.vmem [resolvable:$true] %s260_s7 }
  0xc5   :  { %p5582_p1 = scmp.lt.u32.totalorder %s5578_s10, %s6337_s4 }
  0xc7   :  { %p5584_p2 = pnand %p5582_p1, %p5579_p0 }
  0xc9   :  { %5587 = shalt.err (!%p5584_p2)
}
  0xca   :  { %s5588_s11 = scalar_lea.vmem %s261_s7, 1024  ;;  %p5593_p4 = scmp.lt.s32.totalorder %s261_s7, %s261_s7 }
  0xcb   :  { %p5589_p3 = scmp.ne.s32.totalorder %s261_s7, %s5588_s11  ;;  %p5594_p5 = scmp.lt.s32.totalorder %s5588_s11, %s5588_s11 }
  0xcd   :  { %p5595_p6 = por %p5594_p5, %p5593_p4 }
  0xcf   :  { %p5596_p7 = pnand %p5595_p6, %p5589_p3 }
  0xd1   :  { %5599 = shalt.err (!%p5596_p7)
}
  0xd2   :  { %266 = dma.hbm_to_vmem [thread:$0]  %s6337_s4, 1024, %s261_s7, [#allocation26], %s6201_s26, %s6201_s26, %s6202_s25  }
  0xd3   :  { %s6208_s20 = smov [#allocation28]   ;;  %s6209_s15 = smov [#allocation31]  }
  0xd4   :  { %s284_s3 = sshll.u32 %s6208_s20, 4  ;;  %s308_s16 = sshll.u32 %s6209_s15, 4  ;;  %s285_s3 = int_to_ptr.vmem [resolvable:$true] %s284_s3  ;;  %s6472_s16 = int_to_ptr.vmem [resolvable:$true] %s308_s16 }
  0xd5   :  { %s5600_s14 = scalar_lea.hbm %s6347_s5, 2048 }
  0xd6   :  { %p5601_p8 = scmp.ne.s32.totalorder %s6347_s5, %s5600_s14  ;;  %p5604_p9 = scmp.lt.u32.totalorder %s5600_s14, %s6347_s5 }
  0xd8   :  { %p5606_p10 = pnand %p5604_p9, %p5601_p8 }
  0xda   :  { %5609 = shalt.err (!%p5606_p10)
}
  0xdb   :  { %s5610_s18 = scalar_lea.vmem %s285_s3, 2048  ;;  %p5615_p12 = scmp.lt.s32.totalorder %s285_s3, %s285_s3 }
  0xdc   :  { %p5611_p11 = scmp.ne.s32.totalorder %s285_s3, %s5610_s18  ;;  %p5616_p13 = scmp.lt.s32.totalorder %s5610_s18, %s5610_s18 }
  0xde   :  { %p5617_p0 = por %p5616_p13, %p5615_p12 }
  0xe0   :  { %p5618_p1 = pnand %p5617_p0, %p5611_p11 }
  0xe2   :  { %5621 = shalt.err (!%p5618_p1)
}
  0xe3   :  { %s6210_s4 = smov 128   ;;  %s6211_s17 = smov 8  }
  0xe4   :  { %290 = dma.hbm_to_vmem [thread:$0]  %s6347_s5, 2048, %s285_s3, [#allocation29], %s6210_s4, %s6210_s4, %s6211_s17  }
  0xe5   :  { %s5622_s22 = scalar_lea.hbm %s6357_s12, 2048 }
  0xe6   :  { %p5623_p2 = scmp.ne.s32.totalorder %s6357_s12, %s5622_s22  ;;  %p5626_p3 = scmp.lt.u32.totalorder %s5622_s22, %s6357_s12 }
  0xe8   :  { %p5628_p4 = pnand %p5626_p3, %p5623_p2 }
  0xea   :  { %5631 = shalt.err (!%p5628_p4)
}
  0xeb   :  { %s5632_s23 = scalar_lea.vmem %s6472_s16, 2048  ;;  %p5637_p6 = scmp.lt.s32.totalorder %s6472_s16, %s6472_s16 }
  0xec   :  { %p5633_p5 = scmp.ne.s32.totalorder %s6472_s16, %s5632_s23  ;;  %p5638_p7 = scmp.lt.s32.totalorder %s5632_s23, %s5632_s23 }
  0xee   :  { %p5639_p8 = por %p5638_p7, %p5637_p6 }
  0xf0   :  { %p5640_p9 = pnand %p5639_p8, %p5633_p5 }
  0xf2   :  { %5643 = shalt.err (!%p5640_p9)
}
  0xf3   :  { %314 = dma.hbm_to_vmem [thread:$0]  %s6357_s12, 2048, %s6472_s16, [#allocation32], %s6201_s26, %s6201_s26, %s6202_s25  }
  0xf4   :  { %s6212_s5 = smov [#allocation34]   ;;  %s6213_s28 = smov [#allocation37]  }
  0xf5   :  { %s333_s0 = sshll.u32 %s6212_s5, 4  ;;  %s353_s24 = sshll.u32 %s6213_s28, 4  ;;  %s334_s0 = int_to_ptr.vmem [resolvable:$true] %s333_s0  ;;  %s354_s24 = int_to_ptr.vmem [resolvable:$true] %s353_s24 }
  0xf6   :  { %s5644_s1 = scalar_lea.hbm %s6367_s30, 32 }
  0xf7   :  { %p5645_p10 = scmp.ne.s32.totalorder %s6367_s30, %s5644_s1  ;;  %p5648_p11 = scmp.lt.u32.totalorder %s5644_s1, %s6367_s30 }
  0xf9   :  { %p5650_p12 = pnand %p5648_p11, %p5645_p10 }
  0xfb   :  { %5653 = shalt.err (!%p5650_p12)
}
  0xfc   :  { %s5654_s2 = scalar_lea.vmem %s334_s0, 32  ;;  %p5659_p0 = scmp.lt.s32.totalorder %s334_s0, %s334_s0 }
  0xfd   :  { %p5655_p13 = scmp.ne.s32.totalorder %s334_s0, %s5654_s2  ;;  %p5660_p1 = scmp.lt.s32.totalorder %s5654_s2, %s5654_s2 }
  0xff   :  { %p5661_p2 = por %p5660_p1, %p5659_p0 }
 0x101   :  { %p5662_p3 = pnand %p5661_p2, %p5655_p13 }
 0x103   :  { %5665 = shalt.err (!%p5662_p3)
}
 0x104   :  { %336 = dma.hbm_to_vmem [thread:$0]  %s6367_s30, 32, %s334_s0, [#allocation35]  }
 0x105   :  { %s5666_s12 = scalar_lea.hbm %s6377_s19, 16 }
 0x106   :  { %p5667_p4 = scmp.ne.s32.totalorder %s6377_s19, %s5666_s12  ;;  %p5670_p5 = scmp.lt.u32.totalorder %s5666_s12, %s6377_s19 }
 0x108   :  { %p5672_p6 = pnand %p5670_p5, %p5667_p4 }
 0x10a   :  { %5675 = shalt.err (!%p5672_p6)
}
 0x10b   :  { %s5676_s6 = scalar_lea.vmem %s354_s24, 16  ;;  %s5680_s7 = scalar_lea.vmem %s354_s24, 32 }
 0x10c   :  { %p5677_p7 = scmp.ne.s32.totalorder %s354_s24, %s5676_s6  ;;  %p5681_p8 = scmp.lt.s32.totalorder %s354_s24, %s354_s24 }
 0x10d   :  { %p5682_p9 = scmp.lt.s32.totalorder %s5680_s7, %s5676_s6 }
 0x10f   :  { %p5683_p10 = por %p5682_p9, %p5681_p8 }
 0x111   :  { %p5684_p11 = pnand %p5683_p10, %p5677_p7 }
 0x113   :  { %5687 = shalt.err (!%p5684_p11)
}
 0x114   :  { %356 = dma.hbm_to_vmem [thread:$0]  %s6377_s19, 16, %s354_s24, [#allocation38]  }
 0x115   :  { %s6214_s10 = smov [#allocation40]   ;;  %s6215_s11 = smov [#allocation43]  }
 0x116   :  { %s373_s30 = sshll.u32 %s6214_s10, 4  ;;  %s393_s20 = sshll.u32 %s6215_s11, 4  ;;  %s374_s30 = int_to_ptr.vmem [resolvable:$true] %s373_s30  ;;  %s394_s20 = int_to_ptr.vmem [resolvable:$true] %s393_s20 }
 0x117   :  { %s5688_s3 = scalar_lea.hbm %s6387_s8, 16 }
 0x118   :  { %p5689_p12 = scmp.ne.s32.totalorder %s6387_s8, %s5688_s3  ;;  %p5692_p13 = scmp.lt.u32.totalorder %s5688_s3, %s6387_s8 }
 0x11a   :  { %p5694_p0 = pnand %p5692_p13, %p5689_p12 }
 0x11c   :  { %5697 = shalt.err (!%p5694_p0)
}
 0x11d   :  { %s5698_s15 = scalar_lea.vmem %s374_s30, 16  ;;  %s5702_s16 = scalar_lea.vmem %s374_s30, 32 }
 0x11e   :  { %p5699_p1 = scmp.ne.s32.totalorder %s374_s30, %s5698_s15  ;;  %p5703_p2 = scmp.lt.s32.totalorder %s374_s30, %s374_s30 }
 0x11f   :  { %p5704_p3 = scmp.lt.s32.totalorder %s5702_s16, %s5698_s15 }
 0x121   :  { %p5705_p4 = por %p5704_p3, %p5703_p2 }
 0x123   :  { %p5706_p5 = pnand %p5705_p4, %p5699_p1 }
 0x125   :  { %5709 = shalt.err (!%p5706_p5)
}
 0x126   :  { %376 = dma.hbm_to_vmem [thread:$0]  %s6387_s8, 16, %s374_s30, [#allocation41]  }
 0x127   :  { %s5710_s19 = scalar_lea.hbm %s6397_s29, 16 }
 0x128   :  { %p5711_p6 = scmp.ne.s32.totalorder %s6397_s29, %s5710_s19  ;;  %p5714_p7 = scmp.lt.u32.totalorder %s5710_s19, %s6397_s29 }
 0x12a   :  { %p5716_p8 = pnand %p5714_p7, %p5711_p6 }
 0x12c   :  { %5719 = shalt.err (!%p5716_p8)
}
 0x12d   :  { %s5720_s14 = scalar_lea.vmem %s394_s20, 16  ;;  %s5724_s18 = scalar_lea.vmem %s394_s20, 32 }
 0x12e   :  { %p5721_p9 = scmp.ne.s32.totalorder %s394_s20, %s5720_s14  ;;  %p5725_p10 = scmp.lt.s32.totalorder %s394_s20, %s394_s20 }
 0x12f   :  { %p5726_p11 = scmp.lt.s32.totalorder %s5724_s18, %s5720_s14 }
 0x131   :  { %p5727_p12 = por %p5726_p11, %p5725_p10 }
 0x133   :  { %p5728_p13 = pnand %p5727_p12, %p5721_p9 }
 0x135   :  { %5731 = shalt.err (!%p5728_p13)
}
 0x136   :  { %s7040_s22 = sld [smem:[#allocation85_spill]]  ;;  %s6216_s23 = smov [#allocation46]  }
 0x137   :  { %396 = dma.hbm_to_vmem [thread:$0]  %s6397_s29, 16, %s394_s20, [#allocation44]  }
 0x138   :  { %s412_s8 = sshll.u32 %s6216_s23, 4  ;;  %s6217_s5 = smov [#allocation2]   ;;  %s413_s8 = int_to_ptr.vmem [resolvable:$true] %s412_s8 }
 0x139   :  { %s103_s0 = sshll.u32 %s6217_s5, 4  ;;  %s104_s0 = int_to_ptr.vmem [resolvable:$true] %s103_s0 }
 0x13c   :  { %s5732_s28 = scalar_lea.hbm %s7040_s22, 2048 }
 0x13d   :  { %p5733_p0 = scmp.ne.s32.totalorder %s7040_s22, %s5732_s28  ;;  %p5736_p1 = scmp.lt.u32.totalorder %s5732_s28, %s7040_s22 }
 0x13f   :  { %p5738_p2 = pnand %p5736_p1, %p5733_p0 }
 0x141   :  { %5741 = shalt.err (!%p5738_p2)
}
 0x142   :  { %s5742_s24 = scalar_lea.vmem %s413_s8, 2048  ;;  %p5747_p4 = scmp.lt.s32.totalorder %s413_s8, %s413_s8 }
 0x143   :  { %p5743_p3 = scmp.ne.s32.totalorder %s413_s8, %s5742_s24  ;;  %p5748_p5 = scmp.lt.s32.totalorder %s5742_s24, %s5742_s24 }
 0x145   :  { %p5749_p6 = por %p5748_p5, %p5747_p4 }
 0x147   :  { %p5750_p7 = pnand %p5749_p6, %p5743_p3 }
 0x149   :  { %5753 = shalt.err (!%p5750_p7)
}
 0x14a   :  { %s7041_s29 = sld [smem:[#allocation69_spill]] }
 0x14b   :  { %418 = dma.hbm_to_vmem [thread:$0]  %s7040_s22, 2048, %s413_s8, [#allocation47], %s6210_s4, %s6210_s4, %s6211_s17  }
 0x150   :  { %s5754_s1 = scalar_lea.hbm %s7041_s29, 32 }
 0x151   :  { %p5755_p8 = scmp.ne.s32.totalorder %s7041_s29, %s5754_s1  ;;  %p5758_p9 = scmp.lt.u32.totalorder %s5754_s1, %s7041_s29 }
 0x153   :  { %p5760_p10 = pnand %p5758_p9, %p5755_p8 }
 0x155   :  { %5763 = shalt.err (!%p5760_p10)
}
 0x156   :  { %s5764_s2 = scalar_lea.vmem %s104_s0, 32  ;;  %p5769_p12 = scmp.lt.s32.totalorder %s104_s0, %s104_s0 }
 0x157   :  { %p5765_p11 = scmp.ne.s32.totalorder %s104_s0, %s5764_s2  ;;  %p5770_p13 = scmp.lt.s32.totalorder %s5764_s2, %s5764_s2 }
 0x159   :  { %p5771_p0 = por %p5770_p13, %p5769_p12 }
 0x15b   :  { %p5772_p1 = pnand %p5771_p0, %p5765_p11 }
 0x15d   :  { %5775 = shalt.err (!%p5772_p1)
}
 0x15e   :  { %s7042_s12 = sld [smem:[#allocation71_spill]]  ;;  %s6218_s6 = smov [#allocation6]  }
 0x15f   :  { %106 = dma.hbm_to_vmem [thread:$0]  %s7041_s29, 32, %s104_s0, [#allocation3]  }
 0x160   :  { %s125_s7 = sshll.u32 %s6218_s6, 4  ;;  %s6219_s10 = smov [#allocation9]   ;;  %s126_s7 = int_to_ptr.vmem [resolvable:$true] %s125_s7 }
 0x161   :  { %s144_s30 = sshll.u32 %s6219_s10, 4  ;;  %s6520_s30 = int_to_ptr.vmem [resolvable:$true] %s144_s30 }
 0x164   :  { %s5776_s11 = scalar_lea.hbm %s7042_s12, 16 }
 0x165   :  { %p5777_p2 = scmp.ne.s32.totalorder %s7042_s12, %s5776_s11  ;;  %p5780_p3 = scmp.lt.u32.totalorder %s5776_s11, %s7042_s12 }
 0x167   :  { %p5782_p4 = pnand %p5780_p3, %p5777_p2 }
 0x169   :  { %5785 = shalt.err (!%p5782_p4)
}
 0x16a   :  { %s5786_s20 = scalar_lea.vmem %s126_s7, 16  ;;  %s5790_s3 = scalar_lea.vmem %s126_s7, 32 }
 0x16b   :  { %p5787_p5 = scmp.ne.s32.totalorder %s126_s7, %s5786_s20  ;;  %p5791_p6 = scmp.lt.s32.totalorder %s126_s7, %s126_s7 }
 0x16c   :  { %p5792_p7 = scmp.lt.s32.totalorder %s5790_s3, %s5786_s20 }
 0x16e   :  { %p5793_p8 = por %p5792_p7, %p5791_p6 }
 0x170   :  { %p5794_p9 = pnand %p5793_p8, %p5787_p5 }
 0x172   :  { %5797 = shalt.err (!%p5794_p9)
}
 0x173   :  { %s7043_s15 = sld [smem:[#allocation72_spill]] }
 0x174   :  { %128 = dma.hbm_to_vmem [thread:$0]  %s7042_s12, 16, %s126_s7, [#allocation5]  }
 0x179   :  { %s5798_s16 = scalar_lea.hbm %s7043_s15, 2048 }
 0x17a   :  { %p5799_p10 = scmp.ne.s32.totalorder %s7043_s15, %s5798_s16  ;;  %p5802_p11 = scmp.lt.u32.totalorder %s5798_s16, %s7043_s15 }
 0x17c   :  { %p5804_p12 = pnand %p5802_p11, %p5799_p10 }
 0x17e   :  { %5807 = shalt.err (!%p5804_p12)
}
 0x17f   :  { %s5808_s19 = scalar_lea.vmem %s6520_s30, 2048  ;;  %p5813_p0 = scmp.lt.s32.totalorder %s6520_s30, %s6520_s30 }
 0x180   :  { %p5809_p13 = scmp.ne.s32.totalorder %s6520_s30, %s5808_s19  ;;  %p5814_p1 = scmp.lt.s32.totalorder %s5808_s19, %s5808_s19 }
 0x182   :  { %p5815_p2 = por %p5814_p1, %p5813_p0 }
 0x184   :  { %p5816_p3 = pnand %p5815_p2, %p5809_p13 }
 0x186   :  { %5819 = shalt.err (!%p5816_p3)
}
 0x187   :  { %s7044_s14 = sld [smem:[#allocation73_spill]]  ;;  %s6220_s18 = smov [#allocation12]  }
 0x188   :  { %150 = dma.hbm_to_vmem [thread:$0]  %s7043_s15, 2048, %s6520_s30, [#allocation8], %s6210_s4, %s6210_s4, %s6211_s17  }
 0x189   :  { %s168_s22 = sshll.u32 %s6220_s18, 4  ;;  %s6221_s23 = smov [#allocation15]   ;;  %s169_s22 = int_to_ptr.vmem [resolvable:$true] %s168_s22 }
 0x18a   :  { %s191_s8 = sshll.u32 %s6221_s23, 4  ;;  %s192_s8 = int_to_ptr.vmem [resolvable:$true] %s191_s8 }
 0x18d   :  { %s5820_s5 = scalar_lea.hbm %s7044_s14, 1024 }
 0x18e   :  { %p5821_p4 = scmp.ne.s32.totalorder %s7044_s14, %s5820_s5  ;;  %p5824_p5 = scmp.lt.u32.totalorder %s5820_s5, %s7044_s14 }
 0x190   :  { %p5826_p6 = pnand %p5824_p5, %p5821_p4 }
 0x192   :  { %5829 = shalt.err (!%p5826_p6)
}
 0x193   :  { %s5830_s0 = scalar_lea.vmem %s169_s22, 1024  ;;  %p5835_p8 = scmp.lt.s32.totalorder %s169_s22, %s169_s22 }
 0x194   :  { %p5831_p7 = scmp.ne.s32.totalorder %s169_s22, %s5830_s0  ;;  %p5836_p9 = scmp.lt.s32.totalorder %s5830_s0, %s5830_s0 }
 0x196   :  { %p5837_p10 = por %p5836_p9, %p5835_p8 }
 0x198   :  { %p5838_p11 = pnand %p5837_p10, %p5831_p7 }
 0x19a   :  { %5841 = shalt.err (!%p5838_p11)
}
 0x19b   :  { %s7045_s28 = sld [smem:[#allocation74_spill]] }
 0x19c   :  { %174 = dma.hbm_to_vmem [thread:$0]  %s7044_s14, 1024, %s169_s22, [#allocation11], %s6201_s26, %s6201_s26, %s6202_s25  }
 0x1a1   :  { %s5842_s24 = scalar_lea.hbm %s7045_s28, 16 }
 0x1a2   :  { %p5843_p12 = scmp.ne.s32.totalorder %s7045_s28, %s5842_s24  ;;  %p5846_p13 = scmp.lt.u32.totalorder %s5842_s24, %s7045_s28 }
 0x1a4   :  { %p5848_p0 = pnand %p5846_p13, %p5843_p12 }
 0x1a6   :  { %5851 = shalt.err (!%p5848_p0)
}
 0x1a7   :  { %s5852_s29 = scalar_lea.vmem %s192_s8, 16  ;;  %s5856_s1 = scalar_lea.vmem %s192_s8, 32 }
 0x1a8   :  { %p5853_p1 = scmp.ne.s32.totalorder %s192_s8, %s5852_s29  ;;  %p5857_p2 = scmp.lt.s32.totalorder %s192_s8, %s192_s8 }
 0x1a9   :  { %p5858_p3 = scmp.lt.s32.totalorder %s5856_s1, %s5852_s29 }
 0x1ab   :  { %p5859_p4 = por %p5858_p3, %p5857_p2 }
 0x1ad   :  { %p5860_p5 = pnand %p5859_p4, %p5853_p1 }
 0x1af   :  { %5863 = shalt.err (!%p5860_p5)
}
 0x1b0   :  { %s7046_s2 = sld [smem:[#allocation75_spill]]  ;;  %s6222_s12 = smov [#allocation18]  }
 0x1b1   :  { %194 = dma.hbm_to_vmem [thread:$0]  %s7045_s28, 16, %s192_s8, [#allocation14]  }
 0x1b2   :  { %s211_s6 = sshll.u32 %s6222_s12, 4  ;;  %s6223_s7 = smov [#allocation21]   ;;  %s212_s6 = int_to_ptr.vmem [resolvable:$true] %s211_s6 }
 0x1b3   :  { %s231_s10 = sshll.u32 %s6223_s7, 4  ;;  %s232_s10 = int_to_ptr.vmem [resolvable:$true] %s231_s10 }
 0x1b6   :  { %s5864_s30 = scalar_lea.hbm %s7046_s2, 16 }
 0x1b7   :  { %p5865_p6 = scmp.ne.s32.totalorder %s7046_s2, %s5864_s30  ;;  %p5868_p7 = scmp.lt.u32.totalorder %s5864_s30, %s7046_s2 }
 0x1b9   :  { %p5870_p8 = pnand %p5868_p7, %p5865_p6 }
 0x1bb   :  { %5873 = shalt.err (!%p5870_p8)
}
 0x1bc   :  { %s5874_s11 = scalar_lea.vmem %s212_s6, 16  ;;  %s5878_s20 = scalar_lea.vmem %s212_s6, 32 }
 0x1bd   :  { %p5875_p9 = scmp.ne.s32.totalorder %s212_s6, %s5874_s11  ;;  %p5879_p10 = scmp.lt.s32.totalorder %s212_s6, %s212_s6 }
 0x1be   :  { %p5880_p11 = scmp.lt.s32.totalorder %s5878_s20, %s5874_s11 }
 0x1c0   :  { %p5881_p12 = por %p5880_p11, %p5879_p10 }
 0x1c2   :  { %p5882_p13 = pnand %p5881_p12, %p5875_p9 }
 0x1c4   :  { %5885 = shalt.err (!%p5882_p13)
}
 0x1c5   :  { %s7047_s3 = sld [smem:[#allocation76_spill]] }
 0x1c6   :  { %214 = dma.hbm_to_vmem [thread:$0]  %s7046_s2, 16, %s212_s6, [#allocation17]  }
 0x1cb   :  { %s5886_s15 = scalar_lea.hbm %s7047_s3, 16 }
 0x1cc   :  { %p5887_p0 = scmp.ne.s32.totalorder %s7047_s3, %s5886_s15  ;;  %p5890_p1 = scmp.lt.u32.totalorder %s5886_s15, %s7047_s3 }
 0x1ce   :  { %p5892_p2 = pnand %p5890_p1, %p5887_p0 }
 0x1d0   :  { %5895 = shalt.err (!%p5892_p2)
}
 0x1d1   :  { %s5896_s16 = scalar_lea.vmem %s232_s10, 16  ;;  %s5900_s19 = scalar_lea.vmem %s232_s10, 32 }
 0x1d2   :  { %p5897_p3 = scmp.ne.s32.totalorder %s232_s10, %s5896_s16  ;;  %p5901_p4 = scmp.lt.s32.totalorder %s232_s10, %s232_s10 }
 0x1d3   :  { %p5902_p5 = scmp.lt.s32.totalorder %s5900_s19, %s5896_s16 }
 0x1d5   :  { %p5903_p6 = por %p5902_p5, %p5901_p4 }
 0x1d7   :  { %p5904_p7 = pnand %p5903_p6, %p5897_p3 }
 0x1d9   :  { %5907 = shalt.err (!%p5904_p7)
}
 0x1da   :  { %s7048_s14 = sld [smem:[#allocation77_spill]]  ;;  %s6224_s18 = smov [#allocation24]  }
 0x1db   :  { %234 = dma.hbm_to_vmem [thread:$0]  %s7047_s3, 16, %s232_s10, [#allocation20]  }
 0x1dc   :  { %s251_s22 = sshll.u32 %s6224_s18, 4  ;;  %s6225_s23 = smov [#allocation27]   ;;  %s252_s22 = int_to_ptr.vmem [resolvable:$true] %s251_s22 }
 0x1dd   :  { %s272_s8 = sshll.u32 %s6225_s23, 4  ;;  %s6557_s8 = int_to_ptr.vmem [resolvable:$true] %s272_s8 }
 0x1e0   :  { %s5908_s5 = scalar_lea.hbm %s7048_s14, 48 }
 0x1e1   :  { %p5909_p8 = scmp.ne.s32.totalorder %s7048_s14, %s5908_s5  ;;  %p5912_p9 = scmp.lt.u32.totalorder %s5908_s5, %s7048_s14 }
 0x1e3   :  { %p5914_p10 = pnand %p5912_p9, %p5909_p8 }
 0x1e5   :  { %5917 = shalt.err (!%p5914_p10)
}
 0x1e6   :  { %s5918_s0 = scalar_lea.vmem %s252_s22, 48  ;;  %s5922_s28 = scalar_lea.vmem %s252_s22, 64 }
 0x1e7   :  { %p5919_p11 = scmp.ne.s32.totalorder %s252_s22, %s5918_s0  ;;  %p5923_p12 = scmp.lt.s32.totalorder %s252_s22, %s252_s22 }
 0x1e8   :  { %p5924_p13 = scmp.lt.s32.totalorder %s5922_s28, %s5918_s0 }
 0x1ea   :  { %p5925_p0 = por %p5924_p13, %p5923_p12 }
 0x1ec   :  { %p5926_p1 = pnand %p5925_p0, %p5919_p11 }
 0x1ee   :  { %5929 = shalt.err (!%p5926_p1)
}
 0x1ef   :  { %s7049_s24 = sld [smem:[#allocation78_spill]] }
 0x1f0   :  { %254 = dma.hbm_to_vmem [thread:$0]  %s7048_s14, 48, %s252_s22, [#allocation23]  }
 0x1f5   :  { %s5930_s29 = scalar_lea.hbm %s7049_s24, 3072 }
 0x1f6   :  { %p5931_p2 = scmp.ne.s32.totalorder %s7049_s24, %s5930_s29  ;;  %p5934_p3 = scmp.lt.u32.totalorder %s5930_s29, %s7049_s24 }
 0x1f8   :  { %p5936_p4 = pnand %p5934_p3, %p5931_p2 }
 0x1fa   :  { %5939 = shalt.err (!%p5936_p4)
}
 0x1fb   :  { %s5940_s1 = scalar_lea.vmem %s6557_s8, 3072  ;;  %p5945_p6 = scmp.lt.s32.totalorder %s6557_s8, %s6557_s8 }
 0x1fc   :  { %p5941_p5 = scmp.ne.s32.totalorder %s6557_s8, %s5940_s1  ;;  %p5946_p7 = scmp.lt.s32.totalorder %s5940_s1, %s5940_s1 }
 0x1fe   :  { %p5947_p8 = por %p5946_p7, %p5945_p6 }
 0x200   :  { %p5948_p9 = pnand %p5947_p8, %p5941_p5 }
 0x202   :  { %5951 = shalt.err (!%p5948_p9)
}
 0x203   :  { %s6226_s2 = smov 192   ;;  %s7050_s12 = sld [smem:[#allocation79_spill]] }
 0x204   :  { %s6227_s6 = smov 12   ;;  %s6228_s7 = smov [#allocation30]  }
 0x205   :  { %278 = dma.hbm_to_vmem [thread:$0]  %s7049_s24, 3072, %s6557_s8, [#allocation26], %s6226_s2, %s6226_s2, %s6227_s6  }
 0x206   :  { %s296_s10 = sshll.u32 %s6228_s7, 4  ;;  %s6229_s30 = smov [#allocation33]   ;;  %s297_s10 = int_to_ptr.vmem [resolvable:$true] %s296_s10 }
 0x207   :  { %s320_s11 = sshll.u32 %s6229_s30, 4  ;;  %s6575_s11 = int_to_ptr.vmem [resolvable:$true] %s320_s11 }
 0x209   :  { %s5952_s20 = scalar_lea.hbm %s7050_s12, 2048 }
 0x20a   :  { %p5953_p10 = scmp.ne.s32.totalorder %s7050_s12, %s5952_s20  ;;  %p5956_p11 = scmp.lt.u32.totalorder %s5952_s20, %s7050_s12 }
 0x20c   :  { %p5958_p12 = pnand %p5956_p11, %p5953_p10 }
 0x20e   :  { %5961 = shalt.err (!%p5958_p12)
}
 0x20f   :  { %s5962_s3 = scalar_lea.vmem %s297_s10, 2048  ;;  %p5967_p0 = scmp.lt.s32.totalorder %s297_s10, %s297_s10 }
 0x210   :  { %p5963_p13 = scmp.ne.s32.totalorder %s297_s10, %s5962_s3  ;;  %p5968_p1 = scmp.lt.s32.totalorder %s5962_s3, %s5962_s3 }
 0x212   :  { %p5969_p2 = por %p5968_p1, %p5967_p0 }
 0x214   :  { %p5970_p3 = pnand %p5969_p2, %p5963_p13 }
 0x216   :  { %5973 = shalt.err (!%p5970_p3)
}
 0x217   :  { %s7051_s15 = sld [smem:[#allocation80_spill]] }
 0x218   :  { %302 = dma.hbm_to_vmem [thread:$0]  %s7050_s12, 2048, %s297_s10, [#allocation29], %s6201_s26, %s6201_s26, %s6202_s25  }
 0x21d   :  { %s5974_s16 = scalar_lea.hbm %s7051_s15, 2048 }
 0x21e   :  { %p5975_p4 = scmp.ne.s32.totalorder %s7051_s15, %s5974_s16  ;;  %p5978_p5 = scmp.lt.u32.totalorder %s5974_s16, %s7051_s15 }
 0x220   :  { %p5980_p6 = pnand %p5978_p5, %p5975_p4 }
 0x222   :  { %5983 = shalt.err (!%p5980_p6)
}
 0x223   :  { %s5984_s19 = scalar_lea.vmem %s6575_s11, 2048  ;;  %p5989_p8 = scmp.lt.s32.totalorder %s6575_s11, %s6575_s11 }
 0x224   :  { %p5985_p7 = scmp.ne.s32.totalorder %s6575_s11, %s5984_s19  ;;  %p5990_p9 = scmp.lt.s32.totalorder %s5984_s19, %s5984_s19 }
 0x226   :  { %p5991_p10 = por %p5990_p9, %p5989_p8 }
 0x228   :  { %p5992_p11 = pnand %p5991_p10, %p5985_p7 }
 0x22a   :  { %5995 = shalt.err (!%p5992_p11)
}
 0x22b   :  { %s7052_s14 = sld [smem:[#allocation81_spill]]  ;;  %s6230_s18 = smov [#allocation36]  }
 0x22c   :  { %326 = dma.hbm_to_vmem [thread:$0]  %s7051_s15, 2048, %s6575_s11, [#allocation32], %s6210_s4, %s6210_s4, %s6211_s17  }
 0x22d   :  { %s343_s22 = sshll.u32 %s6230_s18, 4  ;;  %s6231_s23 = smov [#allocation39]   ;;  %s344_s22 = int_to_ptr.vmem [resolvable:$true] %s343_s22 }
 0x22e   :  { %s363_s8 = sshll.u32 %s6231_s23, 4  ;;  %s364_s8 = int_to_ptr.vmem [resolvable:$true] %s363_s8 }
 0x231   :  { %s5996_s5 = scalar_lea.hbm %s7052_s14, 16 }
 0x232   :  { %p5997_p12 = scmp.ne.s32.totalorder %s7052_s14, %s5996_s5  ;;  %p6000_p13 = scmp.lt.u32.totalorder %s5996_s5, %s7052_s14 }
 0x234   :  { %p6002_p0 = pnand %p6000_p13, %p5997_p12 }
 0x236   :  { %6005 = shalt.err (!%p6002_p0)
}
 0x237   :  { %s6006_s0 = scalar_lea.vmem %s344_s22, 16  ;;  %s6010_s28 = scalar_lea.vmem %s344_s22, 32 }
 0x238   :  { %p6007_p1 = scmp.ne.s32.totalorder %s344_s22, %s6006_s0  ;;  %p6011_p2 = scmp.lt.s32.totalorder %s344_s22, %s344_s22 }
 0x239   :  { %p6012_p3 = scmp.lt.s32.totalorder %s6010_s28, %s6006_s0 }
 0x23b   :  { %p6013_p4 = por %p6012_p3, %p6011_p2 }
 0x23d   :  { %p6014_p5 = pnand %p6013_p4, %p6007_p1 }
 0x23f   :  { %6017 = shalt.err (!%p6014_p5)
}
 0x240   :  { %s7053_s4 = sld [smem:[#allocation82_spill]] }
 0x241   :  { %346 = dma.hbm_to_vmem [thread:$0]  %s7052_s14, 16, %s344_s22, [#allocation35]  }
 0x246   :  { %s6018_s17 = scalar_lea.hbm %s7053_s4, 48 }
 0x247   :  { %p6019_p6 = scmp.ne.s32.totalorder %s7053_s4, %s6018_s17  ;;  %p6022_p7 = scmp.lt.u32.totalorder %s6018_s17, %s7053_s4 }
 0x249   :  { %p6024_p8 = pnand %p6022_p7, %p6019_p6 }
 0x24b   :  { %6027 = shalt.err (!%p6024_p8)
}
 0x24c   :  { %s6028_s24 = scalar_lea.vmem %s364_s8, 48  ;;  %s6032_s29 = scalar_lea.vmem %s364_s8, 64 }
 0x24d   :  { %p6029_p9 = scmp.ne.s32.totalorder %s364_s8, %s6028_s24  ;;  %p6033_p10 = scmp.lt.s32.totalorder %s364_s8, %s364_s8 }
 0x24e   :  { %p6034_p11 = scmp.lt.s32.totalorder %s6032_s29, %s6028_s24 }
 0x250   :  { %p6035_p12 = por %p6034_p11, %p6033_p10 }
 0x252   :  { %p6036_p13 = pnand %p6035_p12, %p6029_p9 }
 0x254   :  { %6039 = shalt.err (!%p6036_p13)
}
 0x255   :  { %s7054_s1 = sld [smem:[#allocation83_spill]]  ;;  %s6232_s12 = smov [#allocation42]  }
 0x256   :  { %366 = dma.hbm_to_vmem [thread:$0]  %s7053_s4, 48, %s364_s8, [#allocation38]  }
 0x257   :  { %s383_s7 = sshll.u32 %s6232_s12, 4  ;;  %s6233_s10 = smov [#allocation45]   ;;  %s384_s7 = int_to_ptr.vmem [resolvable:$true] %s383_s7 }
 0x258   :  { %s403_s30 = sshll.u32 %s6233_s10, 4  ;;  %s404_s30 = int_to_ptr.vmem [resolvable:$true] %s403_s30 }
 0x25b   :  { %s6040_s11 = scalar_lea.hbm %s7054_s1, 16 }
 0x25c   :  { %p6041_p0 = scmp.ne.s32.totalorder %s7054_s1, %s6040_s11  ;;  %p6044_p1 = scmp.lt.u32.totalorder %s6040_s11, %s7054_s1 }
 0x25e   :  { %p6046_p2 = pnand %p6044_p1, %p6041_p0 }
 0x260   :  { %6049 = shalt.err (!%p6046_p2)
}
 0x261   :  { %s6050_s20 = scalar_lea.vmem %s384_s7, 16  ;;  %s6054_s3 = scalar_lea.vmem %s384_s7, 32 }
 0x262   :  { %p6051_p3 = scmp.ne.s32.totalorder %s384_s7, %s6050_s20  ;;  %p6055_p4 = scmp.lt.s32.totalorder %s384_s7, %s384_s7 }
 0x263   :  { %p6056_p5 = scmp.lt.s32.totalorder %s6054_s3, %s6050_s20 }
 0x265   :  { %p6057_p6 = por %p6056_p5, %p6055_p4 }
 0x267   :  { %p6058_p7 = pnand %p6057_p6, %p6051_p3 }
 0x269   :  { %6061 = shalt.err (!%p6058_p7)
}
 0x26a   :  { %s7055_s15 = sld [smem:[#allocation84_spill]] }
 0x26b   :  { %386 = dma.hbm_to_vmem [thread:$0]  %s7054_s1, 16, %s384_s7, [#allocation41]  }
 0x270   :  { %s6062_s16 = scalar_lea.hbm %s7055_s15, 16 }
 0x271   :  { %p6063_p8 = scmp.ne.s32.totalorder %s7055_s15, %s6062_s16  ;;  %p6066_p9 = scmp.lt.u32.totalorder %s6062_s16, %s7055_s15 }
 0x273   :  { %p6068_p10 = pnand %p6066_p9, %p6063_p8 }
 0x275   :  { %6071 = shalt.err (!%p6068_p10)
}
 0x276   :  { %s6072_s19 = scalar_lea.vmem %s404_s30, 16  ;;  %s6076_s14 = scalar_lea.vmem %s404_s30, 32 }
 0x277   :  { %p6073_p11 = scmp.ne.s32.totalorder %s404_s30, %s6072_s19  ;;  %p6077_p12 = scmp.lt.s32.totalorder %s404_s30, %s404_s30 }
 0x278   :  { %p6078_p13 = scmp.lt.s32.totalorder %s6076_s14, %s6072_s19 }
 0x27a   :  { %p6079_p0 = por %p6078_p13, %p6077_p12 }
 0x27c   :  { %p6080_p1 = pnand %p6079_p0, %p6073_p11 }
 0x27e   :  { %6083 = shalt.err (!%p6080_p1)
}
 0x27f   :  { %406 = dma.hbm_to_vmem [thread:$0]  %s7055_s15, 16, %s404_s30, [#allocation44]  }
 0x280   :  { %s6234_s18 = smov [#allocation48]   ;;  %s6235_s23 = smov [#allocation49]  }
 0x281   :  { %s426_s22 = sshll.u32 %s6234_s18, 4  ;;  %s438_s8 = sshll.u32 %s6235_s23, 4  ;;  %s427_s22 = int_to_ptr.vmem [resolvable:$true] %s426_s22  ;;  %s6612_s8 = int_to_ptr.vmem [resolvable:$true] %s438_s8 }
 0x282   :  { %s6084_s5 = scalar_lea.hbm %s6417_s9, 1024 }
 0x283   :  { %p6085_p2 = scmp.ne.s32.totalorder %s6417_s9, %s6084_s5  ;;  %p6088_p3 = scmp.lt.u32.totalorder %s6084_s5, %s6417_s9 }
 0x285   :  { %p6090_p4 = pnand %p6088_p3, %p6085_p2 }
 0x287   :  { %6093 = shalt.err (!%p6090_p4)
}
 0x288   :  { %s6094_s0 = scalar_lea.vmem %s427_s22, 1024  ;;  %p6099_p6 = scmp.lt.s32.totalorder %s427_s22, %s427_s22 }
 0x289   :  { %p6095_p5 = scmp.ne.s32.totalorder %s427_s22, %s6094_s0  ;;  %p6100_p7 = scmp.lt.s32.totalorder %s6094_s0, %s6094_s0 }
 0x28b   :  { %p6101_p8 = por %p6100_p7, %p6099_p6 }
 0x28d   :  { %p6102_p9 = pnand %p6101_p8, %p6095_p5 }
 0x28f   :  { %6105 = shalt.err (!%p6102_p9)
}
 0x290   :  { %432 = dma.hbm_to_vmem [thread:$0]  %s6417_s9, 1024, %s427_s22, [#allocation47], %s6201_s26, %s6201_s26, %s6202_s25  }
 0x291   :  { %s6106_s28 = scalar_lea.hbm %s6422_s13, 3072 }
 0x292   :  { %p6107_p10 = scmp.ne.s32.totalorder %s6422_s13, %s6106_s28  ;;  %p6110_p11 = scmp.lt.u32.totalorder %s6106_s28, %s6422_s13 }
 0x294   :  { %p6112_p12 = pnand %p6110_p11, %p6107_p10 }
 0x296   :  { %6115 = shalt.err (!%p6112_p12)
}
 0x297   :  { %s6116_s4 = scalar_lea.vmem %s6612_s8, 3072  ;;  %p6121_p0 = scmp.lt.s32.totalorder %s6612_s8, %s6612_s8 }
 0x298   :  { %p6117_p13 = scmp.ne.s32.totalorder %s6612_s8, %s6116_s4  ;;  %p6122_p1 = scmp.lt.s32.totalorder %s6116_s4, %s6116_s4 }
 0x29a   :  { %p6123_p2 = por %p6122_p1, %p6121_p0 }
 0x29c   :  { %p6124_p3 = pnand %p6123_p2, %p6117_p13 }
 0x29e   :  { %6127 = shalt.err (!%p6124_p3)
}
 0x29f   :  { %444 = dma.hbm_to_vmem [thread:$0]  %s6422_s13, 3072, %s6612_s8, [#allocation50], %s6226_s2, %s6226_s2, %s6227_s6  }
 0x2a0   :  { %6128 = dma.done.wait [#allocation3], 32  }
 0x2a1   :  { %6129 = vsyncadd [#allocation3], 4294967264 }
 0x2a2   :  { %6130 = dma.done.wait [#allocation5], 48  }
 0x2a3   :  { %6131 = vsyncadd [#allocation5], 4294967248 }
 0x2a4   :  { %6132 = dma.done.wait [#allocation8], 2064  }
 0x2a5   :  { %6133 = vsyncadd [#allocation8], 4294965232 }
 0x2a6   :  { %6134 = dma.done.wait [#allocation11], 2048  }
 0x2a7   :  { %6135 = vsyncadd [#allocation11], 4294965248 }
 0x2a8   :  { %6136 = dma.done.wait [#allocation14], 32  }
 0x2a9   :  { %6137 = vsyncadd [#allocation14], 4294967264 }
 0x2aa   :  { %6138 = dma.done.wait [#allocation17], 32  }
 0x2ab   :  { %6139 = vsyncadd [#allocation17], 4294967264 }
 0x2ac   :  { %6140 = dma.done.wait [#allocation20], 32  }
 0x2ad   :  { %6141 = vsyncadd [#allocation20], 4294967264 }
 0x2ae   :  { %6142 = dma.done.wait [#allocation23], 64  }
 0x2af   :  { %6143 = vsyncadd [#allocation23], 4294967232 }
 0x2b0   :  { %6144 = dma.done.wait [#allocation26], 4096  }
 0x2b1   :  { %6145 = vsyncadd [#allocation26], 4294963200 }
 0x2b2   :  { %6146 = dma.done.wait [#allocation29], 4096  }
 0x2b3   :  { %6147 = vsyncadd [#allocation29], 4294963200 }
 0x2b4   :  { %6148 = dma.done.wait [#allocation32], 4096  }
 0x2b5   :  { %6149 = vsyncadd [#allocation32], 4294963200 }
 0x2b6   :  { %6150 = dma.done.wait [#allocation35], 48  }
 0x2b7   :  { %6151 = vsyncadd [#allocation35], 4294967248 }
 0x2b8   :  { %6152 = dma.done.wait [#allocation38], 64  }
 0x2b9   :  { %6153 = vsyncadd [#allocation38], 4294967232 }
 0x2ba   :  { %6154 = dma.done.wait [#allocation41], 32  }
 0x2bb   :  { %6155 = vsyncadd [#allocation41], 4294967264 }
 0x2bc   :  { %6156 = dma.done.wait [#allocation44], 32  }
 0x2bd   :  { %6157 = vsyncadd [#allocation44], 4294967264 }
 0x2be   :  { %6158 = dma.done.wait [#allocation47], 3072  }
 0x2bf   :  { %6159 = vsyncadd [#allocation47], 4294964224 }
 0x2c0   :  { %6160 = dma.done.wait [#allocation50], 3072  }
 0x2c1   :  { %6161 = vsyncadd [#allocation50], 4294964224  ;;  %s7056_s9 = sld [smem:[#allocation68_spill]]  ;;  %v6236_v0 = vmov 0   ;;  %v5102_v2 = vld [vmem:[#allocation31 + $0x40] sm:$0xff]   ;;  %v5104_v4 = vld [vmem:[#allocation31 + $0x48] sm:$0xff]   ;;  %v854_v31 = vlaneseq }
 0x2c2   :  { %5101 = vset.pattern.permute.xlu0 %v6236_v0  ;;  %1184 = vmatprep.mubr.bf16.mxu1 %v6236_v0  ;;  %v5103_v3 = vld [vmem:[#allocation31] sm:$0xff]   ;;  %v5105_v5 = vld [vmem:[#allocation31 + $0x8] sm:$0xff]   ;;  %v5106_v6 = vld [vmem:[#allocation31 + $0x50] sm:$0xff]   ;;  %v6237_v29 = vmov 0.0   ;;  %v6238_v36 = vmov 1.0|1.0  }
 0x2c3   :  { %4565 = vmatprep.subr.bf16.mxu0 %v5102_v2  ;;  %v5107_v7 = vld [vmem:[#allocation31 + $0x10] sm:$0xff]   ;;  %v5108_v8 = vld [vmem:[#allocation31 + $0x58] sm:$0xff]   ;;  %v5110_v10 = vld [vmem:[#allocation31 + $0x60] sm:$0xff]   ;;  %v6637_v32 = vand.u32 127, %v854_v31  ;;  %vm6239_vm4 = vmmov 0   ;;  %v6669_v57 = vshrl.u32 %v854_v31, 7 }
 0x2c4   :  { %4566 = vmatpush3.bf16.msra.mxu0 %v5103_v3  ;;  %v5109_v9 = vld [vmem:[#allocation31 + $0x18] sm:$0xff]   ;;  %v5111_v11 = vld [vmem:[#allocation31 + $0x20] sm:$0xff]   ;;  %v5112_v12 = vld [vmem:[#allocation31 + $0x68] sm:$0xff]   ;;  %vm1237_vm5 = vcmask 261120   ;;  %s6240_s13 = smov 96   ;;  %vm1300_vm6 = vcmask 1043456  }
 0x2c5   :  { %4567 = vmatprep.subr.bf16.mxu0 %v5104_v4  ;;  %v5118_v13 = vld [vmem:[#allocation49 + $0x4] ss:$12 sps:$4 sm:$0xff]   ;;  %v5120_v14 = vld [vmem:[#allocation49] ss:$12 sps:$4 sm:$0xff]   ;;  %v5113_v15 = vld [vmem:[#allocation31 + $0x28] sm:$0xff]   ;;  %v6640_v33 = vadd.s32 128, %v6637_v32  ;;  %vm2189_vm12 = vcmp.ge.s32.totalorder %v6669_v57, %v6637_v32 }
 0x2c6   :  { %v5114_v16 = vld [vmem:[#allocation31 + $0x70] sm:$0xff]   ;;  %1152 = vmatprep.subr.bf16.mxu1 %v5118_v13  ;;  %v5116_v21 = vld [vmem:[#allocation31 + $0x78] sm:$0xff]   ;;  %v6658_v52 = vld [vmem:[%s6427_s21] sm:$0xff]  ;;  %v6672_v58 = vsub.s32 1, %v6669_v57  ;;  %v6675_v60 = vsub.s32 0, %v6669_v57  ;;  %v1019_v61 = vsub.s32 2, %v6669_v57 }
 0x2c7   :  { %v857_v1 = vld [vmem:[%s7056_s9] sm:$0xff]  ;;  %v5122_v17 = vld [vmem:[#allocation49 + $0x1c] ss:$12 sps:$4 sm:$0xff]   ;;  %1153 = vmatpush1.bf16.msra.mxu1 %v5120_v14  ;;  %v5134_v26 = vld [vmem:[#allocation49 + $0x64] ss:$12 sps:$4 sm:$0xff]   ;;  %vm1284_vm7 = vcmask 64512  }
 0x2c8   :  { %859 = vperm.xlu0 %5101, %v857_v1   ;;  %4568 = vmatpush3.bf16.msra.mxu0 %v5105_v5  ;;  %v5124_v18 = vld [vmem:[#allocation49 + $0x18] ss:$12 sps:$4 sm:$0xff]   ;;  %v5126_v19 = vld [vmem:[#allocation49 + $0x34] ss:$12 sps:$4 sm:$0xff]   ;;  %v5128_v22 = vld [vmem:[#allocation49 + $0x30] ss:$12 sps:$4 sm:$0xff]  }
 0x2c9   :  { %4569 = vmatprep.subr.bf16.mxu0 %v5106_v6  ;;  %1154 = vmatprep.subr.bf16.mxu1 %v5122_v17  ;;  %v5115_v20 = vld [vmem:[#allocation31 + $0x30] sm:$0xff]   ;;  %v5130_v23 = vld [vmem:[#allocation49 + $0x4c] ss:$12 sps:$4 sm:$0xff]   ;;  %v5132_v25 = vld [vmem:[#allocation49 + $0x48] ss:$12 sps:$4 sm:$0xff]   ;;  %s6241_s21 = smov 32  }
 0x2ca   :  { %v5117_v24 = vld [vmem:[#allocation31 + $0x38] sm:$0xff]   ;;  %v5133_v39 = vld [vmem:[#allocation49 + $0x50] ss:$12 sps:$4 sm:$0xff]   ;;  %v5142_v42 = vld [vmem:[#allocation49 + $0x94] ss:$12 sps:$4 sm:$0xff]   ;;  %vm1690_vm8 = vcmask 523264  }
 0x2cb   :  { %1155 = vmatpush1.bf16.msra.mxu1 %v5124_v18  ;;  %v5136_v27 = vld [vmem:[#allocation49 + $0x60] ss:$12 sps:$4 sm:$0xff]   ;;  %v5138_v28 = vld [vmem:[#allocation49 + $0x7c] ss:$12 sps:$4 sm:$0xff]   ;;  %v5140_v30 = vld [vmem:[#allocation49 + $0x78] ss:$12 sps:$4 sm:$0xff]  }
 0x2cc   :  { %4570 = vmatpush3.bf16.msra.mxu0 %v5107_v7  ;;  %1156 = vmatprep.subr.bf16.mxu1 %v5126_v19  ;;  %v5121_v35 = vld [vmem:[#allocation49 + $0x8] ss:$12 sps:$4 sm:$0xff]   ;;  %v5125_v37 = vld [vmem:[#allocation49 + $0x20] ss:$12 sps:$4 sm:$0xff]   ;;  %v5129_v38 = vld [vmem:[#allocation49 + $0x38] ss:$12 sps:$4 sm:$0xff]  }
 0x2cd   :  { %4571 = vmatprep.subr.bf16.mxu0 %v5108_v8  ;;  %v5137_v40 = vld [vmem:[#allocation49 + $0x68] ss:$12 sps:$4 sm:$0xff]   ;;  %v5141_v41 = vld [vmem:[#allocation49 + $0x80] ss:$12 sps:$4 sm:$0xff]   ;;  %v5144_v43 = vld [vmem:[#allocation49 + $0x90] ss:$12 sps:$4 sm:$0xff]  }
 0x2ce   :  { %v5145_v44 = vld [vmem:[#allocation49 + $0x98] ss:$12 sps:$4 sm:$0xff]   ;;  %v5148_v46 = vld [vmem:[#allocation49 + $0xa8] ss:$12 sps:$4 sm:$0xff]   ;;  %v5149_v47 = vld [vmem:[#allocation49 + $0xb0] ss:$12 sps:$4 sm:$0xff]  }
 0x2cf   :  { %1157 = vmatpush1.bf16.msra.mxu1 %v5128_v22  ;;  %v5146_v45 = vld [vmem:[#allocation49 + $0xac] ss:$12 sps:$4 sm:$0xff]   ;;  %v752_v59 = vld [vmem:[#allocation39] sm:$0x7]  ;;  %vm1692_vm9 = vcmask 785408   ;;  %s7057_s25 = sld [smem:[#allocation86_spill]] }
 0x2d0   :  { %4572 = vmatpush3.bf16.msra.mxu0 %v5109_v9  ;;  %1158 = vmatprep.subr.bf16.mxu1 %v5130_v23  ;;  %v1016_v62 = vrot.slane %v752_v59, %v6672_v58  ;;  %v1012_v63 = vrot.slane %v752_v59, %v6675_v60  ;;  %v1020_v5 = vrot.slane %v752_v59, %v1019_v61  ;;  %vm2137_vm10 = vcmp.eq.s32.totalorder %v6637_v32, 0 }
 0x2d1   :  { %4573 = vmatprep.subr.bf16.mxu0 %v5110_v10  ;;  %vm4425_vm11 = vmpackc.low %vm2137_vm10, %vm2137_vm10 }
 0x2d3   :  { %1159 = vmatpush1.bf16.msra.mxu1 %v5132_v25 }
 0x2d4   :  { %4574 = vmatpush3.bf16.msra.mxu0 %v5111_v11  ;;  %1160 = vmatprep.subr.bf16.mxu1 %v5134_v26 }
 0x2d5   :  { %4575 = vmatprep.subr.bf16.mxu0 %v5112_v12 }
 0x2d7   :  { %1161 = vmatpush1.bf16.msra.mxu1 %v5136_v27 }
 0x2d8   :  { %4576 = vmatpush3.bf16.msra.mxu0 %v5113_v15  ;;  %1162 = vmatprep.subr.bf16.mxu1 %v5138_v28 }
 0x2d9   :  { %4577 = vmatprep.subr.bf16.mxu0 %v5114_v16 }
 0x2db   :  { %1163 = vmatpush1.bf16.msra.mxu1 %v5140_v30 }
 0x2dc   :  { %4578 = vmatpush3.bf16.msra.mxu0 %v5115_v20  ;;  %1164 = vmatprep.subr.bf16.mxu1 %v5142_v42 }
 0x2dd   :  { %4579 = vmatprep.subr.bf16.mxu0 %v5116_v21 }
 0x2df   :  { %1165 = vmatpush1.bf16.msra.mxu1 %v5144_v43 }
 0x2e0   :  { %4580 = vmatpush3.bf16.msra.mxu0 %v5117_v24  ;;  %1166 = vmatprep.subr.bf16.mxu1 %v5146_v45 }
 0x2e1   :  { %4755 = vmatprep.subr.bf16.mxu0 %v6237_v29 }
 0x2e3   :  { %1167 = vmatpush1.bf16.msra.mxu1 %v5148_v46 }
 0x2e4   :  { %4775 = vmatprep.subr.bf16.mxu1 %v6237_v29 }
 0x347   :  { %v860_v34 = vpop.permute.xlu0 %859 }
 0x348   :  { %vm861_vm0 = vcmp.eq.s32.totalorder %v6637_v32, %v860_v34  ;;  %vm862_vm1 = vcmp.eq.s32.totalorder %v6640_v33, %v860_v34 }
 0x349   :  { %vm4344_vm2 = vmpackc.low %vm861_vm0, %vm861_vm0 }
 0x34a   :  { %vm4342_vm3 = vmpackc.low %vm862_vm1, %vm862_vm1  ;;  %vm4265_vm1 = vcmask 7168  }
 0x34b   :  { %4343 = vmatprep.mubr.msk.bf16.mxu0 %vm4342_vm3, %v6238_v36 }
 0x34c   :  { %4345 = vmatmul.mubr.msk.bf16.vlgmr.msra.gmra.mrb[0].mxu0 %vm4344_vm2, %v6238_v36 }
 0x34d   :  { %4756 = vmatpush3.bf16.msra.mxu0 %v5121_v35  ;;  %4771 = vmatprep.mubr.msk.bf16.mxu0 %vm6239_vm4, %v6237_v29 }
 0x34e   :  { %4757 = vmatprep.subr.bf16.mxu0 %v6237_v29 }
 0x351   :  { %4758 = vmatpush3.bf16.msra.mxu0 %v5125_v37 }
 0x352   :  { %4759 = vmatprep.subr.bf16.mxu0 %v6237_v29 }
 0x355   :  { %4760 = vmatpush3.bf16.msra.mxu0 %v5129_v38 }
 0x356   :  { %4761 = vmatprep.subr.bf16.mxu0 %v6237_v29 }
 0x359   :  { %4762 = vmatpush3.bf16.msra.mxu0 %v5133_v39 }
 0x35a   :  { %4763 = vmatprep.subr.bf16.mxu0 %v6237_v29 }
 0x35d   :  { %4764 = vmatpush3.bf16.msra.mxu0 %v5137_v40 }
 0x35e   :  { %4765 = vmatprep.subr.bf16.mxu0 %v6237_v29 }
 0x361   :  { %4766 = vmatpush3.bf16.msra.mxu0 %v5141_v41 }
 0x362   :  { %4767 = vmatprep.subr.bf16.mxu0 %v6237_v29 }
 0x365   :  { %4768 = vmatpush3.bf16.msra.mxu0 %v5145_v44 }
 0x366   :  { %4769 = vmatprep.subr.bf16.mxu0 %v6237_v29 }
 0x369   :  { %4770 = vmatpush3.bf16.msra.mxu0 %v5149_v47 }
 0x36a   :  { %4799 = vmatprep.subr.bf16.mxu0 %v6237_v29 }
 0x41f   :  { %v4581_v48 = vpop.f32.mrb[0].mxu0 }
 0x420   :  { %v4582_v49 = vpop.f32.mrb[1].mxu0 }
 0x421   :  { %v4583_v50 = vadd.f32 %v4582_v49, %v4581_v48  ;;  %v4584_v51 = vpop.f32.mrb[2].mxu0 }
 0x422   :  { %v4585_v53 = vpop.f32.mrb[3].mxu0 }
 0x423   :  { %v1005_v54 = vmul.f32 11.313708, %v4583_v50 }
 0x425   :  { %v6661_v55 = vadd.f32 %v1005_v54, %v6658_v52 }
 0x427   :  { %v1007_v56 = vpack.c.bf16 %v6661_v55, %v6661_v55 }
 0x429   :  { %1185 = vmatmul.mubr.bf16.vlgmr.msra.gmra.mrb[0].mxu1 %v1007_v56  ;;  %4772 = vmatmul.mubr.bf16.vlgmr.msra.gmra.mrb[4].mxu0 %v1007_v56 }
 0x42a   :  { %4777 = vmatprep.mubr.msk.bf16.mxu1 %vm6239_vm4, %v6237_v29  ;;  %4801 = vmatprep.mubr.msk.bf16.mxu0 %vm6239_vm4, %v6237_v29 }
 0x4fc   :  { %v1186_v1 = vpop.f32.mrb[0].mxu1  ;;  %v1227_v2 = vpop.f32.mrb[4].mxu0 }
 0x4fd   :  { %v1188_v3 = vpop.f32.mrb[1].mxu1  ;;  %v4773_v4 = vpop.f32.mrb[5].mxu0  ;;  %v1187_v11 = vadd.f32 %v1186_v1, %v1012_v63  ;;  %v1228_v13 = vadd.f32 %v1227_v2, %v1020_v5 }
 0x4fe   :  { %v1189_v6 = vadd.f32 %v1188_v3, %v1016_v62  ;;  %v1190_v7 = vpop.f32.mrb[2].mxu1  ;;  %v1230_v8 = vpop.f32.mrb[6].mxu0 }
 0x4ff   :  { %v1191_v9 = vpop.f32.mrb[3].mxu1  ;;  %v4774_v10 = vpop.f32.mrb[7].mxu0  ;;  %v1233_v15 = vmul.f32 0.17677669, %v1187_v11  ;;  %v6685_v16 = vpack.c.bf16 %v1228_v13, %v1228_v13 }
 0x500   :  { %v1235_v12 = vpack.c.bf16 %v1189_v6, %v1189_v6 }
 0x501   :  { %v1234_v17 = vpack.c.bf16 %v1233_v15, %v1233_v15  ;;  %v1302_v18 = vsel %vm1300_vm6, %v6685_v16, 0 }
 0x502   :  { %1348 = vrot.lane.b32.xlu1 %v1235_v12, %s6240_s13  ;;  %v1242_v14 = vsel %vm1237_vm5, %v1235_v12, 0 }
 0x503   :  { %4776 = vmatpush3.bf16.xpose.msra.mxu1 %v1242_v14 }
 0x504   :  { %4781 = vmatprep.subr.bf16.mxu1 %v6237_v29 }
 0x50a   :  { %4778 = vmatmul.mubr.msk.bf16.vlgmr.msra.gmra.mrb[4].mxu1 %vm1237_vm5, %v1234_v17 }
 0x50b   :  { %4782 = vmatpush3.bf16.msra.mxu1 %v1302_v18  ;;  %4783 = vmatprep.mubr.msk.bf16.mxu1 %vm6239_vm4, %v6237_v29 }
 0x50c   :  { %4787 = vmatprep.subr.bf16.mxu1 %v6237_v29 }
 0x574   :  { %v1349_v30 = vpop.permute.xlu1 %1348 }
 0x575   :  { %v1354_v42 = vsel %vm1237_vm5, %v1349_v30, 0 }
 0x5dd   :  { %v1278_v19 = vpop.f32.mrb[4].mxu1 }
 0x5de   :  { %v4779_v20 = vpop.f32.mrb[5].mxu1  ;;  %v1285_v21 = vsel %vm1284_vm7, %v1278_v19, -inf }
 0x5df   :  { %1286 = vmax.xlane.f32.xlu0 %v1285_v21  ;;  %v1281_v22 = vpop.f32.mrb[6].mxu1 }
 0x5e0   :  { %v4780_v23 = vpop.f32.mrb[7].mxu1 }
 0x5f5   :  { %1567 = vrot.lane.b32.xlu0 %v1234_v17, %s6241_s21 }
 0x66c   :  { %v1287_v24 = vpop.xlane.xlu0 %1286 }
 0x66d   :  { %v1288_v25 = vsub.f32 %v1278_v19, %v1287_v24 }
 0x66f   :  { %v1289_v26 = vmul.f32 1.442695, %v1288_v25 }
 0x670   :  { %v1568_v45 = vpop.permute.xlu0 %1567 }
 0x671   :  { %5342 = vpow2.f32 %v1289_v26 }
 0x67b   :  { %v5343_v27 = vpop.eup %5342 }
 0x67c   :  { %v1291_v28 = vsel %vm1284_vm7, %v5343_v27, 0.0 }
 0x67d   :  { %1292 = vadd.xlane.f32.xlu1 %v1291_v28 }
 0x68e   :  { %1345 = vrot.lane.b32.xlu1 %v1234_v17, %s6240_s13 }
 0x692   :  { %1459 = vrot.lane.b32.xlu1 %v1235_v12, %s6201_s26 }
 0x696   :  { %1457 = vrot.lane.b32.xlu1 %v1234_v17, %s6201_s26 }
 0x69a   :  { %1569 = vrot.lane.b32.xlu1 %v1235_v12, %s6241_s21 }
 0x70a   :  { %v1293_v31 = vpop.xlane.xlu1 %1292 }
 0x70b   :  { %5344 = vrcp.f32 %v1293_v31 }
 0x70e   :  { %v1346_v34 = vpop.permute.xlu1 %1345 }
 0x712   :  { %v1460_v35 = vpop.permute.xlu1 %1459 }
 0x713   :  { %v1465_v37 = vsel %vm1237_vm5, %v1460_v35, 0 }
 0x714   :  { %4800 = vmatpush3.bf16.xpose.msra.mxu0 %v1465_v37 }
 0x715   :  { %v5345_v38 = vpop.eup %5344  ;;  %4811 = vmatprep.subr.bf16.mxu0 %v6237_v29 }
 0x716   :  { %v1295_v39 = vmul.f32 %v5345_v38, %v5343_v27  ;;  %v1458_v40 = vpop.permute.xlu1 %1457 }
 0x718   :  { %v1296_v41 = vpack.c.bf16 %v1295_v39, %v1295_v39 }
 0x71a   :  { %4784 = vmatmul.mubr.msk.bf16.vlgmr.msra.gmra.mrb[8].mxu1 %vm1284_vm7, %v1296_v41  ;;  %v1570_v43 = vpop.permute.xlu1 %1569 }
 0x71b   :  { %4788 = vmatpush3.bf16.xpose.msra.mxu1 %v1354_v42  ;;  %v1575_v44 = vsel %vm1237_vm5, %v1570_v43, 0  ;;  %4802 = vmatmul.mubr.msk.bf16.vlgmr.msra.gmra.mrb[8].mxu0 %vm1237_vm5, %v1458_v40 }
 0x71c   :  { %4812 = vmatpush3.bf16.xpose.msra.mxu0 %v1575_v44  ;;  %4789 = vmatprep.mubr.msk.bf16.mxu1 %vm6239_vm4, %v6237_v29 }
 0x71d   :  { %4813 = vmatprep.mubr.msk.bf16.mxu0 %vm6239_vm4, %v6237_v29  ;;  %4793 = vmatprep.subr.bf16.mxu1 %v6237_v29 }
 0x71e   :  { %4823 = vmatprep.subr.bf16.mxu0 %v6237_v29 }
 0x722   :  { %4790 = vmatmul.mubr.msk.bf16.vlgmr.msra.gmra.mrb[12].mxu1 %vm1237_vm5, %v1346_v34 }
 0x723   :  { %4814 = vmatmul.mubr.msk.bf16.vlgmr.msra.gmra.mrb[12].mxu0 %vm1237_vm5, %v1568_v45  ;;  %4795 = vmatprep.mubr.msk.bf16.mxu1 %vm6239_vm4, %v6237_v29  ;;  %v5150_v45 = vld [vmem:[#allocation48] sm:$0xff]  }
 0x724   :  { %4839 = vmatprep.mubr.msk.bf16.mxu0 %vm6239_vm4, %v6237_v29  ;;  %4824 = vmatpush3.bf16.msra.mxu0 %v5150_v45  ;;  %v5408_v45 = vld [vmem:[#allocation31 + $0x40] sm:$0xff]  }
 0x725   :  { %4825 = vmatprep.subr.bf16.mxu0 %v6237_v29 }
 0x7ed   :  { %v6718_v46 = vpop.f32.mrb[8].mxu1 }
 0x7ee   :  { %v4785_v47 = vpop.f32.mrb[9].mxu1  ;;  %v1501_v48 = vpop.f32.mrb[8].mxu0 }
 0x7ef   :  { %v1341_v49 = vpop.f32.mrb[10].mxu1  ;;  %v4803_v50 = vpop.f32.mrb[9].mxu0  ;;  %v1507_v51 = vsel %vm1284_vm7, %v1501_v48, -inf  ;;  %v5151_v47 = vld [vmem:[#allocation48 + $0x8] sm:$0xff]  }
 0x7f0   :  { %1508 = vmax.xlane.f32.xlu0 %v1507_v51  ;;  %v4786_v53 = vpop.f32.mrb[11].mxu1  ;;  %v1504_v54 = vpop.f32.mrb[10].mxu0  ;;  %4826 = vmatpush3.bf16.msra.mxu0 %v5151_v47  ;;  %v5153_v49 = vld [vmem:[#allocation48 + $0x18] sm:$0xff]   ;;  %v5154_v50 = vld [vmem:[#allocation48 + $0x20] sm:$0xff]   ;;  %v5155_v51 = vld [vmem:[#allocation48 + $0x28] sm:$0xff]  }
 0x7f1   :  { %v4804_v56 = vpop.f32.mrb[11].mxu0  ;;  %4827 = vmatprep.subr.bf16.mxu0 %v6237_v29  ;;  %v5156_v53 = vld [vmem:[#allocation48 + $0x30] sm:$0xff]  }
 0x7f5   :  { %v1390_v59 = vpop.f32.mrb[12].mxu1 }
 0x7f6   :  { %v4791_v62 = vpop.f32.mrb[13].mxu1  ;;  %v1611_v63 = vpop.f32.mrb[12].mxu0  ;;  %v1396_v1 = vsel %vm1284_vm7, %v1390_v59, -inf }
 0x7f7   :  { %v4815_v2 = vpop.f32.mrb[13].mxu0  ;;  %1397 = vmax.xlane.f32.xlu1 %v1396_v1  ;;  %v1393_v3 = vpop.f32.mrb[14].mxu1  ;;  %v1617_v7 = vsel %vm1284_vm7, %v1611_v63, -inf }
 0x7f8   :  { %v4792_v4 = vpop.f32.mrb[15].mxu1  ;;  %v1614_v5 = vpop.f32.mrb[14].mxu0 }
 0x7f9   :  { %v4816_v6 = vpop.f32.mrb[15].mxu0 }
 0x7fb   :  { %1618 = vmax.xlane.f32.xlu1 %v1617_v7 }
 0x806   :  { %1409 = vrot.lane.b32.xlu0 %v6685_v16, %s6240_s13 }
 0x87d   :  { %v1509_v8 = vpop.xlane.xlu0 %1508 }
 0x87e   :  { %v1510_v9 = vsub.f32 %v1501_v48, %v1509_v8  ;;  %v5152_v48 = vld [vmem:[#allocation48 + $0x10] sm:$0xff]  }
 0x87f   :  { %4828 = vmatpush3.bf16.msra.mxu0 %v5152_v48 }
 0x880   :  { %v1511_v10 = vmul.f32 1.442695, %v1510_v9  ;;  %4829 = vmatprep.subr.bf16.mxu0 %v6237_v29 }
 0x881   :  { %v1410_v11 = vpop.permute.xlu0 %1409 }
 0x882   :  { %5346 = vpow2.f32 %v1511_v10  ;;  %v1415_v12 = vsel %vm1300_vm6, %v1410_v11, 0 }
 0x883   :  { %4794 = vmatpush3.bf16.msra.mxu1 %v1415_v12  ;;  %4830 = vmatpush3.bf16.msra.mxu0 %v5153_v49 }
 0x884   :  { %v1398_v13 = vpop.xlane.xlu1 %1397  ;;  %4805 = vmatprep.subr.bf16.mxu1 %v6237_v29  ;;  %4831 = vmatprep.subr.bf16.mxu0 %v6237_v29 }
 0x885   :  { %v1399_v14 = vsub.f32 %v1390_v59, %v1398_v13 }
 0x887   :  { %v1400_v18 = vmul.f32 1.442695, %v1399_v14  ;;  %4832 = vmatpush3.bf16.msra.mxu0 %v5154_v50 }
 0x888   :  { %v1619_v15 = vpop.xlane.xlu1 %1618  ;;  %4833 = vmatprep.subr.bf16.mxu0 %v6237_v29 }
 0x889   :  { %v1620_v17 = vsub.f32 %v1611_v63, %v1619_v15  ;;  %v5157_v63 = vld [vmem:[#allocation48 + $0x38] sm:$0xff]  }
 0x88b   :  { %v1621_v19 = vmul.f32 1.442695, %v1620_v17  ;;  %4834 = vmatpush3.bf16.msra.mxu0 %v5155_v51  ;;  %v4378_v17 = vld [vmem:[#allocation37] ss:$0 sm:$0xff]  ;;  %v4387_v51 = vld [vmem:[#allocation42] ss:$0 sm:$0xff] }
 0x88c   :  { %v5347_v20 = vpop.eup %5346  ;;  %4835 = vmatprep.subr.bf16.mxu0 %v6237_v29 }
 0x88d   :  { %5348 = vpow2.f32 %v1621_v19  ;;  %v1513_v21 = vsel %vm1284_vm7, %v5347_v20, 0.0 }
 0x88e   :  { %1514 = vadd.xlane.f32.xlu1 %v1513_v21  ;;  %5350 = vpow2.f32 %v1400_v18 }
 0x88f   :  { %4836 = vmatpush3.bf16.msra.mxu0 %v5156_v53 }
 0x890   :  { %4837 = vmatprep.subr.bf16.mxu0 %v6237_v29 }
 0x893   :  { %4838 = vmatpush3.bf16.msra.mxu0 %v5157_v63  ;;  %v5409_v63 = vld [vmem:[#allocation31] sm:$0xff]  }
 0x897   :  { %v5349_v22 = vpop.eup %5348 }
 0x898   :  { %v1623_v23 = vsel %vm1284_vm7, %v5349_v22, 0.0  ;;  %v5351_v24 = vpop.eup %5350 }
 0x899   :  { %1624 = vadd.xlane.f32.xlu1 %v1623_v23  ;;  %v1402_v25 = vsel %vm1284_vm7, %v5351_v24, 0.0 }
 0x89d   :  { %1403 = vadd.xlane.f32.xlu1 %v1402_v25  ;;  %v5160_v25 = vld [vmem:[#allocation46 + $0x4] ss:$8 sps:$4 sm:$0xff]  }
 0x8ae   :  { %1519 = vrot.lane.b32.xlu1 %v6685_v16, %s6201_s26 }
 0x8b2   :  { %1629 = vrot.lane.b32.xlu1 %v6685_v16, %s6241_s21 }
 0x91b   :  { %v1515_v26 = vpop.xlane.xlu1 %1514 }
 0x926   :  { %v1625_v27 = vpop.xlane.xlu1 %1624 }
 0x92a   :  { %v1404_v28 = vpop.xlane.xlu1 %1403 }
 0x92b   :  { %5352 = vrcp.f32 %v1404_v28  ;;  %v5164_v28 = vld [vmem:[#allocation46 + $0x20] ss:$8 sps:$4 sm:$0xff]  }
 0x92c   :  { %5354 = vrcp.f32 %v1515_v26  ;;  %v5163_v26 = vld [vmem:[#allocation46 + $0x14] ss:$8 sps:$4 sm:$0xff]  }
 0x92d   :  { %5356 = vrcp.f32 %v1625_v27  ;;  %v5166_v27 = vld [vmem:[#allocation46 + $0x24] ss:$8 sps:$4 sm:$0xff]  }
 0x92e   :  { %v1520_v34 = vpop.permute.xlu1 %1519 }
 0x92f   :  { %v1525_v38 = vsel %vm1300_vm6, %v1520_v34, 0 }
 0x932   :  { %v1630_v39 = vpop.permute.xlu1 %1629 }
 0x933   :  { %v1635_v42 = vsel %vm1300_vm6, %v1630_v39, 0  ;;  %v5175_v39 = vld [vmem:[#allocation46 + $0x54] ss:$8 sps:$4 sm:$0xff]  }
 0x935   :  { %v5353_v30 = vpop.eup %5352 }
 0x936   :  { %v1406_v31 = vmul.f32 %v5353_v30, %v5351_v24  ;;  %v5355_v37 = vpop.eup %5354  ;;  %v5158_v24 = vld [vmem:[#allocation46] ss:$8 sps:$4 sm:$0xff]  }
 0x937   :  { %v1517_v16 = vmul.f32 %v5355_v37, %v5347_v20  ;;  %v5357_v41 = vpop.eup %5356  ;;  %v5169_v37 = vld [vmem:[#allocation46 + $0x34] ss:$8 sps:$4 sm:$0xff]  }
 0x938   :  { %v1407_v35 = vpack.c.bf16 %v1406_v31, %v1406_v31  ;;  %v1627_v43 = vmul.f32 %v5357_v41, %v5349_v22  ;;  %v5178_v41 = vld [vmem:[#allocation46 + $0x64] ss:$8 sps:$4 sm:$0xff]  }
 0x939   :  { %v1518_v40 = vpack.c.bf16 %v1517_v16, %v1517_v16  ;;  %v5170_v16 = vld [vmem:[#allocation46 + $0x40] ss:$8 sps:$4 sm:$0xff]  }
 0x93a   :  { %4796 = vmatmul.mubr.msk.bf16.vlgmr.msra.gmra.mrb[16].mxu1 %vm1284_vm7, %v1407_v35  ;;  %v1628_v44 = vpack.c.bf16 %v1627_v43, %v1627_v43  ;;  %v5181_v43 = vld [vmem:[#allocation46 + $0x74] ss:$8 sps:$4 sm:$0xff]  }
 0x93b   :  { %4806 = vmatpush3.bf16.msra.mxu1 %v1525_v38  ;;  %4807 = vmatprep.mubr.msk.bf16.mxu1 %vm6239_vm4, %v6237_v29  ;;  %v5172_v38 = vld [vmem:[#allocation46 + $0x44] ss:$8 sps:$4 sm:$0xff]  }
 0x93c   :  { %4817 = vmatprep.subr.bf16.mxu1 %v6237_v29 }
 0x942   :  { %4808 = vmatmul.mubr.msk.bf16.vlgmr.msra.gmra.mrb[20].mxu1 %vm1284_vm7, %v1518_v40  ;;  %v5173_v40 = vld [vmem:[#allocation46 + $0x50] ss:$8 sps:$4 sm:$0xff]  }
 0x943   :  { %4818 = vmatpush3.bf16.msra.mxu1 %v1635_v42  ;;  %4819 = vmatprep.mubr.msk.bf16.mxu1 %vm6239_vm4, %v6237_v29  ;;  %v5176_v42 = vld [vmem:[#allocation46 + $0x60] ss:$8 sps:$4 sm:$0xff]  }
 0x944   :  { %1908 = vmatprep.subr.bf16.mxu1 %v5160_v25  ;;  %v5191_v25 = vld [vmem:[%s7057_s25 + $0x20] sm:$0xff]  }
 0x94a   :  { %4820 = vmatmul.mubr.msk.bf16.vlgmr.msra.gmra.mrb[24].mxu1 %vm1284_vm7, %v1628_v44  ;;  %v5179_v44 = vld [vmem:[#allocation46 + $0x70] ss:$8 sps:$4 sm:$0xff]  }
 0x94b   :  { %1940 = vmatprep.mubr.bf16.mxu1 %v6236_v0  ;;  %1909 = vmatpush1.bf16.msra.mxu1 %v5158_v24  ;;  %v5190_v24 = vld [vmem:[%s7057_s25 + $0x60] sm:$0xff]  }
 0x94c   :  { %1910 = vmatprep.subr.bf16.mxu1 %v5163_v26  ;;  %v5192_v26 = vld [vmem:[%s7057_s25 + $0x68] sm:$0xff]  }
 0xa0d   :  { %v1451_v54 = vpop.f32.mrb[16].mxu1 }
 0xa0e   :  { %1678 = vrot.lane.b32.xlu0 %v1451_v54, %s6241_s21  ;;  %v4797_v56 = vpop.f32.mrb[17].mxu1  ;;  %v4388_v54 = vld [vmem:[#allocation40] ss:$0 sm:$0xff] }
 0xa0f   :  { %v1454_v59 = vpop.f32.mrb[18].mxu1 }
 0xa10   :  { %v4798_v62 = vpop.f32.mrb[19].mxu1 }
 0xa15   :  { %v1561_v1 = vpop.f32.mrb[20].mxu1 }
 0xa16   :  { %1682 = vrot.lane.b32.xlu1 %v1561_v1, %s6201_s26  ;;  %v4809_v2 = vpop.f32.mrb[21].mxu1  ;;  %v6242_v1 = vmov 0.0|0.0  }
 0xa17   :  { %v1564_v3 = vpop.f32.mrb[22].mxu1  ;;  %v5410_v2 = vld [vmem:[#allocation31 + $0x48] sm:$0xff]  }
 0xa18   :  { %v4810_v4 = vpop.f32.mrb[23].mxu1  ;;  %v5411_v3 = vld [vmem:[#allocation31 + $0x8] sm:$0xff]  }
 0xa19   :  { %v5412_v4 = vld [vmem:[#allocation31 + $0x50] sm:$0xff]  }
 0xa1d   :  { %v1671_v5 = vpop.f32.mrb[24].mxu1 }
 0xa1e   :  { %1686 = vrot.lane.b32.xlu0 %v1671_v5, %s6240_s13  ;;  %v4821_v6 = vpop.f32.mrb[25].mxu1  ;;  %v5413_v5 = vld [vmem:[#allocation31 + $0x10] sm:$0xff]  }
 0xa1f   :  { %v1674_v7 = vpop.f32.mrb[26].mxu1  ;;  %v5414_v6 = vld [vmem:[#allocation31 + $0x58] sm:$0xff]  }
 0xa20   :  { %v4822_v8 = vpop.f32.mrb[27].mxu1  ;;  %v5415_v7 = vld [vmem:[#allocation31 + $0x18] sm:$0xff]  }
 0xa21   :  { %v5416_v8 = vld [vmem:[#allocation31 + $0x60] sm:$0xff]  }
 0xa80   :  { %v1679_v9 = vpop.permute.xlu0 %1678 }
 0xa81   :  { %v1689_v11 = vsel %vm1237_vm5, %v6718_v46, %v1679_v9  ;;  %v5161_v46 = vld [vmem:[#allocation46 + $0x10] ss:$8 sps:$4 sm:$0xff]  }
 0xa82   :  { %1911 = vmatpush1.bf16.msra.mxu1 %v5161_v46  ;;  %v5417_v9 = vld [vmem:[#allocation31 + $0x20] sm:$0xff]   ;;  %v5198_v46 = vld [vmem:[#allocation27 + $0x8] ss:$12 sps:$4 sm:$0xff]  }
 0xa83   :  { %1912 = vmatprep.subr.bf16.mxu1 %v5166_v27  ;;  %v5193_v27 = vld [vmem:[%s7057_s25 + $0x28] sm:$0xff]  }
 0xa86   :  { %1913 = vmatpush1.bf16.msra.mxu1 %v5164_v28  ;;  %v5194_v28 = vld [vmem:[%s7057_s25 + $0x70] sm:$0xff]  }
 0xa87   :  { %1914 = vmatprep.subr.bf16.mxu1 %v5169_v37  ;;  %v5202_v37 = vld [vmem:[#allocation27 + $0x20] ss:$12 sps:$4 sm:$0xff]  }
 0xa88   :  { %v1683_v10 = vpop.permute.xlu1 %1682 }
 0xa89   :  { %v1691_v12 = vsel %vm1690_vm8, %v1689_v11, %v1683_v10  ;;  %v5418_v10 = vld [vmem:[#allocation31 + $0x68] sm:$0xff]  }
 0xa8a   :  { %v5419_v11 = vld [vmem:[#allocation31 + $0x28] sm:$0xff]  }
 0xa90   :  { %v1687_v13 = vpop.permute.xlu0 %1686 }
 0xa91   :  { %v1693_v14 = vsel %vm1692_vm9, %v1691_v12, %v1687_v13  ;;  %v5420_v12 = vld [vmem:[#allocation31 + $0x70] sm:$0xff]  }
 0xa92   :  { %v1694_v15 = vpack.c.bf16 %v1693_v14, %v1693_v14  ;;  %v5421_v13 = vld [vmem:[#allocation31 + $0x30] sm:$0xff]   ;;  %v5422_v14 = vld [vmem:[#allocation31 + $0x78] sm:$0xff]  }
 0xa94   :  { %4840 = vmatmul.mubr.bf16.vlgmr.msra.gmra.mrb[16].mxu0 %v1694_v15  ;;  %v5423_v15 = vld [vmem:[#allocation31 + $0x38] sm:$0xff]  }
 0xb67   :  { %v1783_v18 = vpop.f32.mrb[16].mxu0 }
 0xb68   :  { %v1784_v19 = vadd.f32 %v4378_v17, %v1783_v18  ;;  %v4841_v20 = vpop.f32.mrb[17].mxu0  ;;  %v5182_v17 = vld [vmem:[%s7057_s25 + $0x40] sm:$0xff]  }
 0xb69   :  { %v1786_v21 = vpop.f32.mrb[18].mxu0  ;;  %v5183_v18 = vld [vmem:[%s7057_s25] sm:$0xff]   ;;  %4621 = vmatprep.subr.bf16.mxu0 %v5182_v17  ;;  %v5185_v20 = vld [vmem:[%s7057_s25 + $0x8] sm:$0xff]  }
 0xb6a   :  { %v4842_v22 = vpop.f32.mrb[19].mxu0  ;;  %v1789_v23 = vadd.f32 %v1784_v19, %v6661_v55  ;;  %v5167_v55 = vld [vmem:[#allocation46 + $0x30] ss:$8 sps:$4 sm:$0xff]   ;;  %4622 = vmatpush3.bf16.msra.mxu0 %v5183_v18  ;;  %v5184_v19 = vld [vmem:[%s7057_s25 + $0x48] sm:$0xff]   ;;  %v5186_v21 = vld [vmem:[%s7057_s25 + $0x50] sm:$0xff]  }
 0xb6b   :  { %1915 = vmatpush1.bf16.msra.mxu1 %v5167_v55  ;;  %4623 = vmatprep.subr.bf16.mxu0 %v5184_v19  ;;  %v5187_v22 = vld [vmem:[%s7057_s25 + $0x10] sm:$0xff]  }
 0xb6c   :  { %1790 = vadd.xlane.f32.xlu1 %v1789_v23  ;;  %1916 = vmatprep.subr.bf16.mxu1 %v5172_v38  ;;  %v5206_v55 = vld [vmem:[#allocation27 + $0x38] ss:$12 sps:$4 sm:$0xff]   ;;  %v5210_v38 = vld [vmem:[#allocation27 + $0x50] ss:$12 sps:$4 sm:$0xff]  }
 0xb6d   :  { %v5205_v18 = vld [vmem:[#allocation27 + $0x1c] ss:$12 sps:$4 sm:$0xff]  }
 0xb6e   :  { %4624 = vmatpush3.bf16.msra.mxu0 %v5185_v20 }
 0xb6f   :  { %1917 = vmatpush1.bf16.msra.mxu1 %v5170_v16  ;;  %4625 = vmatprep.subr.bf16.mxu0 %v5186_v21  ;;  %v5214_v16 = vld [vmem:[#allocation27 + $0x68] ss:$12 sps:$4 sm:$0xff]  }
 0xb70   :  { %1918 = vmatprep.subr.bf16.mxu1 %v5175_v39  ;;  %v5218_v39 = vld [vmem:[#allocation27 + $0x80] ss:$12 sps:$4 sm:$0xff]  }
 0xb72   :  { %4626 = vmatpush3.bf16.msra.mxu0 %v5187_v22 }
 0xb73   :  { %1919 = vmatpush1.bf16.msra.mxu1 %v5173_v40  ;;  %v5222_v40 = vld [vmem:[#allocation27 + $0x98] ss:$12 sps:$4 sm:$0xff]  }
 0xb74   :  { %1920 = vmatprep.subr.bf16.mxu1 %v5178_v41  ;;  %v5226_v41 = vld [vmem:[#allocation27 + $0xb0] ss:$12 sps:$4 sm:$0xff]  }
 0xb77   :  { %1921 = vmatpush1.bf16.msra.mxu1 %v5176_v42  ;;  %v749_v42 = vld [vmem:[#allocation34] sm:$0x3] }
 0xb78   :  { %1922 = vmatprep.subr.bf16.mxu1 %v5181_v43  ;;  %v1821_v43 = vrot.slane %v749_v42, %v6675_v60 }
 0xb7b   :  { %1923 = vmatpush1.bf16.msra.mxu1 %v5179_v44  ;;  %v1825_v44 = vrot.slane %v749_v42, %v6672_v58 }
 0xb7c   :  { %4643 = vmatprep.subr.bf16.mxu1 %v5408_v45 }
 0xbf9   :  { %v1791_v30 = vpop.xlane.xlu1 %1790 }
 0xbfa   :  { %v1793_v31 = vmul.f32 0.0078125, %v1791_v30  ;;  %v5195_v30 = vld [vmem:[%s7057_s25 + $0x30] sm:$0xff]  }
 0xbfc   :  { %v1794_v34 = vsub.f32 %v1789_v23, %v1793_v31  ;;  %v5189_v23 = vld [vmem:[%s7057_s25 + $0x18] sm:$0xff]  }
 0xbfd   :  { %v5196_v31 = vld [vmem:[%s7057_s25 + $0x78] sm:$0xff]  }
 0xbfe   :  { %v1795_v35 = vmul.f32 %v1794_v34, %v1794_v34 }
 0xc00   :  { %1796 = vadd.xlane.f32.xlu0 %v1795_v35  ;;  %v5201_v35 = vld [vmem:[#allocation27 + $0x4] ss:$12 sps:$4 sm:$0xff]  }
 0xc8d   :  { %v1797_v47 = vpop.xlane.xlu0 %1796 }
 0xc8e   :  { %v1798_v48 = vmul.f32 0.0078125, %v1797_v47 }
 0xc90   :  { %v1799_v49 = vadd.f32 1e-05, %v1798_v48 }
 0xc92   :  { %5358 = vrsqrt.f32 %v1799_v49 }
 0xc9c   :  { %v5359_v50 = vpop.eup %5358 }
 0xc9d   :  { %v1801_v53 = vmul.f32 %v5359_v50, %v1794_v34  ;;  %v5197_v34 = vld [vmem:[%s7057_s25 + $0x38] sm:$0xff]  }
 0xc9f   :  { %v1808_v56 = vmul.f32 %v4387_v51, %v1801_v53 }
 0xca1   :  { %v6760_v59 = vadd.f32 %v4388_v54, %v1808_v56 }
 0xca3   :  { %v1816_v62 = vpack.c.bf16 %v6760_v59, %v6760_v59 }
 0xca5   :  { %1941 = vmatmul.mubr.bf16.vlgmr.msra.gmra.mrb[28].mxu1 %v1816_v62 }
 0xca6   :  { %4644 = vmatpush3.bf16.msra.mxu1 %v5409_v63  ;;  %2177 = vmatprep.mubr.bf16.mxu1 %v6242_v1 }
 0xca7   :  { %4645 = vmatprep.subr.bf16.mxu1 %v5410_v2 }
 0xcaa   :  { %4646 = vmatpush3.bf16.msra.mxu1 %v5411_v3 }
 0xcab   :  { %4647 = vmatprep.subr.bf16.mxu1 %v5412_v4 }
 0xcae   :  { %4648 = vmatpush3.bf16.msra.mxu1 %v5413_v5 }
 0xcaf   :  { %4649 = vmatprep.subr.bf16.mxu1 %v5414_v6 }
 0xcb2   :  { %4650 = vmatpush3.bf16.msra.mxu1 %v5415_v7 }
 0xcb3   :  { %4651 = vmatprep.subr.bf16.mxu1 %v5416_v8 }
 0xcb6   :  { %4652 = vmatpush3.bf16.msra.mxu1 %v5417_v9 }
 0xcb7   :  { %4653 = vmatprep.subr.bf16.mxu1 %v5418_v10 }
 0xcba   :  { %4654 = vmatpush3.bf16.msra.mxu1 %v5419_v11 }
 0xcbb   :  { %4655 = vmatprep.subr.bf16.mxu1 %v5420_v12 }
 0xcbe   :  { %4656 = vmatpush3.bf16.msra.mxu1 %v5421_v13 }
 0xcbf   :  { %4657 = vmatprep.subr.bf16.mxu1 %v5422_v14 }
 0xcc2   :  { %4658 = vmatpush3.bf16.msra.mxu1 %v5423_v15  ;;  %v5199_v15 = vld [vmem:[#allocation27] ss:$12 sps:$4 sm:$0xff]  }
 0xcc3   :  { %4843 = vmatprep.subr.bf16.mxu1 %v6237_v29 }
 0xcc5   :  { %4426 = vmatmul.mubr.msk.bf16.vlgmr.msra.gmra.mrb[32].mxu1 %vm4425_vm11, %v6238_v36  ;;  %v5188_v36 = vld [vmem:[%s7057_s25 + $0x58] sm:$0xff]  }
 0xcc6   :  { %4859 = vmatprep.mubr.msk.bf16.mxu1 %vm6239_vm4, %v6237_v29  ;;  %4627 = vmatprep.subr.bf16.mxu0 %v5188_v36  ;;  %v5203_v36 = vld [vmem:[#allocation27 + $0x18] ss:$12 sps:$4 sm:$0xff]  }
 0xcc7   :  { %4628 = vmatpush3.bf16.msra.mxu0 %v5189_v23  ;;  %4844 = vmatpush3.bf16.msra.mxu1 %v5198_v46  ;;  %v5207_v46 = vld [vmem:[#allocation27 + $0x30] ss:$12 sps:$4 sm:$0xff]  }
 0xcc8   :  { %4629 = vmatprep.subr.bf16.mxu0 %v5190_v24  ;;  %4845 = vmatprep.subr.bf16.mxu1 %v6237_v29  ;;  %v5209_v24 = vld [vmem:[#allocation27 + $0x34] ss:$12 sps:$4 sm:$0xff]  }
 0xccb   :  { %4630 = vmatpush3.bf16.msra.mxu0 %v5191_v25  ;;  %4846 = vmatpush3.bf16.msra.mxu1 %v5202_v37  ;;  %v5225_v37 = vld [vmem:[#allocation27 + $0x94] ss:$12 sps:$4 sm:$0xff]  }
 0xccc   :  { %4631 = vmatprep.subr.bf16.mxu0 %v5192_v26  ;;  %4847 = vmatprep.subr.bf16.mxu1 %v6237_v29 }
 0xccf   :  { %4632 = vmatpush3.bf16.msra.mxu0 %v5193_v27  ;;  %4848 = vmatpush3.bf16.msra.mxu1 %v5206_v55  ;;  %v5213_v27 = vld [vmem:[#allocation27 + $0x4c] ss:$12 sps:$4 sm:$0xff]   ;;  %v5223_v55 = vld [vmem:[#allocation27 + $0x90] ss:$12 sps:$4 sm:$0xff]  }
 0xcd0   :  { %4633 = vmatprep.subr.bf16.mxu0 %v5194_v28  ;;  %4849 = vmatprep.subr.bf16.mxu1 %v6237_v29 }
 0xcd3   :  { %4634 = vmatpush3.bf16.msra.mxu0 %v5195_v30  ;;  %4850 = vmatpush3.bf16.msra.mxu1 %v5210_v38  ;;  %v5211_v30 = vld [vmem:[#allocation27 + $0x48] ss:$12 sps:$4 sm:$0xff]   ;;  %v5229_v38 = vld [vmem:[#allocation27 + $0xac] ss:$12 sps:$4 sm:$0xff]  }
 0xcd4   :  { %4635 = vmatprep.subr.bf16.mxu0 %v5196_v31  ;;  %4851 = vmatprep.subr.bf16.mxu1 %v6237_v29  ;;  %v5217_v31 = vld [vmem:[#allocation27 + $0x64] ss:$12 sps:$4 sm:$0xff]  }
 0xcd7   :  { %4636 = vmatpush3.bf16.msra.mxu0 %v5197_v34  ;;  %4852 = vmatpush3.bf16.msra.mxu1 %v5214_v16  ;;  %v5215_v34 = vld [vmem:[#allocation27 + $0x60] ss:$12 sps:$4 sm:$0xff]   ;;  %v5227_v16 = vld [vmem:[#allocation27 + $0xa8] ss:$12 sps:$4 sm:$0xff]  }
 0xcd8   :  { %2336 = vmatprep.subr.bf16.mxu0 %v5201_v35  ;;  %4853 = vmatprep.subr.bf16.mxu1 %v6237_v29  ;;  %v5219_v35 = vld [vmem:[#allocation27 + $0x78] ss:$12 sps:$4 sm:$0xff]  }
 0xcdb   :  { %4854 = vmatpush3.bf16.msra.mxu1 %v5218_v39 }
 0xcdc   :  { %4855 = vmatprep.subr.bf16.mxu1 %v6237_v29 }
 0xcdf   :  { %4856 = vmatpush3.bf16.msra.mxu1 %v5222_v40 }
 0xce0   :  { %4857 = vmatprep.subr.bf16.mxu1 %v6237_v29 }
 0xce3   :  { %4858 = vmatpush3.bf16.msra.mxu1 %v5226_v41 }
 0xce4   :  { %4869 = vmatprep.subr.bf16.mxu1 %v6237_v29 }
 0xd78   :  { %v1942_v45 = vpop.f32.mrb[28].mxu1 }
 0xd79   :  { %v1943_v47 = vadd.f32 %v1942_v45, %v1821_v43  ;;  %v1944_v48 = vpop.f32.mrb[29].mxu1  ;;  %v604_v43 = vld [vmem:[#allocation24] sm:$0x7] }
 0xd7a   :  { %v1945_v49 = vadd.f32 %v1944_v48, %v1825_v44  ;;  %v1946_v50 = vpop.f32.mrb[30].mxu1  ;;  %v2204_v45 = vrot.slane %v604_v43, %v1019_v61 }
 0xd7b   :  { %v1949_v51 = vmul.f32 %v1943_v47, %v1943_v47  ;;  %v1947_v53 = vpop.f32.mrb[31].mxu1 }
 0xd7c   :  { %v1950_v54 = vmul.f32 %v1945_v49, %v1945_v49 }
 0xd7d   :  { %v1951_v56 = vmul.f32 %v1949_v51, %v1943_v47 }
 0xd7e   :  { %v1952_v62 = vmul.f32 %v1950_v54, %v1945_v49 }
 0xd7f   :  { %v1953_v63 = vmul.f32 0.044715, %v1951_v56  ;;  %v2196_v56 = vrot.slane %v604_v43, %v6675_v60 }
 0xd80   :  { %v1954_v1 = vmul.f32 0.044715, %v1952_v62  ;;  %v2200_v62 = vrot.slane %v604_v43, %v6672_v58 }
 0xd81   :  { %v1955_v2 = vadd.f32 %v1953_v63, %v1943_v47 }
 0xd82   :  { %v1956_v3 = vadd.f32 %v1954_v1, %v1945_v49 }
 0xd83   :  { %v1957_v4 = vmul.f32 0.7978846, %v1955_v2 }
 0xd84   :  { %v1958_v5 = vmul.f32 0.7978846, %v1956_v3 }
 0xd85   :  { %5360 = vtanh.f32 %v1957_v4 }
 0xd86   :  { %5362 = vtanh.f32 %v1958_v5 }
 0xd8f   :  { %v5361_v6 = vpop.eup %5360 }
 0xd90   :  { %v5363_v7 = vpop.eup %5362  ;;  %v1961_v8 = vadd.f32 1.0, %v5361_v6 }
 0xd91   :  { %v1962_v9 = vadd.f32 1.0, %v5363_v7 }
 0xd92   :  { %v1963_v10 = vmul.f32 0.5, %v1961_v8 }
 0xd93   :  { %v1964_v11 = vmul.f32 0.5, %v1962_v9 }
 0xd94   :  { %v1965_v12 = vmul.f32 %v1963_v10, %v1943_v47 }
 0xd95   :  { %v1966_v13 = vmul.f32 %v1964_v11, %v1945_v49 }
 0xd96   :  { %v1967_v17 = vpack.c.bf16 %v1965_v12, %v1965_v12 }
 0xd97   :  { %v1968_v14 = vpack.c.bf16 %v1966_v13, %v1966_v13 }
 0xd98   :  { %v4659_v19 = vpop.f32.mrb[32].mxu1 }
 0xd99   :  { %2103 = vmatprep.mubr.bf16.mxu0 %v1968_v14  ;;  %v4660_v20 = vpop.f32.mrb[33].mxu1 }
 0xd9a   :  { %2104 = vmatmul.mubr.bf16.vlgmr.msra.gmra.mrb[20].mxu0 %v1967_v17  ;;  %v4661_v21 = vadd.f32 %v4660_v20, %v4659_v19  ;;  %v4662_v22 = vpop.f32.mrb[34].mxu1  ;;  %v6243_v19 = vmov -1e+09  }
 0xd9b   :  { %2337 = vmatpush1.bf16.msra.mxu0 %v5199_v15  ;;  %v4663_v23 = vpop.f32.mrb[35].mxu1  ;;  %2368 = vmatprep.mubr.bf16.mxu0 %v6236_v0  ;;  %v2190_v20 = vsel %vm2189_vm12, 0.0, %v6243_v19 }
 0xd9c   :  { %2338 = vmatprep.subr.bf16.mxu0 %v5205_v18  ;;  %v2185_v25 = vmul.f32 11.313708, %v4661_v21 }
 0xd9e   :  { %v6797_v26 = vadd.f32 %v2185_v25, %v6658_v52  ;;  %v5221_v52 = vld [vmem:[#allocation27 + $0x7c] ss:$12 sps:$4 sm:$0xff]  }
 0xd9f   :  { %2339 = vmatpush1.bf16.msra.mxu0 %v5203_v36 }
 0xda0   :  { %2340 = vmatprep.subr.bf16.mxu0 %v5209_v24  ;;  %v2191_v28 = vpack.c.bf16 %v6797_v26, %v6797_v26 }
 0xda2   :  { %4860 = vmatmul.mubr.bf16.vlgmr.msra.gmra.mrb[36].mxu1 %v2191_v28 }
 0xda3   :  { %2341 = vmatpush1.bf16.msra.mxu0 %v5207_v46  ;;  %4871 = vmatprep.mubr.msk.bf16.mxu1 %vm6239_vm4, %v6237_v29 }
 0xda4   :  { %2342 = vmatprep.subr.bf16.mxu0 %v5213_v27 }
 0xda7   :  { %2343 = vmatpush1.bf16.msra.mxu0 %v5211_v30 }
 0xda8   :  { %2344 = vmatprep.subr.bf16.mxu0 %v5217_v31 }
 0xdab   :  { %2345 = vmatpush1.bf16.msra.mxu0 %v5215_v34 }
 0xdac   :  { %2346 = vmatprep.subr.bf16.mxu0 %v5221_v52 }
 0xdaf   :  { %2347 = vmatpush1.bf16.msra.mxu0 %v5219_v35 }
 0xdb0   :  { %2348 = vmatprep.subr.bf16.mxu0 %v5225_v37 }
 0xdb3   :  { %2349 = vmatpush1.bf16.msra.mxu0 %v5223_v55 }
 0xdb4   :  { %2350 = vmatprep.subr.bf16.mxu0 %v5229_v38 }
 0xdb7   :  { %2351 = vmatpush1.bf16.msra.mxu0 %v5227_v16 }
 0xdb8   :  { %4863 = vmatprep.subr.bf16.mxu0 %v6237_v29 }
 0xdba   :  { %2369 = vmatmul.mubr.bf16.vlgmr.msra.gmra.mrb[24].mxu0 %v2191_v28 }
 0xdbb   :  { %4865 = vmatprep.mubr.msk.bf16.mxu0 %vm6239_vm4, %v6237_v29 }
 0xe6d   :  { %v4637_v39 = vpop.f32.mrb[20].mxu0 }
 0xe6e   :  { %v4638_v40 = vpop.f32.mrb[21].mxu0 }
 0xe6f   :  { %v6806_v41 = vadd.f32 %v4638_v40, %v4637_v39  ;;  %v4640_v42 = vpop.f32.mrb[22].mxu0 }
 0xe70   :  { %v4641_v44 = vpop.f32.mrb[23].mxu0 }
 0xe75   :  { %v2411_v47 = vpop.f32.mrb[36].mxu1 }
 0xe76   :  { %v2412_v48 = vadd.f32 %v2411_v47, %v2204_v45  ;;  %v4861_v49 = vpop.f32.mrb[37].mxu1 }
 0xe77   :  { %v2414_v50 = vpop.f32.mrb[38].mxu1 }
 0xe78   :  { %v6810_v51 = vpack.c.bf16 %v2412_v48, %v2412_v48  ;;  %v4862_v53 = vpop.f32.mrb[39].mxu1 }
 0xe7a   :  { %v2483_v54 = vsel %vm1300_vm6, %v6810_v51, 0 }
 0xe7b   :  { %4870 = vmatpush3.bf16.msra.mxu1 %v2483_v54 }
 0xe7c   :  { %4881 = vmatprep.subr.bf16.mxu1 %v6237_v29 }
 0xe8d   :  { %v2370_v63 = vpop.f32.mrb[24].mxu0 }
 0xe8e   :  { %v2371_v1 = vadd.f32 %v2370_v63, %v2196_v56  ;;  %v2372_v61 = vpop.f32.mrb[25].mxu0 }
 0xe8f   :  { %v2373_v2 = vadd.f32 %v2372_v61, %v2200_v62  ;;  %v2374_v3 = vpop.f32.mrb[26].mxu0 }
 0xe90   :  { %v2417_v4 = vmul.f32 0.17677669, %v2371_v1  ;;  %v2375_v5 = vpop.f32.mrb[27].mxu0 }
 0xe91   :  { %v2419_v6 = vpack.c.bf16 %v2373_v2, %v2373_v2 }
 0xe92   :  { %v2418_v7 = vpack.c.bf16 %v2417_v4, %v2417_v4 }
 0xe93   :  { %2529 = vrot.lane.b32.xlu0 %v2419_v6, %s6240_s13  ;;  %v2425_v8 = vsel %vm1237_vm5, %v2419_v6, 0 }
 0xe94   :  { %4864 = vmatpush3.bf16.xpose.msra.mxu0 %v2425_v8  ;;  %2526 = vrot.lane.b32.xlu1 %v2418_v7, %s6240_s13 }
 0xe95   :  { %4875 = vmatprep.subr.bf16.mxu0 %v6237_v29 }
 0xe97   :  { %2638 = vrot.lane.b32.xlu0 %v2418_v7, %s6201_s26 }
 0xe98   :  { %2640 = vrot.lane.b32.xlu1 %v2419_v6, %s6201_s26 }
 0xe9b   :  { %2748 = vrot.lane.b32.xlu0 %v2418_v7, %s6241_s21  ;;  %4866 = vmatmul.mubr.msk.bf16.vlgmr.msra.gmra.mrb[28].mxu0 %vm1237_vm5, %v2418_v7 }
 0xe9c   :  { %2750 = vrot.lane.b32.xlu1 %v2419_v6, %s6241_s21  ;;  %4877 = vmatprep.mubr.msk.bf16.mxu0 %vm6239_vm4, %v6237_v29 }
 0xf05   :  { %v2530_v9 = vpop.permute.xlu0 %2529 }
 0xf06   :  { %v2535_v10 = vsel %vm1237_vm5, %v2530_v9, 0  ;;  %v2527_v11 = vpop.permute.xlu1 %2526 }
 0xf07   :  { %4876 = vmatpush3.bf16.xpose.msra.mxu0 %v2535_v10 }
 0xf08   :  { %4887 = vmatprep.subr.bf16.mxu0 %v6237_v29 }
 0xf09   :  { %v2639_v15 = vpop.permute.xlu0 %2638 }
 0xf0a   :  { %v2641_v12 = vpop.permute.xlu1 %2640 }
 0xf0b   :  { %v2646_v13 = vsel %vm1237_vm5, %v2641_v12, 0 }
 0xf0d   :  { %v2749_v18 = vpop.permute.xlu0 %2748 }
 0xf0e   :  { %4878 = vmatmul.mubr.msk.bf16.vlgmr.msra.gmra.mrb[32].mxu0 %vm1237_vm5, %v2527_v11  ;;  %v2751_v14 = vpop.permute.xlu1 %2750 }
 0xf0f   :  { %4888 = vmatpush3.bf16.xpose.msra.mxu0 %v2646_v13  ;;  %4889 = vmatprep.mubr.msk.bf16.mxu0 %vm6239_vm4, %v6237_v29  ;;  %v2756_v17 = vsel %vm1237_vm5, %v2751_v14, 0 }
 0xf10   :  { %4899 = vmatprep.subr.bf16.mxu0 %v6237_v29 }
 0xf16   :  { %4890 = vmatmul.mubr.msk.bf16.vlgmr.msra.gmra.mrb[36].mxu0 %vm1237_vm5, %v2639_v15 }
 0xf17   :  { %4900 = vmatpush3.bf16.xpose.msra.mxu0 %v2756_v17  ;;  %4901 = vmatprep.mubr.msk.bf16.mxu0 %vm6239_vm4, %v6237_v29 }
 0xf18   :  { %4911 = vmatprep.subr.bf16.mxu0 %v6237_v29 }
 0xf1e   :  { %4902 = vmatmul.mubr.msk.bf16.vlgmr.msra.gmra.mrb[40].mxu0 %vm1237_vm5, %v2749_v18 }
 0xf1f   :  { %4927 = vmatprep.mubr.msk.bf16.mxu0 %vm6239_vm4, %v6237_v29 }
 0xf6e   :  { %v2461_v21 = vpop.f32.mrb[28].mxu0 }
 0xf6f   :  { %v2462_v22 = vadd.f32 %v2461_v21, %v2190_v20  ;;  %v4867_v36 = vpop.f32.mrb[29].mxu0 }
 0xf70   :  { %v2464_v23 = vpop.f32.mrb[30].mxu0 }
 0xf71   :  { %v4868_v24 = vpop.f32.mrb[31].mxu0  ;;  %v2467_v25 = vsel %vm1284_vm7, %v2462_v22, -inf }
 0xf72   :  { %2468 = vmax.xlane.f32.xlu1 %v2467_v25 }
 0xfe1   :  { %v2571_v46 = vpop.f32.mrb[32].mxu0 }
 0xfe2   :  { %v2572_v27 = vadd.f32 %v2571_v46, %v2190_v20  ;;  %v4879_v28 = vpop.f32.mrb[33].mxu0 }
 0xfe3   :  { %v2574_v30 = vpop.f32.mrb[34].mxu0 }
 0xfe4   :  { %v4880_v31 = vpop.f32.mrb[35].mxu0  ;;  %v2577_v34 = vsel %vm1284_vm7, %v2572_v27, -inf }
 0xfe5   :  { %2578 = vmax.xlane.f32.xlu0 %v2577_v34 }
 0xfe9   :  { %v2682_v52 = vpop.f32.mrb[36].mxu0 }
 0xfea   :  { %v2683_v57 = vadd.f32 %v2682_v52, %v2190_v20  ;;  %v4891_v35 = vpop.f32.mrb[37].mxu0 }
 0xfeb   :  { %v2685_v37 = vpop.f32.mrb[38].mxu0 }
 0xfec   :  { %v4892_v55 = vpop.f32.mrb[39].mxu0  ;;  %v2688_v38 = vsel %vm1284_vm7, %v2683_v57, -inf  ;;  %v5230_v37 = vld [vmem:[#allocation25] sm:$0xff]  }
 0xfed   :  { %2689 = vmax.xlane.f32.xlu0 %v2688_v38  ;;  %4912 = vmatpush3.bf16.msra.mxu0 %v5230_v37  ;;  %v5231_v55 = vld [vmem:[#allocation25 + $0x8] sm:$0xff]   ;;  %v5263_v37 = vld [vmem:[#allocation12 + $0x8] sm:$0xff]  }
 0xfee   :  { %4913 = vmatprep.subr.bf16.mxu0 %v6237_v29 }
 0xff1   :  { %v2792_v16 = vpop.f32.mrb[40].mxu0  ;;  %4914 = vmatpush3.bf16.msra.mxu0 %v5231_v55 }
 0xff2   :  { %v2793_v39 = vadd.f32 %v2792_v16, %v2190_v20  ;;  %v4903_v40 = vpop.f32.mrb[41].mxu0  ;;  %4915 = vmatprep.subr.bf16.mxu0 %v6237_v29 }
 0xff3   :  { %v2795_v42 = vpop.f32.mrb[42].mxu0  ;;  %v5232_v40 = vld [vmem:[#allocation25 + $0x10] sm:$0xff]  }
 0xff4   :  { %v4904_v43 = vpop.f32.mrb[43].mxu0  ;;  %v2798_v44 = vsel %vm1284_vm7, %v2793_v39, -inf }
 0xff5   :  { %2799 = vmax.xlane.f32.xlu1 %v2798_v44  ;;  %4916 = vmatpush3.bf16.msra.mxu0 %v5232_v40  ;;  %v5233_v43 = vld [vmem:[#allocation25 + $0x18] sm:$0xff]  }
 0xff6   :  { %4917 = vmatprep.subr.bf16.mxu0 %v6237_v29 }
 0xff9   :  { %4918 = vmatpush3.bf16.msra.mxu0 %v5233_v43 }
 0xffa   :  { %4919 = vmatprep.subr.bf16.mxu0 %v6237_v29 }
 0xfff   :  { %v2469_v45 = vpop.xlane.xlu1 %2468 }
0x1000   :  { %v2470_v47 = vsub.f32 %v2462_v22, %v2469_v45 }
0x1002   :  { %v2471_v48 = vmul.f32 1.442695, %v2470_v47 }
0x1004   :  { %5364 = vpow2.f32 %v2471_v48  ;;  %v5234_v48 = vld [vmem:[#allocation25 + $0x20] sm:$0xff]  }
0x1005   :  { %4920 = vmatpush3.bf16.msra.mxu0 %v5234_v48 }
0x1006   :  { %4921 = vmatprep.subr.bf16.mxu0 %v6237_v29 }
0x100e   :  { %v5365_v49 = vpop.eup %5364 }
0x100f   :  { %v2473_v50 = vsel %vm1284_vm7, %v5365_v49, 0.0 }
0x1010   :  { %2474 = vadd.xlane.f32.xlu0 %v2473_v50  ;;  %v5235_v50 = vld [vmem:[#allocation25 + $0x28] sm:$0xff]  }
0x1011   :  { %4922 = vmatpush3.bf16.msra.mxu0 %v5235_v50 }
0x1012   :  { %4923 = vmatprep.subr.bf16.mxu0 %v6237_v29 }
0x1072   :  { %v2579_v53 = vpop.xlane.xlu0 %2578 }
0x1073   :  { %v2580_v54 = vsub.f32 %v2572_v27, %v2579_v53  ;;  %v5236_v53 = vld [vmem:[#allocation25 + $0x30] sm:$0xff]  }
0x1074   :  { %4924 = vmatpush3.bf16.msra.mxu0 %v5236_v53  ;;  %v5265_v53 = vld [vmem:[#allocation12 + $0x18] sm:$0xff]  }
0x1075   :  { %v2581_v56 = vmul.f32 1.442695, %v2580_v54  ;;  %4925 = vmatprep.subr.bf16.mxu0 %v6237_v29  ;;  %v4405_v54 = vld [vmem:[#allocation36] ss:$0 sm:$0xff] }
0x1077   :  { %5366 = vpow2.f32 %v2581_v56  ;;  %v5237_v56 = vld [vmem:[#allocation25 + $0x38] sm:$0xff]  }
0x1078   :  { %4926 = vmatpush3.bf16.msra.mxu0 %v5237_v56 }
0x107a   :  { %v2690_v62 = vpop.xlane.xlu0 %2689 }
0x107b   :  { %v2691_v63 = vsub.f32 %v2683_v57, %v2690_v62  ;;  %v2106_v62 = vadd.f32 %v6806_v41, %v4405_v54 }
0x107d   :  { %v2692_v1 = vmul.f32 1.442695, %v2691_v63  ;;  %v2111_v63 = vadd.f32 %v2106_v62, %v6760_v59  ;;  %v5238_v59 = vld [vmem:[#allocation9] ss:$8 sps:$4 sm:$0xff]  }
0x107e   :  { %v5266_v62 = vld [vmem:[#allocation12 + $0x20] sm:$0xff]  }
0x107f   :  { %5368 = vpow2.f32 %v2692_v1 }
0x1081   :  { %v5367_v61 = vpop.eup %5366 }
0x1082   :  { %v2583_v2 = vsel %vm1284_vm7, %v5367_v61, 0.0  ;;  %v2800_v6 = vpop.xlane.xlu1 %2799 }
0x1083   :  { %2584 = vadd.xlane.f32.xlu1 %v2583_v2  ;;  %v2801_v7 = vsub.f32 %v2793_v39, %v2800_v6 }
0x1085   :  { %v2802_v8 = vmul.f32 1.442695, %v2801_v7 }
0x1089   :  { %v5369_v3 = vpop.eup %5368 }
0x108a   :  { %v2694_v4 = vsel %vm1284_vm7, %v5369_v3, 0.0 }
0x108b   :  { %2695 = vadd.xlane.f32.xlu0 %v2694_v4 }
0x1094   :  { %2700 = vrot.lane.b32.xlu1 %v6810_v51, %s6201_s26 }
0x109d   :  { %v2475_v5 = vpop.xlane.xlu0 %2474 }
0x109e   :  { %5370 = vrcp.f32 %v2475_v5 }
0x109f   :  { %5372 = vpow2.f32 %v2802_v8 }
0x10a1   :  { %2590 = vrot.lane.b32.xlu0 %v6810_v51, %s6240_s13 }
0x10a8   :  { %v5371_v9 = vpop.eup %5370 }
0x10a9   :  { %v2477_v10 = vmul.f32 %v5371_v9, %v5365_v49  ;;  %v5373_v12 = vpop.eup %5372 }
0x10aa   :  { %v2804_v13 = vsel %vm1284_vm7, %v5373_v12, 0.0 }
0x10ab   :  { %v2478_v11 = vpack.c.bf16 %v2477_v10, %v2477_v10  ;;  %v5240_v10 = vld [vmem:[#allocation9 + $0x4] ss:$8 sps:$4 sm:$0xff]  }
0x10ac   :  { %3181 = vmatprep.subr.bf16.mxu0 %v5240_v10  ;;  %v546_v10 = vld [vmem:[#allocation4] sm:$0x3] }
0x10ad   :  { %4872 = vmatmul.mubr.msk.bf16.vlgmr.msra.gmra.mrb[40].mxu1 %vm1284_vm7, %v2478_v11 }
0x10ae   :  { %4883 = vmatprep.mubr.msk.bf16.mxu1 %vm6239_vm4, %v6237_v29 }
0x10b8   :  { %2805 = vadd.xlane.f32.xlu1 %v2804_v13 }
0x10c9   :  { %2810 = vrot.lane.b32.xlu1 %v6810_v51, %s6241_s21 }
0x1110   :  { %v2585_v14 = vpop.xlane.xlu1 %2584 }
0x1111   :  { %5374 = vrcp.f32 %v2585_v14 }
0x1114   :  { %v2701_v21 = vpop.permute.xlu1 %2700 }
0x1115   :  { %v2706_v36 = vsel %vm1300_vm6, %v2701_v21, 0 }
0x1118   :  { %v2696_v15 = vpop.xlane.xlu0 %2695 }
0x1119   :  { %5376 = vrcp.f32 %v2696_v15 }
0x111b   :  { %v5375_v17 = vpop.eup %5374 }
0x111c   :  { %v2587_v18 = vmul.f32 %v5375_v17, %v5367_v61  ;;  %v2591_v19 = vpop.permute.xlu0 %2590 }
0x111d   :  { %v2596_v20 = vsel %vm1300_vm6, %v2591_v19, 0 }
0x111e   :  { %4882 = vmatpush3.bf16.msra.mxu1 %v2596_v20  ;;  %v2588_v22 = vpack.c.bf16 %v2587_v18, %v2587_v18 }
0x111f   :  { %4893 = vmatprep.subr.bf16.mxu1 %v6237_v29 }
0x1121   :  { %4884 = vmatmul.mubr.msk.bf16.vlgmr.msra.gmra.mrb[44].mxu1 %vm1284_vm7, %v2588_v22 }
0x1122   :  { %4894 = vmatpush3.bf16.msra.mxu1 %v2706_v36  ;;  %4895 = vmatprep.mubr.msk.bf16.mxu1 %vm6239_vm4, %v6237_v29  ;;  %v5243_v36 = vld [vmem:[#allocation9 + $0x14] ss:$8 sps:$4 sm:$0xff]  }
0x1123   :  { %v5377_v51 = vpop.eup %5376  ;;  %4905 = vmatprep.subr.bf16.mxu1 %v6237_v29 }
0x1124   :  { %v2698_v23 = vmul.f32 %v5377_v51, %v5369_v3  ;;  %v5241_v51 = vld [vmem:[#allocation9 + $0x10] ss:$8 sps:$4 sm:$0xff]  }
0x1126   :  { %v2699_v24 = vpack.c.bf16 %v2698_v23, %v2698_v23  ;;  %v5246_v23 = vld [vmem:[#allocation9 + $0x24] ss:$8 sps:$4 sm:$0xff]  }
0x1129   :  { %4896 = vmatmul.mubr.msk.bf16.vlgmr.msra.gmra.mrb[48].mxu1 %vm1284_vm7, %v2699_v24  ;;  %v5244_v24 = vld [vmem:[#allocation9 + $0x20] ss:$8 sps:$4 sm:$0xff]  }
0x112a   :  { %4907 = vmatprep.mubr.msk.bf16.mxu1 %vm6239_vm4, %v6237_v29 }
0x1145   :  { %v2806_v25 = vpop.xlane.xlu1 %2805 }
0x1146   :  { %5378 = vrcp.f32 %v2806_v25  ;;  %v5249_v25 = vld [vmem:[#allocation9 + $0x34] ss:$8 sps:$4 sm:$0xff]  }
0x1149   :  { %v2811_v46 = vpop.permute.xlu1 %2810 }
0x114a   :  { %v2816_v27 = vsel %vm1300_vm6, %v2811_v46, 0  ;;  %v5247_v46 = vld [vmem:[#allocation9 + $0x30] ss:$8 sps:$4 sm:$0xff]  }
0x114b   :  { %4906 = vmatpush3.bf16.msra.mxu1 %v2816_v27  ;;  %v5250_v27 = vld [vmem:[#allocation9 + $0x40] ss:$8 sps:$4 sm:$0xff]  }
0x114c   :  { %4931 = vmatprep.subr.bf16.mxu1 %v6237_v29 }
0x1150   :  { %v5379_v28 = vpop.eup %5378 }
0x1151   :  { %v2808_v30 = vmul.f32 %v5379_v28, %v5373_v12  ;;  %v4459_v12 = vld [vmem:[#allocation22] ss:$0 sm:$0xff] }
0x1152   :  { %v5252_v28 = vld [vmem:[#allocation9 + $0x44] ss:$8 sps:$4 sm:$0xff]  }
0x1153   :  { %v2809_v31 = vpack.c.bf16 %v2808_v30, %v2808_v30  ;;  %v5255_v30 = vld [vmem:[#allocation9 + $0x54] ss:$8 sps:$4 sm:$0xff]  }
0x1155   :  { %4908 = vmatmul.mubr.msk.bf16.vlgmr.msra.gmra.mrb[52].mxu1 %vm1284_vm7, %v2809_v31  ;;  %v5258_v31 = vld [vmem:[#allocation9 + $0x64] ss:$8 sps:$4 sm:$0xff]  }
0x1156   :  { %4947 = vmatprep.mubr.msk.bf16.mxu1 %vm6239_vm4, %v6237_v29 }
0x1180   :  { %v2519_v34 = vpop.f32.mrb[40].mxu1 }
0x1181   :  { %v4873_v52 = vpop.f32.mrb[41].mxu1 }
0x1182   :  { %v2522_v57 = vpop.f32.mrb[42].mxu1  ;;  %v5261_v52 = vld [vmem:[#allocation9 + $0x74] ss:$8 sps:$4 sm:$0xff]  }
0x1183   :  { %v4874_v35 = vpop.f32.mrb[43].mxu1  ;;  %v5259_v57 = vld [vmem:[#allocation9 + $0x70] ss:$8 sps:$4 sm:$0xff]  }
0x1184   :  { %v5262_v35 = vld [vmem:[#allocation12] sm:$0xff]  }
0x1185   :  { %4932 = vmatpush3.bf16.msra.mxu1 %v5262_v35 }
0x1186   :  { %4933 = vmatprep.subr.bf16.mxu1 %v6237_v29 }
0x1189   :  { %4934 = vmatpush3.bf16.msra.mxu1 %v5263_v37 }
0x118a   :  { %4935 = vmatprep.subr.bf16.mxu1 %v6237_v29 }
0x11f4   :  { %v2632_v38 = vpop.f32.mrb[44].mxu1 }
0x11f5   :  { %2859 = vrot.lane.b32.xlu0 %v2632_v38, %s6241_s21  ;;  %v4885_v16 = vpop.f32.mrb[45].mxu1 }
0x11f6   :  { %v2635_v39 = vpop.f32.mrb[46].mxu1 }
0x11f7   :  { %v4886_v42 = vpop.f32.mrb[47].mxu1 }
0x11fc   :  { %v2742_v44 = vpop.f32.mrb[48].mxu1 }
0x11fd   :  { %2863 = vrot.lane.b32.xlu1 %v2742_v44, %s6201_s26  ;;  %v4897_v45 = vpop.f32.mrb[49].mxu1 }
0x11fe   :  { %v2745_v47 = vpop.f32.mrb[50].mxu1  ;;  %v4422_v45 = vld [vmem:[#allocation45] ss:$0 sm:$0xff] }
0x11ff   :  { %v4898_v49 = vpop.f32.mrb[51].mxu1  ;;  %v5264_v47 = vld [vmem:[#allocation12 + $0x10] sm:$0xff]  }
0x1200   :  { %v4423_v49 = vld [vmem:[#allocation43] ss:$0 sm:$0xff]  ;;  %4936 = vmatpush3.bf16.msra.mxu1 %v5264_v47 }
0x1201   :  { %4937 = vmatprep.subr.bf16.mxu1 %v6237_v29 }
0x1204   :  { %4938 = vmatpush3.bf16.msra.mxu1 %v5265_v53 }
0x1205   :  { %4939 = vmatprep.subr.bf16.mxu1 %v6237_v29 }
0x1208   :  { %4940 = vmatpush3.bf16.msra.mxu1 %v5266_v62 }
0x1209   :  { %4941 = vmatprep.subr.bf16.mxu1 %v6237_v29 }
0x1221   :  { %2112 = vadd.xlane.f32.xlu1 %v2111_v63 }
0x1228   :  { %v2852_v1 = vpop.f32.mrb[52].mxu1 }
0x1229   :  { %2867 = vrot.lane.b32.xlu0 %v2852_v1, %s6240_s13  ;;  %v4909_v61 = vpop.f32.mrb[53].mxu1  ;;  %v5268_v1 = vld [vmem:[#allocation12 + $0x30] sm:$0xff]  }
0x122a   :  { %v2855_v2 = vpop.f32.mrb[54].mxu1  ;;  %v5269_v61 = vld [vmem:[#allocation12 + $0x38] sm:$0xff]  }
0x122b   :  { %v4910_v3 = vpop.f32.mrb[55].mxu1 }
0x1267   :  { %v2860_v4 = vpop.permute.xlu0 %2859 }
0x1268   :  { %v2870_v6 = vsel %vm1237_vm5, %v2519_v34, %v2860_v4  ;;  %v5256_v34 = vld [vmem:[#allocation9 + $0x60] ss:$8 sps:$4 sm:$0xff]  }
0x126f   :  { %v2864_v5 = vpop.permute.xlu1 %2863 }
0x1270   :  { %v2871_v7 = vsel %vm1690_vm8, %v2870_v6, %v2864_v5  ;;  %v4468_v6 = vld [vmem:[#allocation15] ss:$0 sm:$0xff] }
0x129b   :  { %v2868_v8 = vpop.permute.xlu0 %2867 }
0x129c   :  { %v2872_v9 = vsel %vm1692_vm9, %v2871_v7, %v2868_v8  ;;  %v4469_v8 = vld [vmem:[#allocation13] ss:$0 sm:$0xff] }
0x129d   :  { %v2873_v41 = vpack.c.bf16 %v2872_v9, %v2872_v9 }
0x129f   :  { %4928 = vmatmul.mubr.bf16.vlgmr.msra.gmra.mrb[44].mxu0 %v2873_v41 }
0x12a0   :  { %3213 = vmatprep.mubr.bf16.mxu0 %v6236_v0  ;;  %3182 = vmatpush1.bf16.msra.mxu0 %v5238_v59 }
0x12a1   :  { %3183 = vmatprep.subr.bf16.mxu0 %v5243_v36 }
0x12a4   :  { %3184 = vmatpush1.bf16.msra.mxu0 %v5241_v51 }
0x12a5   :  { %3185 = vmatprep.subr.bf16.mxu0 %v5246_v23 }
0x12a8   :  { %3186 = vmatpush1.bf16.msra.mxu0 %v5244_v24 }
0x12a9   :  { %3187 = vmatprep.subr.bf16.mxu0 %v5249_v25 }
0x12ac   :  { %3188 = vmatpush1.bf16.msra.mxu0 %v5247_v46 }
0x12ad   :  { %3189 = vmatprep.subr.bf16.mxu0 %v5252_v28 }
0x12ae   :  { %v2113_v11 = vpop.xlane.xlu1 %2112 }
0x12af   :  { %v2114_v13 = vmul.f32 0.0078125, %v2113_v11  ;;  %v3094_v11 = vrot.slane %v546_v10, %v6675_v60 }
0x12b0   :  { %3190 = vmatpush1.bf16.msra.mxu0 %v5250_v27 }
0x12b1   :  { %v2115_v19 = vsub.f32 %v2111_v63, %v2114_v13  ;;  %3191 = vmatprep.subr.bf16.mxu0 %v5255_v30  ;;  %v5267_v63 = vld [vmem:[#allocation12 + $0x28] sm:$0xff]  }
0x12b2   :  { %4942 = vmatpush3.bf16.msra.mxu1 %v5267_v63 }
0x12b3   :  { %v2116_v22 = vmul.f32 %v2115_v19, %v2115_v19  ;;  %4943 = vmatprep.subr.bf16.mxu1 %v6237_v29 }
0x12b6   :  { %4944 = vmatpush3.bf16.msra.mxu1 %v5268_v1 }
0x12b7   :  { %4945 = vmatprep.subr.bf16.mxu1 %v6237_v29 }
0x12ba   :  { %4946 = vmatpush3.bf16.msra.mxu1 %v5269_v61 }
0x12bb   :  { %4951 = vmatprep.subr.bf16.mxu1 %v6237_v29 }
0x1372   :  { %v2962_v14 = vpop.f32.mrb[44].mxu0 }
0x1373   :  { %v2963_v15 = vadd.f32 %v4459_v12, %v2962_v14  ;;  %v4929_v17 = vpop.f32.mrb[45].mxu0 }
0x1374   :  { %v2965_v18 = vpop.f32.mrb[46].mxu0 }
0x1375   :  { %v4930_v20 = vpop.f32.mrb[47].mxu0  ;;  %v2968_v21 = vadd.f32 %v2963_v15, %v6797_v26  ;;  %v5253_v26 = vld [vmem:[#allocation9 + $0x50] ss:$8 sps:$4 sm:$0xff]  }
0x1376   :  { %3192 = vmatpush1.bf16.msra.mxu0 %v5253_v26  ;;  %v3098_v20 = vrot.slane %v546_v10, %v6672_v58 }
0x1377   :  { %2969 = vadd.xlane.f32.xlu0 %v2968_v21  ;;  %3193 = vmatprep.subr.bf16.mxu0 %v5258_v31 }
0x137a   :  { %3194 = vmatpush1.bf16.msra.mxu0 %v5256_v34 }
0x137b   :  { %2117 = vadd.xlane.f32.xlu0 %v2116_v22  ;;  %3195 = vmatprep.subr.bf16.mxu0 %v5261_v52 }
0x137e   :  { %3196 = vmatpush1.bf16.msra.mxu0 %v5259_v57 }
0x137f   :  { %4975 = vmatprep.subr.bf16.mxu0 %v6237_v29 }
0x1404   :  { %v2970_v55 = vpop.xlane.xlu0 %2969 }
0x1405   :  { %v2971_v38 = vmul.f32 0.0078125, %v2970_v55 }
0x1407   :  { %v2972_v16 = vsub.f32 %v2968_v21, %v2971_v38  ;;  %v4470_v21 = vld [vmem:[#allocation7] ss:$0 sm:$0xff] }
0x1408   :  { %v2118_v39 = vpop.xlane.xlu0 %2117 }
0x1409   :  { %v2119_v40 = vmul.f32 0.0078125, %v2118_v39  ;;  %v2973_v42 = vmul.f32 %v2972_v16, %v2972_v16 }
0x140b   :  { %v2120_v43 = vadd.f32 1e-05, %v2119_v40  ;;  %2974 = vadd.xlane.f32.xlu1 %v2973_v42 }
0x140d   :  { %5380 = vrsqrt.f32 %v2120_v43 }
0x1417   :  { %v5381_v44 = vpop.eup %5380 }
0x1418   :  { %v2122_v48 = vmul.f32 %v5381_v44, %v2115_v19 }
0x141a   :  { %v2129_v50 = vmul.f32 %v4422_v45, %v2122_v48 }
0x141c   :  { %v2136_v54 = vadd.f32 %v4423_v49, %v2129_v50 }
0x141e   :  { %v3089_v56 = vpack.c.bf16 %v2136_v54, %v2136_v54 }
0x1420   :  { %3214 = vmatmul.mubr.bf16.vlgmr.msra.gmra.mrb[48].mxu0 %v3089_v56 }
0x1421   :  { %4977 = vmatprep.mubr.msk.bf16.mxu0 %vm6239_vm4, %v6237_v29 }
0x1498   :  { %v2975_v2 = vpop.xlane.xlu1 %2974 }
0x1499   :  { %v2976_v3 = vmul.f32 0.0078125, %v2975_v2 }
0x149b   :  { %v2977_v4 = vadd.f32 1e-05, %v2976_v3 }
0x149d   :  { %5382 = vrsqrt.f32 %v2977_v4 }
0x14a7   :  { %v5383_v5 = vpop.eup %5382 }
0x14a8   :  { %v2979_v7 = vmul.f32 %v5383_v5, %v2972_v16 }
0x14aa   :  { %v2986_v9 = vmul.f32 %v4468_v6, %v2979_v7 }
0x14ac   :  { %v6905_v41 = vadd.f32 %v4469_v8, %v2986_v9 }
0x14ae   :  { %v2994_v59 = vpack.c.bf16 %v6905_v41, %v6905_v41 }
0x14b0   :  { %4948 = vmatmul.mubr.bf16.vlgmr.msra.gmra.mrb[56].mxu1 %v2994_v59 }
0x14b1   :  { %4953 = vmatprep.mubr.msk.bf16.mxu1 %vm6239_vm4, %v6237_v29 }
0x14f3   :  { %v3215_v12 = vpop.f32.mrb[48].mxu0 }
0x14f4   :  { %v3216_v13 = vadd.f32 %v3215_v12, %v3094_v11  ;;  %v3217_v14 = vpop.f32.mrb[49].mxu0 }
0x14f5   :  { %v3219_v15 = vpop.f32.mrb[50].mxu0  ;;  %v3218_v22 = vadd.f32 %v3217_v14, %v3098_v20 }
0x14f6   :  { %v3224_v17 = vpack.c.bf16 %v3216_v13, %v3216_v13  ;;  %v3220_v18 = vpop.f32.mrb[51].mxu0 }
0x14f7   :  { %v6915_v25 = vpack.c.bf16 %v3218_v22, %v3218_v22 }
0x14f8   :  { %v3230_v19 = vsel %vm1237_vm5, %v3224_v17, 0 }
0x14f9   :  { %4952 = vmatpush3.bf16.xpose.msra.mxu1 %v3230_v19  ;;  %v3288_v30 = vsel %vm1300_vm6, %v6915_v25, 0 }
0x14fa   :  { %4957 = vmatprep.subr.bf16.mxu1 %v6237_v29 }
0x1583   :  { %v3083_v36 = vpop.f32.mrb[56].mxu1 }
0x1584   :  { %v3084_v51 = vadd.f32 %v4470_v21, %v3083_v36  ;;  %v4949_v23 = vpop.f32.mrb[57].mxu1 }
0x1585   :  { %v3086_v24 = vpop.f32.mrb[58].mxu1 }
0x1586   :  { %v3222_v46 = vmul.f32 0.17677669, %v3084_v51  ;;  %v4950_v27 = vpop.f32.mrb[59].mxu1 }
0x1588   :  { %v3223_v28 = vpack.c.bf16 %v3222_v46, %v3222_v46 }
0x158a   :  { %4954 = vmatmul.mubr.msk.bf16.vlgmr.msra.gmra.mrb[60].mxu1 %vm1237_vm5, %v3223_v28 }
0x158b   :  { %4958 = vmatpush3.bf16.msra.mxu1 %v3288_v30  ;;  %4959 = vmatprep.mubr.msk.bf16.mxu1 %vm6239_vm4, %v6237_v29 }
0x158c   :  { %4963 = vmatprep.subr.bf16.mxu1 %v6237_v29 }
0x165d   :  { %v3266_v26 = vpop.f32.mrb[60].mxu1 }
0x165e   :  { %v4955_v31 = vpop.f32.mrb[61].mxu1  ;;  %v3272_v34 = vsel %vm1284_vm7, %v3266_v26, -inf }
0x165f   :  { %3273 = vmax.xlane.f32.xlu0 %v3272_v34  ;;  %v3269_v52 = vpop.f32.mrb[62].mxu1 }
0x1660   :  { %v4956_v57 = vpop.f32.mrb[63].mxu1 }
0x1675   :  { %3334 = vrot.lane.b32.xlu0 %v3224_v17, %s6240_s13 }
0x1679   :  { %3443 = vrot.lane.b32.xlu0 %v3223_v28, %s6201_s26 }
0x167d   :  { %3553 = vrot.lane.b32.xlu0 %v3223_v28, %s6241_s21 }
0x16ec   :  { %v3274_v35 = vpop.xlane.xlu0 %3273 }
0x16ed   :  { %v3275_v37 = vsub.f32 %v3266_v26, %v3274_v35 }
0x16ef   :  { %v3276_v55 = vmul.f32 1.442695, %v3275_v37 }
0x16f0   :  { %v3335_v44 = vpop.permute.xlu0 %3334 }
0x16f1   :  { %5384 = vpow2.f32 %v3276_v55  ;;  %v3340_v50 = vsel %vm1237_vm5, %v3335_v44, 0 }
0x16f4   :  { %v3444_v53 = vpop.permute.xlu0 %3443 }
0x16f8   :  { %v3554_v56 = vpop.permute.xlu0 %3553 }
0x16fb   :  { %v5385_v38 = vpop.eup %5384 }
0x16fc   :  { %v3278_v16 = vsel %vm1284_vm7, %v5385_v38, 0.0 }
0x16fd   :  { %3279 = vadd.xlane.f32.xlu1 %v3278_v16 }
0x170e   :  { %3331 = vrot.lane.b32.xlu1 %v3223_v28, %s6240_s13 }
0x1712   :  { %3445 = vrot.lane.b32.xlu1 %v3224_v17, %s6201_s26 }
0x1716   :  { %3555 = vrot.lane.b32.xlu1 %v3224_v17, %s6241_s21 }
0x178a   :  { %v3280_v39 = vpop.xlane.xlu1 %3279 }
0x178b   :  { %5386 = vrcp.f32 %v3280_v39 }
0x178e   :  { %v3332_v40 = vpop.permute.xlu1 %3331 }
0x1792   :  { %v3446_v42 = vpop.permute.xlu1 %3445 }
0x1793   :  { %v3451_v43 = vsel %vm1237_vm5, %v3446_v42, 0 }
0x1794   :  { %4976 = vmatpush3.bf16.xpose.msra.mxu0 %v3451_v43 }
0x1795   :  { %v5387_v45 = vpop.eup %5386  ;;  %4987 = vmatprep.subr.bf16.mxu0 %v6237_v29 }
0x1796   :  { %v3282_v47 = vmul.f32 %v5387_v45, %v5385_v38  ;;  %v3556_v48 = vpop.permute.xlu1 %3555 }
0x1797   :  { %v3561_v54 = vsel %vm1237_vm5, %v3556_v48, 0 }
0x1798   :  { %v3283_v49 = vpack.c.bf16 %v3282_v47, %v3282_v47 }
0x179a   :  { %4960 = vmatmul.mubr.msk.bf16.vlgmr.msra.gmra.mrb[64].mxu1 %vm1284_vm7, %v3283_v49  ;;  %v5270_v49 = vld [vmem:[#allocation10] sm:$0xff]  }
0x179b   :  { %4964 = vmatpush3.bf16.xpose.msra.mxu1 %v3340_v50  ;;  %4978 = vmatmul.mubr.msk.bf16.vlgmr.msra.gmra.mrb[52].mxu0 %vm1237_vm5, %v3444_v53  ;;  %v5271_v50 = vld [vmem:[#allocation10 + $0x8] sm:$0xff]   ;;  %v5272_v53 = vld [vmem:[#allocation10 + $0x10] sm:$0xff]  }
0x179c   :  { %4988 = vmatpush3.bf16.xpose.msra.mxu0 %v3561_v54  ;;  %4965 = vmatprep.mubr.msk.bf16.mxu1 %vm6239_vm4, %v6237_v29  ;;  %v5273_v54 = vld [vmem:[#allocation10 + $0x18] sm:$0xff]  }
0x179d   :  { %4989 = vmatprep.mubr.msk.bf16.mxu0 %vm6239_vm4, %v6237_v29  ;;  %4969 = vmatprep.subr.bf16.mxu1 %v6237_v29 }
0x179e   :  { %4999 = vmatprep.subr.bf16.mxu0 %v6237_v29 }
0x17a2   :  { %4966 = vmatmul.mubr.msk.bf16.vlgmr.msra.gmra.mrb[68].mxu1 %vm1237_vm5, %v3332_v40 }
0x17a3   :  { %4990 = vmatmul.mubr.msk.bf16.vlgmr.msra.gmra.mrb[56].mxu0 %vm1237_vm5, %v3554_v56  ;;  %4971 = vmatprep.mubr.msk.bf16.mxu1 %vm6239_vm4, %v6237_v29  ;;  %v5274_v56 = vld [vmem:[#allocation10 + $0x20] sm:$0xff]  }
0x17a4   :  { %5015 = vmatprep.mubr.msk.bf16.mxu0 %vm6239_vm4, %v6237_v29  ;;  %5000 = vmatpush3.bf16.msra.mxu0 %v5270_v49 }
0x17a5   :  { %5001 = vmatprep.subr.bf16.mxu0 %v6237_v29 }
0x17a8   :  { %5002 = vmatpush3.bf16.msra.mxu0 %v5271_v50  ;;  %v4513_v50 = vld [vmem:[#allocation16] ss:$0 sm:$0xff] }
0x17a9   :  { %5003 = vmatprep.subr.bf16.mxu0 %v6237_v29 }
0x17ac   :  { %5004 = vmatpush3.bf16.msra.mxu0 %v5272_v53 }
0x17ad   :  { %5005 = vmatprep.subr.bf16.mxu0 %v6237_v29 }
0x17b0   :  { %5006 = vmatpush3.bf16.msra.mxu0 %v5273_v54 }
0x17b1   :  { %5007 = vmatprep.subr.bf16.mxu0 %v6237_v29 }
0x17b4   :  { %5008 = vmatpush3.bf16.msra.mxu0 %v5274_v56 }
0x17b5   :  { %5009 = vmatprep.subr.bf16.mxu0 %v6237_v29 }
0x186d   :  { %v6949_v62 = vpop.f32.mrb[64].mxu1 }
0x186e   :  { %v4961_v63 = vpop.f32.mrb[65].mxu1  ;;  %v3487_v1 = vpop.f32.mrb[52].mxu0 }
0x186f   :  { %v3327_v61 = vpop.f32.mrb[66].mxu1  ;;  %v4979_v2 = vpop.f32.mrb[53].mxu0  ;;  %v3493_v3 = vsel %vm1284_vm7, %v3487_v1, -inf  ;;  %v5275_v63 = vld [vmem:[#allocation10 + $0x28] sm:$0xff]  }
0x1870   :  { %3494 = vmax.xlane.f32.xlu0 %v3493_v3  ;;  %v4962_v4 = vpop.f32.mrb[67].mxu1  ;;  %v3490_v5 = vpop.f32.mrb[54].mxu0  ;;  %5010 = vmatpush3.bf16.msra.mxu0 %v5275_v63  ;;  %v5302_v63 = vld [vmem:[#allocation30 + $0x40] sm:$0xff]  }
0x1871   :  { %v4980_v6 = vpop.f32.mrb[55].mxu0  ;;  %5011 = vmatprep.subr.bf16.mxu0 %v6237_v29  ;;  %v5277_v5 = vld [vmem:[#allocation10 + $0x38] sm:$0xff]  }
0x1875   :  { %v3376_v7 = vpop.f32.mrb[68].mxu1 }
0x1876   :  { %v4967_v8 = vpop.f32.mrb[69].mxu1  ;;  %v3597_v9 = vpop.f32.mrb[56].mxu0  ;;  %v3382_v59 = vsel %vm1284_vm7, %v3376_v7, -inf }
0x1877   :  { %v4991_v10 = vpop.f32.mrb[57].mxu0  ;;  %3383 = vmax.xlane.f32.xlu1 %v3382_v59  ;;  %v3379_v11 = vpop.f32.mrb[70].mxu1  ;;  %v3603_v12 = vsel %vm1284_vm7, %v3597_v9, -inf }
0x1878   :  { %3604 = vmax.xlane.f32.xlu0 %v3603_v12  ;;  %v4968_v13 = vpop.f32.mrb[71].mxu1  ;;  %v3600_v14 = vpop.f32.mrb[58].mxu0 }
0x1879   :  { %v4992_v15 = vpop.f32.mrb[59].mxu0 }
0x18fd   :  { %v3495_v17 = vpop.xlane.xlu0 %3494 }
0x18fe   :  { %v3496_v18 = vsub.f32 %v3487_v1, %v3495_v17  ;;  %v5276_v1 = vld [vmem:[#allocation10 + $0x30] sm:$0xff]  }
0x18ff   :  { %5012 = vmatpush3.bf16.msra.mxu0 %v5276_v1  ;;  %v5303_v1 = vld [vmem:[#allocation30] sm:$0xff]  }
0x1900   :  { %v3497_v19 = vmul.f32 1.442695, %v3496_v18  ;;  %5013 = vmatprep.subr.bf16.mxu0 %v6237_v29 }
0x1902   :  { %5388 = vpow2.f32 %v3497_v19 }
0x1903   :  { %5014 = vmatpush3.bf16.msra.mxu0 %v5277_v5  ;;  %v5308_v5 = vld [vmem:[#allocation30 + $0x58] sm:$0xff]  }
0x1904   :  { %v3384_v20 = vpop.xlane.xlu1 %3383  ;;  %4733 = vmatprep.subr.bf16.mxu0 %v5302_v63 }
0x1905   :  { %v3385_v21 = vsub.f32 %v3376_v7, %v3384_v20  ;;  %v3605_v22 = vpop.xlane.xlu0 %3604  ;;  %v4503_v20 = vld [vmem:[#allocation6] ss:$0 sm:$0xff] }
0x1906   :  { %v3606_v36 = vsub.f32 %v3597_v9, %v3605_v22 }
0x1907   :  { %v3386_v51 = vmul.f32 1.442695, %v3385_v21 }
0x1908   :  { %v3607_v23 = vmul.f32 1.442695, %v3606_v36 }
0x190a   :  { %5390 = vpow2.f32 %v3607_v23 }
0x190b   :  { %5392 = vpow2.f32 %v3386_v51 }
0x190c   :  { %v5389_v24 = vpop.eup %5388 }
0x190d   :  { %v3499_v46 = vsel %vm1284_vm7, %v5389_v24, 0.0 }
0x190e   :  { %3500 = vadd.xlane.f32.xlu0 %v3499_v46  ;;  %v5278_v46 = vld [vmem:[#allocation28] ss:$8 sps:$4 sm:$0xff]  }
0x1914   :  { %v5391_v27 = vpop.eup %5390 }
0x1915   :  { %v3609_v28 = vsel %vm1284_vm7, %v5391_v27, 0.0  ;;  %v5393_v30 = vpop.eup %5392 }
0x1916   :  { %3610 = vadd.xlane.f32.xlu1 %v3609_v28  ;;  %v3388_v26 = vsel %vm1284_vm7, %v5393_v30, 0.0  ;;  %v5283_v28 = vld [vmem:[#allocation28 + $0x14] ss:$8 sps:$4 sm:$0xff]  }
0x191a   :  { %3389 = vadd.xlane.f32.xlu1 %v3388_v26  ;;  %v5284_v26 = vld [vmem:[#allocation28 + $0x20] ss:$8 sps:$4 sm:$0xff]  }
0x1924   :  { %3395 = vrot.lane.b32.xlu0 %v6915_v25, %s6240_s13 }
0x192b   :  { %3505 = vrot.lane.b32.xlu1 %v6915_v25, %s6201_s26 }
0x192f   :  { %3615 = vrot.lane.b32.xlu1 %v6915_v25, %s6241_s21 }
0x199b   :  { %v3501_v31 = vpop.xlane.xlu0 %3500 }
0x199f   :  { %v3396_v34 = vpop.permute.xlu0 %3395 }
0x19a0   :  { %v3401_v52 = vsel %vm1300_vm6, %v3396_v34, 0 }
0x19a1   :  { %4970 = vmatpush3.bf16.msra.mxu1 %v3401_v52 }
0x19a2   :  { %4981 = vmatprep.subr.bf16.mxu1 %v6237_v29 }
0x19a3   :  { %v3611_v57 = vpop.xlane.xlu1 %3610 }
0x19a7   :  { %v3390_v35 = vpop.xlane.xlu1 %3389 }
0x19a8   :  { %5394 = vrcp.f32 %v3390_v35  ;;  %v5289_v35 = vld [vmem:[#allocation28 + $0x34] ss:$8 sps:$4 sm:$0xff]  }
0x19a9   :  { %5396 = vrcp.f32 %v3501_v31 }
0x19aa   :  { %5398 = vrcp.f32 %v3611_v57 }
0x19ab   :  { %v3506_v38 = vpop.permute.xlu1 %3505 }
0x19ac   :  { %v3511_v40 = vsel %vm1300_vm6, %v3506_v38, 0  ;;  %v5295_v38 = vld [vmem:[#allocation28 + $0x54] ss:$8 sps:$4 sm:$0xff]  }
0x19af   :  { %v3616_v42 = vpop.permute.xlu1 %3615 }
0x19b0   :  { %v3621_v45 = vsel %vm1300_vm6, %v3616_v42, 0  ;;  %v5299_v42 = vld [vmem:[#allocation28 + $0x70] ss:$8 sps:$4 sm:$0xff]  }
0x19b2   :  { %v5395_v37 = vpop.eup %5394 }
0x19b3   :  { %v3392_v55 = vmul.f32 %v5395_v37, %v5393_v30  ;;  %v5397_v39 = vpop.eup %5396  ;;  %v5286_v30 = vld [vmem:[#allocation28 + $0x24] ss:$8 sps:$4 sm:$0xff]  }
0x19b4   :  { %v3503_v25 = vmul.f32 %v5397_v39, %v5389_v24  ;;  %v5399_v44 = vpop.eup %5398  ;;  %v5292_v37 = vld [vmem:[#allocation28 + $0x44] ss:$8 sps:$4 sm:$0xff]  }
0x19b5   :  { %v3393_v16 = vpack.c.bf16 %v3392_v55, %v3392_v55  ;;  %v3613_v47 = vmul.f32 %v5399_v44, %v5391_v27  ;;  %v5280_v27 = vld [vmem:[#allocation28 + $0x4] ss:$8 sps:$4 sm:$0xff]   ;;  %v5290_v55 = vld [vmem:[#allocation28 + $0x40] ss:$8 sps:$4 sm:$0xff]  }
0x19b6   :  { %v3504_v43 = vpack.c.bf16 %v3503_v25, %v3503_v25  ;;  %v5298_v39 = vld [vmem:[#allocation28 + $0x64] ss:$8 sps:$4 sm:$0xff]   ;;  %v5301_v25 = vld [vmem:[#allocation28 + $0x74] ss:$8 sps:$4 sm:$0xff]  }
0x19b7   :  { %4972 = vmatmul.mubr.msk.bf16.vlgmr.msra.gmra.mrb[72].mxu1 %vm1284_vm7, %v3393_v16  ;;  %v3614_v48 = vpack.c.bf16 %v3613_v47, %v3613_v47  ;;  %v5293_v16 = vld [vmem:[#allocation28 + $0x50] ss:$8 sps:$4 sm:$0xff]  }
0x19b8   :  { %4982 = vmatpush3.bf16.msra.mxu1 %v3511_v40  ;;  %4983 = vmatprep.mubr.msk.bf16.mxu1 %vm6239_vm4, %v6237_v29  ;;  %v5296_v40 = vld [vmem:[#allocation28 + $0x60] ss:$8 sps:$4 sm:$0xff]  }
0x19b9   :  { %4993 = vmatprep.subr.bf16.mxu1 %v6237_v29 }
0x19bf   :  { %4984 = vmatmul.mubr.msk.bf16.vlgmr.msra.gmra.mrb[76].mxu1 %vm1284_vm7, %v3504_v43 }
0x19c0   :  { %4994 = vmatpush3.bf16.msra.mxu1 %v3621_v45  ;;  %4995 = vmatprep.mubr.msk.bf16.mxu1 %vm6239_vm4, %v6237_v29 }
0x19c1   :  { %3891 = vmatprep.subr.bf16.mxu1 %v5280_v27 }
0x19c7   :  { %4996 = vmatmul.mubr.msk.bf16.vlgmr.msra.gmra.mrb[80].mxu1 %vm1284_vm7, %v3614_v48  ;;  %v4512_v48 = vld [vmem:[#allocation18] ss:$0 sm:$0xff] }
0x19c8   :  { %3923 = vmatprep.mubr.bf16.mxu1 %v6236_v0  ;;  %3892 = vmatpush1.bf16.msra.mxu1 %v5278_v46 }
0x19c9   :  { %3893 = vmatprep.subr.bf16.mxu1 %v5283_v28 }
0x1a8a   :  { %v3437_v61 = vpop.f32.mrb[72].mxu1 }
0x1a8b   :  { %3664 = vrot.lane.b32.xlu0 %v3437_v61, %s6241_s21  ;;  %v4973_v2 = vpop.f32.mrb[73].mxu1  ;;  %v5304_v61 = vld [vmem:[#allocation30 + $0x48] sm:$0xff]  }
0x1a8c   :  { %v3440_v3 = vpop.f32.mrb[74].mxu1  ;;  %v5305_v2 = vld [vmem:[#allocation30 + $0x8] sm:$0xff]  }
0x1a8d   :  { %v4974_v4 = vpop.f32.mrb[75].mxu1  ;;  %v5306_v3 = vld [vmem:[#allocation30 + $0x50] sm:$0xff]  }
0x1a8e   :  { %v5307_v4 = vld [vmem:[#allocation30 + $0x10] sm:$0xff]  }
0x1a92   :  { %v3547_v6 = vpop.f32.mrb[76].mxu1 }
0x1a93   :  { %3668 = vrot.lane.b32.xlu1 %v3547_v6, %s6201_s26  ;;  %v4985_v7 = vpop.f32.mrb[77].mxu1  ;;  %v5309_v6 = vld [vmem:[#allocation30 + $0x18] sm:$0xff]   ;;  %s7058_s26 = sld [smem:[#allocation70_spill]] }
0x1a94   :  { %v3550_v8 = vpop.f32.mrb[78].mxu1  ;;  %v5310_v7 = vld [vmem:[#allocation30 + $0x60] sm:$0xff]  }
0x1a95   :  { %v4986_v9 = vpop.f32.mrb[79].mxu1  ;;  %v5311_v8 = vld [vmem:[#allocation30 + $0x20] sm:$0xff]  }
0x1a96   :  { %v5313_v9 = vld [vmem:[#allocation30 + $0x28] sm:$0xff]  }
0x1a9a   :  { %v3657_v59 = vpop.f32.mrb[80].mxu1 }
0x1a9b   :  { %3672 = vrot.lane.b32.xlu0 %v3657_v59, %s6240_s13  ;;  %v4997_v10 = vpop.f32.mrb[81].mxu1  ;;  %v5314_v59 = vld [vmem:[#allocation30 + $0x70] sm:$0xff]  }
0x1a9c   :  { %v3660_v11 = vpop.f32.mrb[82].mxu1  ;;  %v5315_v10 = vld [vmem:[#allocation30 + $0x30] sm:$0xff]  }
0x1a9d   :  { %v4998_v12 = vpop.f32.mrb[83].mxu1  ;;  %v5316_v11 = vld [vmem:[#allocation30 + $0x78] sm:$0xff]  }
0x1a9e   :  { %v5317_v12 = vld [vmem:[#allocation30 + $0x38] sm:$0xff]  }
0x1afd   :  { %v3665_v13 = vpop.permute.xlu0 %3664 }
0x1afe   :  { %v3675_v29 = vsel %vm1237_vm5, %v6949_v62, %v3665_v13  ;;  %v5281_v62 = vld [vmem:[#allocation28 + $0x10] ss:$8 sps:$4 sm:$0xff]   ;;  %v544_v13 = vld [vmem:[#allocation2] sm:$0x3] }
0x1aff   :  { %3894 = vmatpush1.bf16.msra.mxu1 %v5281_v62 }
0x1b00   :  { %3895 = vmatprep.subr.bf16.mxu1 %v5286_v30 }
0x1b03   :  { %3896 = vmatpush1.bf16.msra.mxu1 %v5284_v26 }
0x1b04   :  { %3897 = vmatprep.subr.bf16.mxu1 %v5289_v35 }
0x1b05   :  { %v3669_v14 = vpop.permute.xlu1 %3668 }
0x1b06   :  { %v3676_v15 = vsel %vm1690_vm8, %v3675_v29, %v3669_v14  ;;  %v3804_v14 = vrot.slane %v544_v13, %v6675_v60  ;;  %v3808_v29 = vrot.slane %v544_v13, %v6672_v58 }
0x1b0d   :  { %v3673_v17 = vpop.permute.xlu0 %3672 }
0x1b0e   :  { %v3677_v18 = vsel %vm1692_vm9, %v3676_v15, %v3673_v17 }
0x1b0f   :  { %v3678_v19 = vpack.c.bf16 %v3677_v18, %v3677_v18 }
0x1b11   :  { %5016 = vmatmul.mubr.bf16.vlgmr.msra.gmra.mrb[60].mxu0 %v3678_v19 }
0x1b12   :  { %4734 = vmatpush3.bf16.msra.mxu0 %v5303_v1 }
0x1b13   :  { %4735 = vmatprep.subr.bf16.mxu0 %v5304_v61  ;;  %v5329_v61 = vld [vmem:[#allocation33 + $0x34] ss:$8 sps:$4 sm:$0xff]  }
0x1b16   :  { %4736 = vmatpush3.bf16.msra.mxu0 %v5305_v2  ;;  %v5332_v2 = vld [vmem:[#allocation33 + $0x44] ss:$8 sps:$4 sm:$0xff]  }
0x1b17   :  { %4737 = vmatprep.subr.bf16.mxu0 %v5306_v3  ;;  %v5330_v3 = vld [vmem:[#allocation33 + $0x40] ss:$8 sps:$4 sm:$0xff]  }
0x1b1a   :  { %4738 = vmatpush3.bf16.msra.mxu0 %v5307_v4  ;;  %v5335_v4 = vld [vmem:[#allocation33 + $0x54] ss:$8 sps:$4 sm:$0xff]  }
0x1b1b   :  { %4739 = vmatprep.subr.bf16.mxu0 %v5308_v5  ;;  %v5333_v5 = vld [vmem:[#allocation33 + $0x50] ss:$8 sps:$4 sm:$0xff]  }
0x1b1e   :  { %4740 = vmatpush3.bf16.msra.mxu0 %v5309_v6  ;;  %v5338_v6 = vld [vmem:[#allocation33 + $0x64] ss:$8 sps:$4 sm:$0xff]  }
0x1b1f   :  { %4741 = vmatprep.subr.bf16.mxu0 %v5310_v7  ;;  %v5336_v7 = vld [vmem:[#allocation33 + $0x60] ss:$8 sps:$4 sm:$0xff]  }
0x1b22   :  { %4742 = vmatpush3.bf16.msra.mxu0 %v5311_v8  ;;  %v5341_v8 = vld [vmem:[#allocation33 + $0x74] ss:$8 sps:$4 sm:$0xff]  }
0x1be4   :  { %v3767_v21 = vpop.f32.mrb[60].mxu0 }
0x1be5   :  { %v3768_v22 = vadd.f32 %v4503_v20, %v3767_v21  ;;  %v5017_v36 = vpop.f32.mrb[61].mxu0 }
0x1be6   :  { %v3770_v51 = vpop.f32.mrb[62].mxu0 }
0x1be7   :  { %v5018_v23 = vpop.f32.mrb[63].mxu0  ;;  %v3773_v24 = vadd.f32 %v3768_v22, %v6905_v41  ;;  %v5287_v41 = vld [vmem:[#allocation28 + $0x30] ss:$8 sps:$4 sm:$0xff]  }
0x1be8   :  { %3898 = vmatpush1.bf16.msra.mxu1 %v5287_v41 }
0x1be9   :  { %3774 = vadd.xlane.f32.xlu1 %v3773_v24  ;;  %3899 = vmatprep.subr.bf16.mxu1 %v5292_v37 }
0x1bec   :  { %3900 = vmatpush1.bf16.msra.mxu1 %v5290_v55 }
0x1bed   :  { %3901 = vmatprep.subr.bf16.mxu1 %v5295_v38  ;;  %v4530_v38 = vld [vmem:[%s7058_s26] ss:$0 sm:$0xff] }
0x1bf0   :  { %3902 = vmatpush1.bf16.msra.mxu1 %v5293_v16 }
0x1bf1   :  { %3903 = vmatprep.subr.bf16.mxu1 %v5298_v39 }
0x1bf4   :  { %3904 = vmatpush1.bf16.msra.mxu1 %v5296_v40 }
0x1bf5   :  { %3905 = vmatprep.subr.bf16.mxu1 %v5301_v25 }
0x1bf8   :  { %3906 = vmatpush1.bf16.msra.mxu1 %v5299_v42 }
0x1c76   :  { %v3775_v31 = vpop.xlane.xlu1 %3774 }
0x1c77   :  { %v3776_v34 = vmul.f32 0.0078125, %v3775_v31 }
0x1c79   :  { %v3777_v52 = vsub.f32 %v3773_v24, %v3776_v34 }
0x1c7b   :  { %v3778_v57 = vmul.f32 %v3777_v52, %v3777_v52 }
0x1c7d   :  { %3779 = vadd.xlane.f32.xlu0 %v3778_v57 }
0x1d0a   :  { %v3780_v43 = vpop.xlane.xlu0 %3779 }
0x1d0b   :  { %v3781_v44 = vmul.f32 0.0078125, %v3780_v43 }
0x1d0d   :  { %v3782_v45 = vadd.f32 1e-05, %v3781_v44  ;;  %v5318_v44 = vld [vmem:[#allocation33] ss:$8 sps:$4 sm:$0xff]  }
0x1d0f   :  { %5400 = vrsqrt.f32 %v3782_v45  ;;  %v5320_v45 = vld [vmem:[#allocation33 + $0x4] ss:$8 sps:$4 sm:$0xff]  }
0x1d10   :  { %4201 = vmatprep.subr.bf16.mxu1 %v5320_v45 }
0x1d19   :  { %v5401_v47 = vpop.eup %5400 }
0x1d1a   :  { %v3784_v49 = vmul.f32 %v5401_v47, %v3777_v52  ;;  %v5323_v47 = vld [vmem:[#allocation33 + $0x14] ss:$8 sps:$4 sm:$0xff]  }
0x1d1c   :  { %v3791_v53 = vmul.f32 %v4512_v48, %v3784_v49  ;;  %v5321_v48 = vld [vmem:[#allocation33 + $0x10] ss:$8 sps:$4 sm:$0xff]   ;;  %v5326_v49 = vld [vmem:[#allocation33 + $0x24] ss:$8 sps:$4 sm:$0xff]  }
0x1d1e   :  { %v6991_v54 = vadd.f32 %v4513_v50, %v3791_v53  ;;  %v5324_v50 = vld [vmem:[#allocation33 + $0x20] ss:$8 sps:$4 sm:$0xff]  }
0x1d20   :  { %v3799_v56 = vpack.c.bf16 %v6991_v54, %v6991_v54 }
0x1d22   :  { %3924 = vmatmul.mubr.bf16.vlgmr.msra.gmra.mrb[84].mxu1 %v3799_v56 }
0x1d23   :  { %4233 = vmatprep.mubr.bf16.mxu1 %v6236_v0  ;;  %v5312_v0 = vld [vmem:[#allocation30 + $0x68] sm:$0xff]   ;;  %4202 = vmatpush1.bf16.msra.mxu1 %v5318_v44 }
0x1d24   :  { %4743 = vmatprep.subr.bf16.mxu0 %v5312_v0  ;;  %4203 = vmatprep.subr.bf16.mxu1 %v5323_v47  ;;  %v5339_v0 = vld [vmem:[#allocation33 + $0x70] ss:$8 sps:$4 sm:$0xff]  }
0x1d25   :  { %4744 = vmatpush3.bf16.msra.mxu0 %v5313_v9 }
0x1d26   :  { %4745 = vmatprep.subr.bf16.mxu0 %v5314_v59 }
0x1d27   :  { %4204 = vmatpush1.bf16.msra.mxu1 %v5321_v48 }
0x1d28   :  { %4205 = vmatprep.subr.bf16.mxu1 %v5326_v49 }
0x1d29   :  { %4746 = vmatpush3.bf16.msra.mxu0 %v5315_v10 }
0x1d2a   :  { %4747 = vmatprep.subr.bf16.mxu0 %v5316_v11 }
0x1d2b   :  { %4206 = vmatpush1.bf16.msra.mxu1 %v5324_v50 }
0x1d2c   :  { %4207 = vmatprep.subr.bf16.mxu1 %v5329_v61 }
0x1d2d   :  { %4748 = vmatpush3.bf16.msra.mxu0 %v5317_v12  ;;  %v4547_v12 = vld [vmem:[#allocation21] ss:$0 sm:$0xff] }
0x1df5   :  { %v3925_v15 = vpop.f32.mrb[84].mxu1 }
0x1df6   :  { %v3926_v17 = vadd.f32 %v3925_v15, %v3804_v14  ;;  %v3927_v18 = vpop.f32.mrb[85].mxu1  ;;  %v4548_v14 = vld [vmem:[#allocation19] ss:$0 sm:$0xff] }
0x1df7   :  { %v3928_v19 = vadd.f32 %v3927_v18, %v3808_v29  ;;  %v3929_v20 = vpop.f32.mrb[86].mxu1 }
0x1df8   :  { %v3932_v21 = vmul.f32 %v3926_v17, %v3926_v17  ;;  %v3930_v22 = vpop.f32.mrb[87].mxu1 }
0x1df9   :  { %v3933_v36 = vmul.f32 %v3928_v19, %v3928_v19 }
0x1dfa   :  { %v3934_v51 = vmul.f32 %v3932_v21, %v3926_v17 }
0x1dfb   :  { %v3935_v23 = vmul.f32 %v3933_v36, %v3928_v19 }
0x1dfc   :  { %v3936_v24 = vmul.f32 0.044715, %v3934_v51 }
0x1dfd   :  { %v3937_v46 = vmul.f32 0.044715, %v3935_v23 }
0x1dfe   :  { %v3938_v27 = vadd.f32 %v3936_v24, %v3926_v17 }
0x1dff   :  { %v3939_v28 = vadd.f32 %v3937_v46, %v3928_v19 }
0x1e00   :  { %v3940_v62 = vmul.f32 0.7978846, %v3938_v27 }
0x1e01   :  { %v3941_v30 = vmul.f32 0.7978846, %v3939_v28 }
0x1e02   :  { %5402 = vtanh.f32 %v3940_v62 }
0x1e03   :  { %5404 = vtanh.f32 %v3941_v30 }
0x1e0c   :  { %v5403_v58 = vpop.eup %5402 }
0x1e0d   :  { %v5405_v60 = vpop.eup %5404  ;;  %v3944_v26 = vadd.f32 1.0, %v5403_v58 }
0x1e0e   :  { %v3945_v31 = vadd.f32 1.0, %v5405_v60 }
0x1e0f   :  { %v3946_v34 = vmul.f32 0.5, %v3944_v26 }
0x1e10   :  { %v3947_v52 = vmul.f32 0.5, %v3945_v31 }
0x1e11   :  { %v3948_v57 = vmul.f32 %v3946_v34, %v3926_v17 }
0x1e12   :  { %v3949_v35 = vmul.f32 %v3947_v52, %v3928_v19 }
0x1e13   :  { %v3950_v37 = vpack.c.bf16 %v3948_v57, %v3948_v57 }
0x1e14   :  { %v3951_v41 = vpack.c.bf16 %v3949_v35, %v3949_v35 }
0x1e16   :  { %4086 = vmatprep.mubr.bf16.mxu0 %v3951_v41 }
0x1e17   :  { %4087 = vmatmul.mubr.bf16.vlgmr.msra.gmra.mrb[64].mxu0 %v3950_v37 }
0x1eea   :  { %v4749_v55 = vpop.f32.mrb[64].mxu0 }
0x1eeb   :  { %v4750_v16 = vpop.f32.mrb[65].mxu0 }
0x1eec   :  { %v4751_v39 = vadd.f32 %v4750_v16, %v4749_v55  ;;  %v4752_v40 = vpop.f32.mrb[66].mxu0 }
0x1eed   :  { %v4753_v25 = vpop.f32.mrb[67].mxu0 }
0x1eee   :  { %v4089_v42 = vadd.f32 %v4751_v39, %v4530_v38 }
0x1ef0   :  { %v4094_v43 = vadd.f32 %v4089_v42, %v6991_v54  ;;  %v5327_v54 = vld [vmem:[#allocation33 + $0x30] ss:$8 sps:$4 sm:$0xff]  }
0x1ef1   :  { %4208 = vmatpush1.bf16.msra.mxu1 %v5327_v54 }
0x1ef2   :  { %4095 = vadd.xlane.f32.xlu0 %v4094_v43  ;;  %4209 = vmatprep.subr.bf16.mxu1 %v5332_v2 }
0x1ef5   :  { %4210 = vmatpush1.bf16.msra.mxu1 %v5330_v3 }
0x1ef6   :  { %4211 = vmatprep.subr.bf16.mxu1 %v5335_v4 }
0x1ef9   :  { %4212 = vmatpush1.bf16.msra.mxu1 %v5333_v5 }
0x1efa   :  { %4213 = vmatprep.subr.bf16.mxu1 %v5338_v6 }
0x1efd   :  { %4214 = vmatpush1.bf16.msra.mxu1 %v5336_v7 }
0x1efe   :  { %4215 = vmatprep.subr.bf16.mxu1 %v5341_v8 }
0x1f01   :  { %4216 = vmatpush1.bf16.msra.mxu1 %v5339_v0 }
0x1f7f   :  { %v4096_v53 = vpop.xlane.xlu0 %4095 }
0x1f80   :  { %v4097_v56 = vmul.f32 0.0078125, %v4096_v53 }
0x1f82   :  { %v4098_v63 = vsub.f32 %v4094_v43, %v4097_v56 }
0x1f84   :  { %v4099_v1 = vmul.f32 %v4098_v63, %v4098_v63 }
0x1f86   :  { %4100 = vadd.xlane.f32.xlu1 %v4099_v1 }
0x2013   :  { %v4101_v9 = vpop.xlane.xlu1 %4100 }
0x2014   :  { %v4102_v59 = vmul.f32 0.0078125, %v4101_v9 }
0x2016   :  { %v4103_v10 = vadd.f32 1e-05, %v4102_v59 }
0x2018   :  { %5406 = vrsqrt.f32 %v4103_v10 }
0x2022   :  { %v5407_v11 = vpop.eup %5406 }
0x2023   :  { %v4105_v13 = vmul.f32 %v5407_v11, %v4098_v63 }
0x2025   :  { %v4112_v29 = vmul.f32 %v4547_v12, %v4105_v13 }
0x2027   :  { %v4119_v15 = vadd.f32 %v4548_v14, %v4112_v29 }
0x2029   :  { %v4120_v17 = vpack.c.bf16 %v4119_v15, %v4119_v15 }
0x202b   :  { %4234 = vmatmul.mubr.bf16.vlgmr.msra.gmra.mrb[88].mxu1 %v4120_v17 }
0x20fe   :  { %v4235_v18 = vpop.f32.mrb[88].mxu1 }
0x20ff   :  { %v4237_v19 = vpop.f32.mrb[89].mxu1 }
0x2100   :  { %v4239_v20 = vpop.f32.mrb[90].mxu1  ;;  %v4242_v21 = vmax.f32 %v4235_v18, %v4237_v19 }
0x2101   :  { %v4240_v22 = vpop.f32.mrb[91].mxu1 }
0x2102   :  { %4243 = vmax.xlane.f32.xlu0 %v4242_v21 }
0x218f   :  { %v4244_v36 = vpop.xlane.xlu0 %4243 }
0x2190   :  { %vm4245_vm13 = vcmp.eq.f32.partialorder %v4235_v18, %v4244_v36  ;;  %vm4246_vm14 = vcmp.eq.f32.partialorder %v4237_v19, %v4244_v36 }
0x2191   :  { %v4247_v51 = vsel %vm4245_vm13, %v6637_v32, 256  ;;  %v4248_v23 = vsel %vm4246_vm14, %v6640_v33, 256 }
0x2192   :  { %vm4249_vm15 = vcmp.lt.s32.totalorder %v4247_v51, %v4248_v23 }
0x2193   :  { %v4250_v24 = vsel %vm4249_vm15, %v4247_v51, %v4248_v23 }
0x2194   :  { %v4252_v46 = vshra.s32 %v4250_v24, 16  ;;  %v4251_v28 = vand.u32 65535, %v4250_v24 }
0x2196   :  { %v4254_v27 = vcvt.s32.f32 %v4252_v46  ;;  %v4253_v30 = vcvt.s32.f32 %v4251_v28 }
0x2198   :  { %4255 = vmin.xlane.f32.xlu1 %v4254_v27 }
0x2225   :  { %v4256_v62 = vpop.xlane.xlu1 %4255 }
0x2226   :  { %vm4257_vm0 = vcmp.eq.f32.partialorder %v4254_v27, %v4256_v62  ;;  %v4262_v60 = vcvt.f32.s32 %v4256_v62 }
0x2227   :  { %v4258_v58 = vsel %vm4257_vm0, %v4253_v30, inf }
0x2228   :  { %4259 = vmin.xlane.f32.xlu0 %v4258_v58  ;;  %v4263_v31 = vshll.u32 %v4262_v60, 16 }
0x22b5   :  { %v4260_v26 = vpop.xlane.xlu0 %4259 }
0x22b6   :  { %v4261_v34 = vcvt.f32.s32 %v4260_v26 }
0x22b8   :  { %v4264_v32 = vadd.s32 %v4263_v31, %v4261_v34 }
0x22ba   :  { %4266 = vst.msk [vmem:[%s6432_s27] sm:$0xff] %vm4265_vm1, %v4264_v32 }
0x22bb   :  { %4271 = vsyncpa [#allocation3], 1 }
0x22bc   :  { %4272 = vsyncpa [#allocation5], 1 }
0x22bd   :  { %4273 = vsyncpa [#allocation8], 1 }
0x22be   :  { %4274 = vsyncpa [#allocation11], 1 }
0x22bf   :  { %4275 = vsyncpa [#allocation14], 1 }
0x22c0   :  { %4276 = vsyncpa [#allocation17], 1 }
0x22c1   :  { %4277 = vsyncpa [#allocation20], 1 }
0x22c2   :  { %4278 = vsyncpa [#allocation23], 1 }
0x22c3   :  { %4279 = vsyncpa [#allocation26], 1 }
0x22c4   :  { %4280 = vsyncpa [#allocation29], 1 }
0x22c5   :  { %4281 = vsyncpa [#allocation32], 1 }
0x22c6   :  { %4282 = vsyncpa [#allocation35], 1 }
0x22c7   :  { %4283 = vsyncpa [#allocation38], 1 }
0x22c8   :  { %4284 = vsyncpa [#allocation41], 1 }
0x22c9   :  { %4285 = vsyncpa [#allocation44], 1 }
0x22ca   :  { %4286 = vsyncpa [#allocation47], 1 }
0x22cb   :  { %4287 = vsyncpa [#allocation50], 1 }

</bundles_post_ra>
